<compile_context>
chip_gen: v6e
topology: v6e:2x2x1
jax: 0.10.0
libtpu: 0.0.40
codegen_flags: <defaults>
</compile_context>

<pallas_src>
import numpy as np

import jax
import jax.numpy as jnp
from jax import lax
from jax.experimental import pallas as pl
from jax.experimental.pallas import tpu as pltpu

# ----------------------------- configuration --------------------------------
BATCH = 2
N_BLOCKS = 2
D_MODEL = 32
NHEAD = 2
DIM_FF = 64
N_TX = 2
N_RX = 2
N_CARRIER = 8
DIM_FEEDBACK = 32
BN_EPS = 1e-5
LN_EPS = 1e-5
FEAT = N_RX * N_TX * 2            # TX input features per carrier
NOUT = N_TX * N_RX * 2            # RX output features per carrier
HALF = (DIM_FEEDBACK + D_MODEL) // 2
HEAD_DIM = D_MODEL // NHEAD
LANES = 128
_INV_SQRT2 = 0.7071067811865475


# ------------------------- slab layouts (static) -----------------------------
def _round8(r):
    return -(-r // 8) * 8


def _build_layout(entries):
    layout, row = {}, 0
    for name, r, c in entries:
        assert c <= LANES, (name, c)
        layout[name] = (row, r, c)
        row += _round8(r)
    return layout, row


def _weight_entries():
    e = [
        # TX transmitter (weights pre-transposed / BN-folded host-side)
        ("tx_w1", FEAT, DIM_FEEDBACK), ("tx_b1", 1, DIM_FEEDBACK),
        ("mp_w1s", 64, DIM_FEEDBACK), ("mp_sh", 64, 1),
        ("mp_w2t", 32, 64), ("mp_b2c", 32, 1),
        ("tx_w2t", 32, N_CARRIER), ("tx_b2c", 32, 1),
        ("tx_w3", DIM_FEEDBACK, DIM_FEEDBACK), ("tx_b3", 1, DIM_FEEDBACK),
        ("tx_w4d", 1, 32),
        # RX input adapter / replication one-hot / PE / attention bias
        ("ia_w1s", DIM_FEEDBACK, HALF), ("ia_sh", 1, HALF),
        ("ia_w2", HALF, D_MODEL), ("ia_b2", 1, D_MODEL),
        ("rep", BATCH * N_CARRIER, BATCH),
        ("pe2", BATCH * N_CARRIER, D_MODEL),
        ("attn_bias", BATCH * N_CARRIER, BATCH * N_CARRIER),
    ]
    for l in range(N_BLOCKS):
        e += [
            (f"enc{l}_wqkv", D_MODEL, 3 * D_MODEL), (f"enc{l}_bqkv", 1, 3 * D_MODEL),
            (f"enc{l}_wo", D_MODEL, D_MODEL), (f"enc{l}_bo", 1, D_MODEL),
            (f"enc{l}_w1", D_MODEL, DIM_FF), (f"enc{l}_b1", 1, DIM_FF),
            (f"enc{l}_w2", DIM_FF, D_MODEL), (f"enc{l}_b2", 1, D_MODEL),
            (f"enc{l}_ln", 4, D_MODEL),
        ]
    e += [
        ("out_w2", D_MODEL, BATCH * N_CARRIER * NOUT),
        ("out_sel2", BATCH * N_CARRIER, BATCH * N_CARRIER * NOUT),
        ("out_b", 1, BATCH * N_CARRIER * NOUT),
    ]
    return e


_W_LAYOUT, _W_ROWS = _build_layout(_weight_entries())
_DATA_LAYOUT, _DATA_ROWS = _build_layout([
    ("xt", BATCH * N_CARRIER, FEAT),
    ("mask", BATCH, DIM_FEEDBACK),
    ("gd", BATCH, DIM_FEEDBACK),
])


# ----------------------------- in-kernel math --------------------------------
def _erf(x):
    # Abramowitz & Stegun 7.1.26 polynomial, |err| <= 1.5e-7 (~f32 eps).
    a1, a2, a3, a4, a5 = 0.254829592, -0.284496736, 1.421413741, -1.453152027, 1.061405429
    p = 0.3275911
    s = jnp.where(x < 0.0, -1.0, 1.0)
    ax = jnp.abs(x)
    t = pl.reciprocal(1.0 + p * ax, approx=False)   # exact; off the VALU divide path
    poly = ((((a5 * t + a4) * t + a3) * t + a2) * t + a1) * t
    return s * (1.0 - poly * jnp.exp(-ax * ax))


def _gelu(x):
    # erf-based GELU == torch.nn.GELU() (approximate='none')
    return 0.5 * x * (1.0 + _erf(x * _INV_SQRT2))


def _layernorm(x, g, b):
    mu = jnp.mean(x, axis=-1, keepdims=True)
    xc = x - mu
    var = jnp.mean(xc * xc, axis=-1, keepdims=True)
    return xc * lax.rsqrt(var + LN_EPS) * g + b


# ------------------------------ fused kernel ----------------------------------
def fused_forward_kernel(data_ref, w_ref, o_ref):
    f32 = jnp.float32
    dn_t = (((1,), (1,)), ((), ()))      # contract last dims:  A @ B^T
    D = D_MODEL
    Dh = HEAD_DIM

    def W(name):
        off, r, c = _W_LAYOUT[name]
        return w_ref[off:off + r, 0:c]

    def Din(name):
        off, r, c = _DATA_LAYOUT[name]
        return data_ref[off:off + r, 0:c]

    xt = Din("xt")                       # [B*NC, FEAT]
    mask = Din("mask")                   # [B, DF]
    gd = Din("gd")                       # [B, DF]  (gumbel_0 - gumbel_1 + b4 diff)

    # ======================= TX: bit-level quantizer =======================
    # adapter_1 (+GELU), batched over all (batch, carrier) rows
    h1 = _gelu(jnp.dot(xt, W("tx_w1"), preferred_element_type=f32) + W("tx_b1"))   # [B*NC, DF]

    # mask_processor: Linear -> BatchNorm1d(eval, folded) -> GELU -> Linear,
    # computed in transposed orientation so the result broadcasts as a column.
    mmT = lax.dot_general(W("mp_w1s"), mask, dn_t, preferred_element_type=f32)     # [64, B]
    mmT = _gelu(mmT + W("mp_sh"))
    pmT = jnp.dot(W("mp_w2t"), mmT, preferred_element_type=f32) + W("mp_b2c")      # [32, B]

    tx_w2t, tx_b2c = W("tx_w2t"), W("tx_b2c")
    tx_w3, tx_b3 = W("tx_w3"), W("tx_b3")
    tx_w4d = W("tx_w4d")

    # adapters 2-4 alternate the contracted axis; B=2 unrolled loop with
    # sublane-aligned row slices only (no lane slicing of activations).
    ld_rows = []
    for b in range(BATCH):
        a_b = h1[b * N_CARRIER:(b + 1) * N_CARRIER, :]                             # [NC, DF]
        ct = (jnp.dot(tx_w2t, a_b, preferred_element_type=f32)                     # C_b^T [32, DF]
              + tx_b2c + pmT[:, b:b + 1])
        d3 = _gelu(jnp.dot(ct, tx_w3, preferred_element_type=f32) + tx_b3)         # [32, DF]
        ld_rows.append(jnp.dot(tx_w4d, d3, preferred_element_type=f32))            # [1, DF]
    ld = jnp.concatenate(ld_rows, axis=0)                                          # [B, DF]

    # hard (eval-mode) gumbel-softmax: argmax of (logits + gumbel); tau is
    # monotone and cancels.  Fuses bit*mask + neg_mask into one select.
    bits = jnp.where(mask > 0.0,
                     jnp.where(ld + gd >= 0.0, 1.0, 0.0),
                     -1.0).astype(f32)                                             # [B, DF]

    # ============================ RX: receiver =============================
    # input_adapter: Linear -> BatchNorm1d(eval, folded) -> GELU -> Linear
    z = jnp.dot(bits, W("ia_w1s"), preferred_element_type=f32)
    z = _gelu(z + W("ia_sh"))
    z = jnp.dot(z, W("ia_w2"), preferred_element_type=f32) + W("ia_b2")            # [B, D]

    # repeat 'b e -> (b n) e' via one-hot matmul + tiled positional embedding
    x = jnp.dot(W("rep"), z, preferred_element_type=f32) + W("pe2")                # [B*NC, D]

    attn_bias = W("attn_bias")                     # [B*NC, B*NC] block-diag 0 / -1e9
    scale = 1.0 / float(np.sqrt(Dh))

    # transformer encoder layers (post-norm, GELU, eval mode -> no dropout)
    for l in range(N_BLOCKS):
        wqkv, bqkv = W(f"enc{l}_wqkv"), W(f"enc{l}_bqkv")
        wo, bo = W(f"enc{l}_wo"), W(f"enc{l}_bo")
        w1, b1 = W(f"enc{l}_w1"), W(f"enc{l}_b1")
        w2, b2 = W(f"enc{l}_w2"), W(f"enc{l}_b2")
        ln = W(f"enc{l}_ln")
        g1, be1, g2, be2 = ln[0:1, :], ln[1:2, :], ln[2:3, :], ln[3:4, :]

        # fused QKV projection on the flattened [B*NC, D] slab
        qkv = jnp.dot(x, wqkv, preferred_element_type=f32) + bqkv                  # [B*NC, 3D]

        attn = None
        for h in range(NHEAD):
            qh = qkv[:, h * Dh:(h + 1) * Dh]
            kh = qkv[:, D + h * Dh:D + (h + 1) * Dh]
            vh = qkv[:, 2 * D + h * Dh:2 * D + (h + 1) * Dh]
            # full-slab scores with cross-batch -1e9 block mask
            s = lax.dot_general(qh, kh, dn_t, preferred_element_type=f32) * scale + attn_bias
            s = s - jnp.max(s, axis=-1, keepdims=True)
            p = jnp.exp(s)
            p = p * pl.reciprocal(jnp.sum(p, axis=-1, keepdims=True), approx=True)
            head = jnp.dot(p, vh, preferred_element_type=f32)                      # [B*NC, Dh]
            # fold the output projection per head (no lane-axis head concat)
            contrib = jnp.dot(head, wo[h * Dh:(h + 1) * Dh, :],
                              preferred_element_type=f32)                          # [B*NC, D]
            attn = contrib if attn is None else attn + contrib
        attn = attn + bo

        x1 = _layernorm(x + attn, g1, be1)
        ff = _gelu(jnp.dot(x1, w1, preferred_element_type=f32) + b1)               # [B*NC, DFF]
        ff = jnp.dot(ff, w2, preferred_element_type=f32) + b2
        x = _layernorm(x1 + ff, g2, be2)

    # per-carrier output adapters: one matmul against the batch-expanded,
    # output-permuted weight, masked row selection + XLU cross-sublane reduce,
    # stored as a single lane-dense [1, 128] row (batch 0 in lanes 0:63,
    # batch 1 in lanes 64:127).
    r2 = jnp.dot(x, W("out_w2"), preferred_element_type=f32)                       # [B*NC, 128]
    out = jnp.sum(r2 * W("out_sel2"), axis=0, keepdims=True) + W("out_b")          # [1, 128]
    o_ref[...] = out


# ------------------------------ parameters -----------------------------------
def init_params(key):
    keys = iter(jax.random.split(key, 40))

    def nrm(shape, scale=0.1):
        return np.asarray(scale * jax.random.normal(next(keys), shape), np.float32)

    slab = np.zeros((_W_ROWS, LANES), np.float32)

    def put(name, arr):
        off, r, c = _W_LAYOUT[name]
        arr = np.asarray(arr, np.float32)
        assert arr.shape == (r, c), (name, arr.shape, (r, c))
        slab[off:off + r, 0:c] = arr

    def bn_fold(lin_bias, nfeat):
        # eval-mode BatchNorm1d folded into scale/shift (general formula so
        # trained running stats could be dropped in); fresh init stats here.
        gamma = np.ones(nfeat, np.float32)
        beta = np.zeros(nfeat, np.float32)
        mean = np.zeros(nfeat, np.float32)
        var = np.ones(nfeat, np.float32)
        sc = gamma / np.sqrt(var + BN_EPS)
        sh = (lin_bias - mean) * sc + beta
        return sc, sh

    # ------------------------------- TX -------------------------------
    w1 = nrm((FEAT, DIM_FEEDBACK)); b1 = nrm((DIM_FEEDBACK,))
    put("tx_w1", w1); put("tx_b1", b1[None, :])

    mw1 = nrm((DIM_FEEDBACK, 64)); mb1 = nrm((64,))
    mw2 = nrm((64, 32)); mb2 = nrm((32,))
    sc, sh = bn_fold(mb1, 64)
    put("mp_w1s", (mw1 * sc[None, :]).T)       # BN scale folded, transposed [64, DF]
    put("mp_sh", sh[:, None])                  # BN shift column (includes linear bias)
    put("mp_w2t", mw2.T); put("mp_b2c", mb2[:, None])

    w2 = nrm((N_CARRIER, 32)); b2 = nrm((32,))
    w3 = nrm((DIM_FEEDBACK, DIM_FEEDBACK)); b3 = nrm((DIM_FEEDBACK,))
    w4 = nrm((32, 2)); b4 = nrm((2,))
    put("tx_w2t", w2.T); put("tx_b2c", b2[:, None])
    put("tx_w3", w3); put("tx_b3", b3[None, :])
    put("tx_w4d", (w4[:, 0] - w4[:, 1])[None, :])   # only the logit difference matters
    tx_b4d = np.float32(b4[0] - b4[1])

    # ------------------------------- RX -------------------------------
    iw1 = nrm((DIM_FEEDBACK, HALF)); ib1 = nrm((HALF,))
    iw2 = nrm((HALF, D_MODEL)); ib2 = nrm((D_MODEL,))
    sc, sh = bn_fold(ib1, HALF)
    put("ia_w1s", iw1 * sc[None, :]); put("ia_sh", sh[None, :])
    put("ia_w2", iw2); put("ia_b2", ib2[None, :])

    rep = np.zeros((BATCH * N_CARRIER, BATCH), np.float32)
    for b in range(BATCH):
        rep[b * N_CARRIER:(b + 1) * N_CARRIER, b] = 1.0
    put("rep", rep)

    # TODO(synk): PositionalEmbedding class not provided; sinusoidal additive PE.
    pos = np.arange(N_CARRIER)[:, None].astype(np.float32)
    i = np.arange(0, D_MODEL, 2).astype(np.float32)
    div = np.exp(-np.log(10000.0) * i / D_MODEL)
    pe = np.zeros((N_CARRIER, D_MODEL), np.float32)
    pe[:, 0::2] = np.sin(pos * div)
    pe[:, 1::2] = np.cos(pos * div)
    put("pe2", np.tile(pe, (BATCH, 1)))

    bias = np.full((BATCH * N_CARRIER, BATCH * N_CARRIER), -1e9, np.float32)
    for b in range(BATCH):
        blk = slice(b * N_CARRIER, (b + 1) * N_CARRIER)
        bias[blk, blk] = 0.0
    put("attn_bias", bias)

    for l in range(N_BLOCKS):
        put(f"enc{l}_wqkv", nrm((D_MODEL, 3 * D_MODEL)))
        put(f"enc{l}_bqkv", nrm((3 * D_MODEL,))[None, :])
        put(f"enc{l}_wo", nrm((D_MODEL, D_MODEL)))
        put(f"enc{l}_bo", nrm((D_MODEL,))[None, :])
        put(f"enc{l}_w1", nrm((D_MODEL, DIM_FF)))
        put(f"enc{l}_b1", nrm((DIM_FF,))[None, :])
        put(f"enc{l}_w2", nrm((DIM_FF, D_MODEL)))
        put(f"enc{l}_b2", nrm((D_MODEL,))[None, :])
        put(f"enc{l}_ln", np.stack([np.ones(D_MODEL), np.zeros(D_MODEL),
                                    np.ones(D_MODEL), np.zeros(D_MODEL)]).astype(np.float32))

    # per-carrier output adapters, columns permuted to the FINAL
    # (nrx, ntx, carrier, complex) order and expanded over batch so the kernel
    # output reshapes directly with no transpose.
    ow = nrm((N_CARRIER, D_MODEL, NOUT))
    ob = nrm((N_CARRIER, NOUT))
    wcat = np.zeros((D_MODEL, N_CARRIER * NOUT), np.float32)
    sel = np.zeros((N_CARRIER, N_CARRIER * NOUT), np.float32)
    bcat = np.zeros((N_CARRIER * NOUT,), np.float32)
    for nrx in range(N_RX):
        for ntx in range(N_TX):
            for c in range(N_CARRIER):
                for cx in range(2):
                    col = ((nrx * N_TX + ntx) * N_CARRIER + c) * 2 + cx
                    ftr = (nrx * N_TX + ntx) * 2 + cx
                    wcat[:, col] = ow[c, :, ftr]
                    sel[c, col] = 1.0
                    bcat[col] = ob[c, ftr]
    put("out_w2", np.tile(wcat, (1, BATCH)))
    sel2 = np.zeros((BATCH * N_CARRIER, BATCH * N_CARRIER * NOUT), np.float32)
    for b in range(BATCH):
        sel2[b * N_CARRIER:(b + 1) * N_CARRIER,
             b * N_CARRIER * NOUT:(b + 1) * N_CARRIER * NOUT] = sel
    put("out_sel2", sel2)
    put("out_b", np.tile(bcat, BATCH)[None, :])

    return {"w_slab": jnp.asarray(slab),
            "tx_b4d": jnp.asarray(tx_b4d, jnp.float32)}


# -------------------------------- forward ------------------------------------
def _forward(params, x, no_bits, gumbel_t):
    """x: [B, n_rx, n_tx, n_carrier, 2] f32, no_bits: [B] int32,
    gumbel_t: [B, 2, dim_feedback] f32 (Gumbel noise, component-major)."""
    f32 = jnp.float32
    B = x.shape[0]
    assert B == BATCH

    # variable-length bit mask from no_bits
    idx = jnp.arange(DIM_FEEDBACK)
    mask = (idx[None, :] < no_bits[:, None]).astype(f32)              # [B, DF]

    # 'b nrx ntx c complex -> (b c) (nrx ntx complex)'
    xt = jnp.transpose(x, (0, 3, 1, 2, 4)).reshape(B * N_CARRIER, FEAT)

    # only the DIFFERENCE of the two gumbel samples matters for the hard
    # straight-through path; the adapter_4 bias difference is folded in here.
    gd = gumbel_t[:, 0, :] - gumbel_t[:, 1, :] + params["tx_b4d"]

    data = jnp.zeros((_DATA_ROWS, LANES), f32)
    o, r, c = _DATA_LAYOUT["xt"];   data = data.at[o:o + r, 0:c].set(xt)
    o, r, c = _DATA_LAYOUT["mask"]; data = data.at[o:o + r, 0:c].set(mask)
    o, r, c = _DATA_LAYOUT["gd"];   data = data.at[o:o + r, 0:c].set(gd)

    out_flat = pl.pallas_call(
        fused_forward_kernel,
        out_shape=jax.ShapeDtypeStruct((1, BATCH * N_CARRIER * NOUT), f32),
        grid=(1,),
        in_specs=[pl.BlockSpec((_DATA_ROWS, LANES), lambda i: (0, 0)),
                  pl.BlockSpec((_W_ROWS, LANES), lambda i: (0, 0))],
        out_specs=pl.BlockSpec((1, BATCH * N_CARRIER * NOUT), lambda i: (0, 0)),
        compiler_params=pltpu.CompilerParams(
            dimension_semantics=("arbitrary",)),
    )(data, params["w_slab"])

    # columns are already ordered (batch, nrx, ntx, carrier, complex)
    return out_flat.reshape(B, N_RX, N_TX, N_CARRIER, 2)


forward = jax.jit(_forward)


# --------------------------------- main ---------------------------------------
if __name__ == "__main__":
    key = jax.random.PRNGKey(0)
    kp, kx, kg = jax.random.split(key, 3)
    params = init_params(kp)

    x = jax.random.normal(kx, (BATCH, N_RX, N_TX, N_CARRIER, 2), jnp.float32)
    no_bits = jnp.array([12, 24], dtype=jnp.int32)

    # Gumbel noise for the (eval-mode, hard) gumbel-softmax bit quantizer,
    # deterministic from the JAX key, laid out as [B, 2, dim_feedback].
    u = jax.random.uniform(kg, (BATCH, 2, DIM_FEEDBACK), jnp.float32,
                           minval=1e-6, maxval=1.0 - 1e-6)
    gumbel_t = -jnp.log(-jnp.log(u))

    out = forward(params, x, no_bits, gumbel_t)
    out = jax.block_until_ready(out)
    assert out.shape == (BATCH, N_RX, N_TX, N_CARRIER, 2)
    assert out.dtype == jnp.float32
    print("KERNEL_OK")
</pallas_src>

<mosaic_0001>
module attributes {stable_mosaic.version = 11 : i64} {
  func.func @fused_forward_kernel(%arg0: i32, %arg1: memref<32x128xf32, #tpu.memory_space<vmem>>, %arg2: memref<904x128xf32, #tpu.memory_space<vmem>>, %arg3: memref<1x128xf32, #tpu.memory_space<vmem>>) attributes {dimension_semantics = [#tpu.dimension_semantics<arbitrary>], iteration_bounds = array<i64: 1>, scalar_prefetch = 0 : i64, scratch_operands = 0 : i64, tpu.core_type = #tpu.core_type<tc>, window_params = [{pipeline_mode = #tpu.pipeline_mode<synchronous>, transform_indices = @transform_0, window_bounds = array<i64: 32, 128>}, {pipeline_mode = #tpu.pipeline_mode<synchronous>, transform_indices = @transform_1, window_bounds = array<i64: 904, 128>}, {pipeline_mode = #tpu.pipeline_mode<synchronous>, transform_indices = @transform_2, window_bounds = array<i64: 1, 128>}]} {
    %c0 = arith.constant 0 : index
    %c0_0 = arith.constant 0 : index
    %0 = vector.load %arg1[%c0, %c0_0] : memref<32x128xf32, #tpu.memory_space<vmem>>, vector<16x8xf32>
    %c16 = arith.constant 16 : index
    %c0_1 = arith.constant 0 : index
    %1 = vector.load %arg1[%c16, %c0_1] : memref<32x128xf32, #tpu.memory_space<vmem>>, vector<2x32xf32>
    %c24 = arith.constant 24 : index
    %c0_2 = arith.constant 0 : index
    %2 = vector.load %arg1[%c24, %c0_2] : memref<32x128xf32, #tpu.memory_space<vmem>>, vector<2x32xf32>
    %c0_3 = arith.constant 0 : index
    %c0_4 = arith.constant 0 : index
    %3 = vector.load %arg2[%c0_3, %c0_4] : memref<904x128xf32, #tpu.memory_space<vmem>>, vector<8x32xf32>
    %cst = arith.constant dense<0.000000e+00> : vector<16x32xf32>
    %4 = tpu.matmul %0, %3, %cst {dimension_numbers = #tpu.dot_dimension_numbers<[1], [0], [0], [1], [0, 0, 1, 1], [], []>} : vector<16x8xf32>, vector<8x32xf32>, vector<16x32xf32> -> vector<16x32xf32>
    %c8 = arith.constant 8 : index
    %c0_5 = arith.constant 0 : index
    %5 = vector.load %arg2[%c8, %c0_5] : memref<904x128xf32, #tpu.memory_space<vmem>>, vector<1x32xf32>
    %6 = vector.broadcast %5 : vector<1x32xf32> to vector<16x32xf32>
    %7 = arith.addf %4, %6 : vector<16x32xf32>
    %cst_6 = arith.constant 5.000000e-01 : f32
    %8 = vector.broadcast %cst_6 : f32 to vector<16x32xf32>
    %9 = arith.mulf %8, %7 : vector<16x32xf32>
    %cst_7 = arith.constant 0.707106769 : f32
    %10 = vector.broadcast %cst_7 : f32 to vector<16x32xf32>
    %11 = arith.mulf %7, %10 : vector<16x32xf32>
    %cst_8 = arith.constant 0.000000e+00 : f32
    %12 = vector.broadcast %cst_8 : f32 to vector<16x32xf32>
    %13 = arith.cmpf olt, %11, %12 : vector<16x32xf32>
    %cst_9 = arith.constant -1.000000e+00 : f32
    %cst_10 = arith.constant 1.000000e+00 : f32
    %14 = vector.broadcast %cst_9 : f32 to vector<16x32xf32>
    %15 = vector.broadcast %cst_10 : f32 to vector<16x32xf32>
    %16 = arith.select %13, %14, %15 : vector<16x32xi1>, vector<16x32xf32>
    %17 = math.absf %11 : vector<16x32xf32>
    %cst_11 = arith.constant 0.327591091 : f32
    %18 = vector.broadcast %cst_11 : f32 to vector<16x32xf32>
    %19 = arith.mulf %18, %17 : vector<16x32xf32>
    %cst_12 = arith.constant 1.000000e+00 : f32
    %20 = vector.broadcast %cst_12 : f32 to vector<16x32xf32>
    %21 = arith.addf %20, %19 : vector<16x32xf32>
    %22 = tpu.reciprocal %21 : vector<16x32xf32> -> vector<16x32xf32>
    %cst_13 = arith.constant 1.06140542 : f32
    %23 = vector.broadcast %cst_13 : f32 to vector<16x32xf32>
    %24 = arith.mulf %23, %22 : vector<16x32xf32>
    %cst_14 = arith.constant -1.45315206 : f32
    %25 = vector.broadcast %cst_14 : f32 to vector<16x32xf32>
    %26 = arith.addf %24, %25 : vector<16x32xf32>
    %27 = arith.mulf %26, %22 : vector<16x32xf32>
    %cst_15 = arith.constant 1.42141378 : f32
    %28 = vector.broadcast %cst_15 : f32 to vector<16x32xf32>
    %29 = arith.addf %27, %28 : vector<16x32xf32>
    %30 = arith.mulf %29, %22 : vector<16x32xf32>
    %cst_16 = arith.constant -0.284496725 : f32
    %31 = vector.broadcast %cst_16 : f32 to vector<16x32xf32>
    %32 = arith.addf %30, %31 : vector<16x32xf32>
    %33 = arith.mulf %32, %22 : vector<16x32xf32>
    %cst_17 = arith.constant 0.254829586 : f32
    %34 = vector.broadcast %cst_17 : f32 to vector<16x32xf32>
    %35 = arith.addf %33, %34 : vector<16x32xf32>
    %36 = arith.mulf %35, %22 : vector<16x32xf32>
    %cst_18 = arith.constant 0.000000e+00 : f32
    %37 = vector.broadcast %cst_18 : f32 to vector<16x32xf32>
    %38 = arith.subf %37, %17 : vector<16x32xf32>
    %39 = arith.mulf %38, %17 : vector<16x32xf32>
    %40 = math.exp %39 : vector<16x32xf32>
    %41 = arith.mulf %36, %40 : vector<16x32xf32>
    %cst_19 = arith.constant 1.000000e+00 : f32
    %42 = vector.broadcast %cst_19 : f32 to vector<16x32xf32>
    %43 = arith.subf %42, %41 : vector<16x32xf32>
    %44 = arith.mulf %16, %43 : vector<16x32xf32>
    %cst_20 = arith.constant 1.000000e+00 : f32
    %45 = vector.broadcast %cst_20 : f32 to vector<16x32xf32>
    %46 = arith.addf %45, %44 : vector<16x32xf32>
    %47 = arith.mulf %9, %46 : vector<16x32xf32>
    %c16_21 = arith.constant 16 : index
    %c0_22 = arith.constant 0 : index
    %48 = vector.load %arg2[%c16_21, %c0_22] : memref<904x128xf32, #tpu.memory_space<vmem>>, vector<64x32xf32>
    %cst_23 = arith.constant dense<0.000000e+00> : vector<64x2xf32>
    %49 = tpu.matmul %48, %1, %cst_23 {dimension_numbers = #tpu.dot_dimension_numbers<[1], [1], [0], [0], [0, 0, 1, 0], [], []>} : vector<64x32xf32>, vector<2x32xf32>, vector<64x2xf32> -> vector<64x2xf32>
    %c80 = arith.constant 80 : index
    %c0_24 = arith.constant 0 : index
    %50 = vector.load %arg2[%c80, %c0_24] : memref<904x128xf32, #tpu.memory_space<vmem>>, vector<64x1xf32>
    %51 = vector.broadcast %50 : vector<64x1xf32> to vector<64x2xf32>
    %52 = arith.addf %49, %51 : vector<64x2xf32>
    %cst_25 = arith.constant 5.000000e-01 : f32
    %53 = vector.broadcast %cst_25 : f32 to vector<64x2xf32>
    %54 = arith.mulf %53, %52 : vector<64x2xf32>
    %cst_26 = arith.constant 0.707106769 : f32
    %55 = vector.broadcast %cst_26 : f32 to vector<64x2xf32>
    %56 = arith.mulf %52, %55 : vector<64x2xf32>
    %cst_27 = arith.constant 0.000000e+00 : f32
    %57 = vector.broadcast %cst_27 : f32 to vector<64x2xf32>
    %58 = arith.cmpf olt, %56, %57 : vector<64x2xf32>
    %cst_28 = arith.constant -1.000000e+00 : f32
    %cst_29 = arith.constant 1.000000e+00 : f32
    %59 = vector.broadcast %cst_28 : f32 to vector<64x2xf32>
    %60 = vector.broadcast %cst_29 : f32 to vector<64x2xf32>
    %61 = arith.select %58, %59, %60 : vector<64x2xi1>, vector<64x2xf32>
    %62 = math.absf %56 : vector<64x2xf32>
    %cst_30 = arith.constant 0.327591091 : f32
    %63 = vector.broadcast %cst_30 : f32 to vector<64x2xf32>
    %64 = arith.mulf %63, %62 : vector<64x2xf32>
    %cst_31 = arith.constant 1.000000e+00 : f32
    %65 = vector.broadcast %cst_31 : f32 to vector<64x2xf32>
    %66 = arith.addf %65, %64 : vector<64x2xf32>
    %67 = tpu.reciprocal %66 : vector<64x2xf32> -> vector<64x2xf32>
    %cst_32 = arith.constant 1.06140542 : f32
    %68 = vector.broadcast %cst_32 : f32 to vector<64x2xf32>
    %69 = arith.mulf %68, %67 : vector<64x2xf32>
    %cst_33 = arith.constant -1.45315206 : f32
    %70 = vector.broadcast %cst_33 : f32 to vector<64x2xf32>
    %71 = arith.addf %69, %70 : vector<64x2xf32>
    %72 = arith.mulf %71, %67 : vector<64x2xf32>
    %cst_34 = arith.constant 1.42141378 : f32
    %73 = vector.broadcast %cst_34 : f32 to vector<64x2xf32>
    %74 = arith.addf %72, %73 : vector<64x2xf32>
    %75 = arith.mulf %74, %67 : vector<64x2xf32>
    %cst_35 = arith.constant -0.284496725 : f32
    %76 = vector.broadcast %cst_35 : f32 to vector<64x2xf32>
    %77 = arith.addf %75, %76 : vector<64x2xf32>
    %78 = arith.mulf %77, %67 : vector<64x2xf32>
    %cst_36 = arith.constant 0.254829586 : f32
    %79 = vector.broadcast %cst_36 : f32 to vector<64x2xf32>
    %80 = arith.addf %78, %79 : vector<64x2xf32>
    %81 = arith.mulf %80, %67 : vector<64x2xf32>
    %cst_37 = arith.constant 0.000000e+00 : f32
    %82 = vector.broadcast %cst_37 : f32 to vector<64x2xf32>
    %83 = arith.subf %82, %62 : vector<64x2xf32>
    %84 = arith.mulf %83, %62 : vector<64x2xf32>
    %85 = math.exp %84 : vector<64x2xf32>
    %86 = arith.mulf %81, %85 : vector<64x2xf32>
    %cst_38 = arith.constant 1.000000e+00 : f32
    %87 = vector.broadcast %cst_38 : f32 to vector<64x2xf32>
    %88 = arith.subf %87, %86 : vector<64x2xf32>
    %89 = arith.mulf %61, %88 : vector<64x2xf32>
    %cst_39 = arith.constant 1.000000e+00 : f32
    %90 = vector.broadcast %cst_39 : f32 to vector<64x2xf32>
    %91 = arith.addf %90, %89 : vector<64x2xf32>
    %92 = arith.mulf %54, %91 : vector<64x2xf32>
    %c144 = arith.constant 144 : index
    %c0_40 = arith.constant 0 : index
    %93 = vector.load %arg2[%c144, %c0_40] : memref<904x128xf32, #tpu.memory_space<vmem>>, vector<32x64xf32>
    %cst_41 = arith.constant dense<0.000000e+00> : vector<32x2xf32>
    %94 = tpu.matmul %93, %92, %cst_41 {dimension_numbers = #tpu.dot_dimension_numbers<[1], [0], [0], [1], [0, 0, 1, 1], [], []>} : vector<32x64xf32>, vector<64x2xf32>, vector<32x2xf32> -> vector<32x2xf32>
    %c176 = arith.constant 176 : index
    %c0_42 = arith.constant 0 : index
    %95 = vector.load %arg2[%c176, %c0_42] : memref<904x128xf32, #tpu.memory_space<vmem>>, vector<32x1xf32>
    %96 = vector.broadcast %95 : vector<32x1xf32> to vector<32x2xf32>
    %97 = arith.addf %94, %96 : vector<32x2xf32>
    %c208 = arith.constant 208 : index
    %c0_43 = arith.constant 0 : index
    %98 = vector.load %arg2[%c208, %c0_43] : memref<904x128xf32, #tpu.memory_space<vmem>>, vector<32x8xf32>
    %c240 = arith.constant 240 : index
    %c0_44 = arith.constant 0 : index
    %99 = vector.load %arg2[%c240, %c0_44] : memref<904x128xf32, #tpu.memory_space<vmem>>, vector<32x1xf32>
    %c272 = arith.constant 272 : index
    %c0_45 = arith.constant 0 : index
    %100 = vector.load %arg2[%c272, %c0_45] : memref<904x128xf32, #tpu.memory_space<vmem>>, vector<32x32xf32>
    %c304 = arith.constant 304 : index
    %c0_46 = arith.constant 0 : index
    %101 = vector.load %arg2[%c304, %c0_46] : memref<904x128xf32, #tpu.memory_space<vmem>>, vector<1x32xf32>
    %c312 = arith.constant 312 : index
    %c0_47 = arith.constant 0 : index
    %102 = vector.load %arg2[%c312, %c0_47] : memref<904x128xf32, #tpu.memory_space<vmem>>, vector<1x32xf32>
    %103 = vector.extract_strided_slice %47 {offsets = [0, 0], sizes = [8, 32], strides = [1, 1]} : vector<16x32xf32> to vector<8x32xf32>
    %cst_48 = arith.constant dense<0.000000e+00> : vector<32x32xf32>
    %104 = tpu.matmul %98, %103, %cst_48 {dimension_numbers = #tpu.dot_dimension_numbers<[1], [0], [0], [1], [0, 0, 1, 1], [], []>} : vector<32x8xf32>, vector<8x32xf32>, vector<32x32xf32> -> vector<32x32xf32>
    %105 = vector.broadcast %99 : vector<32x1xf32> to vector<32x32xf32>
    %106 = arith.addf %104, %105 : vector<32x32xf32>
    %107 = vector.extract_strided_slice %97 {offsets = [0, 0], sizes = [32, 1], strides = [1, 1]} : vector<32x2xf32> to vector<32x1xf32>
    %108 = vector.broadcast %107 : vector<32x1xf32> to vector<32x32xf32>
    %109 = arith.addf %106, %108 : vector<32x32xf32>
    %cst_49 = arith.constant dense<0.000000e+00> : vector<32x32xf32>
    %110 = tpu.matmul %109, %100, %cst_49 {dimension_numbers = #tpu.dot_dimension_numbers<[1], [0], [0], [1], [0, 0, 1, 1], [], []>} : vector<32x32xf32>, vector<32x32xf32>, vector<32x32xf32> -> vector<32x32xf32>
    %111 = vector.broadcast %101 : vector<1x32xf32> to vector<32x32xf32>
    %112 = arith.addf %110, %111 : vector<32x32xf32>
    %cst_50 = arith.constant 5.000000e-01 : f32
    %113 = vector.broadcast %cst_50 : f32 to vector<32x32xf32>
    %114 = arith.mulf %113, %112 : vector<32x32xf32>
    %cst_51 = arith.constant 0.707106769 : f32
    %115 = vector.broadcast %cst_51 : f32 to vector<32x32xf32>
    %116 = arith.mulf %112, %115 : vector<32x32xf32>
    %cst_52 = arith.constant 0.000000e+00 : f32
    %117 = vector.broadcast %cst_52 : f32 to vector<32x32xf32>
    %118 = arith.cmpf olt, %116, %117 : vector<32x32xf32>
    %cst_53 = arith.constant -1.000000e+00 : f32
    %cst_54 = arith.constant 1.000000e+00 : f32
    %119 = vector.broadcast %cst_53 : f32 to vector<32x32xf32>
    %120 = vector.broadcast %cst_54 : f32 to vector<32x32xf32>
    %121 = arith.select %118, %119, %120 : vector<32x32xi1>, vector<32x32xf32>
    %122 = math.absf %116 : vector<32x32xf32>
    %cst_55 = arith.constant 0.327591091 : f32
    %123 = vector.broadcast %cst_55 : f32 to vector<32x32xf32>
    %124 = arith.mulf %123, %122 : vector<32x32xf32>
    %cst_56 = arith.constant 1.000000e+00 : f32
    %125 = vector.broadcast %cst_56 : f32 to vector<32x32xf32>
    %126 = arith.addf %125, %124 : vector<32x32xf32>
    %127 = tpu.reciprocal %126 : vector<32x32xf32> -> vector<32x32xf32>
    %cst_57 = arith.constant 1.06140542 : f32
    %128 = vector.broadcast %cst_57 : f32 to vector<32x32xf32>
    %129 = arith.mulf %128, %127 : vector<32x32xf32>
    %cst_58 = arith.constant -1.45315206 : f32
    %130 = vector.broadcast %cst_58 : f32 to vector<32x32xf32>
    %131 = arith.addf %129, %130 : vector<32x32xf32>
    %132 = arith.mulf %131, %127 : vector<32x32xf32>
    %cst_59 = arith.constant 1.42141378 : f32
    %133 = vector.broadcast %cst_59 : f32 to vector<32x32xf32>
    %134 = arith.addf %132, %133 : vector<32x32xf32>
    %135 = arith.mulf %134, %127 : vector<32x32xf32>
    %cst_60 = arith.constant -0.284496725 : f32
    %136 = vector.broadcast %cst_60 : f32 to vector<32x32xf32>
    %137 = arith.addf %135, %136 : vector<32x32xf32>
    %138 = arith.mulf %137, %127 : vector<32x32xf32>
    %cst_61 = arith.constant 0.254829586 : f32
    %139 = vector.broadcast %cst_61 : f32 to vector<32x32xf32>
    %140 = arith.addf %138, %139 : vector<32x32xf32>
    %141 = arith.mulf %140, %127 : vector<32x32xf32>
    %cst_62 = arith.constant 0.000000e+00 : f32
    %142 = vector.broadcast %cst_62 : f32 to vector<32x32xf32>
    %143 = arith.subf %142, %122 : vector<32x32xf32>
    %144 = arith.mulf %143, %122 : vector<32x32xf32>
    %145 = math.exp %144 : vector<32x32xf32>
    %146 = arith.mulf %141, %145 : vector<32x32xf32>
    %cst_63 = arith.constant 1.000000e+00 : f32
    %147 = vector.broadcast %cst_63 : f32 to vector<32x32xf32>
    %148 = arith.subf %147, %146 : vector<32x32xf32>
    %149 = arith.mulf %121, %148 : vector<32x32xf32>
    %cst_64 = arith.constant 1.000000e+00 : f32
    %150 = vector.broadcast %cst_64 : f32 to vector<32x32xf32>
    %151 = arith.addf %150, %149 : vector<32x32xf32>
    %152 = arith.mulf %114, %151 : vector<32x32xf32>
    %cst_65 = arith.constant dense<0.000000e+00> : vector<1x32xf32>
    %153 = tpu.matmul %102, %152, %cst_65 {dimension_numbers = #tpu.dot_dimension_numbers<[1], [0], [0], [1], [0, 0, 1, 1], [], []>} : vector<1x32xf32>, vector<32x32xf32>, vector<1x32xf32> -> vector<1x32xf32>
    %154 = vector.extract_strided_slice %47 {offsets = [8, 0], sizes = [8, 32], strides = [1, 1]} : vector<16x32xf32> to vector<8x32xf32>
    %cst_66 = arith.constant dense<0.000000e+00> : vector<32x32xf32>
    %155 = tpu.matmul %98, %154, %cst_66 {dimension_numbers = #tpu.dot_dimension_numbers<[1], [0], [0], [1], [0, 0, 1, 1], [], []>} : vector<32x8xf32>, vector<8x32xf32>, vector<32x32xf32> -> vector<32x32xf32>
    %156 = vector.broadcast %99 : vector<32x1xf32> to vector<32x32xf32>
    %157 = arith.addf %155, %156 : vector<32x32xf32>
    %158 = vector.extract_strided_slice %97 {offsets = [0, 1], sizes = [32, 1], strides = [1, 1]} : vector<32x2xf32> to vector<32x1xf32>
    %159 = vector.broadcast %158 : vector<32x1xf32> to vector<32x32xf32>
    %160 = arith.addf %157, %159 : vector<32x32xf32>
    %cst_67 = arith.constant dense<0.000000e+00> : vector<32x32xf32>
    %161 = tpu.matmul %160, %100, %cst_67 {dimension_numbers = #tpu.dot_dimension_numbers<[1], [0], [0], [1], [0, 0, 1, 1], [], []>} : vector<32x32xf32>, vector<32x32xf32>, vector<32x32xf32> -> vector<32x32xf32>
    %162 = vector.broadcast %101 : vector<1x32xf32> to vector<32x32xf32>
    %163 = arith.addf %161, %162 : vector<32x32xf32>
    %cst_68 = arith.constant 5.000000e-01 : f32
    %164 = vector.broadcast %cst_68 : f32 to vector<32x32xf32>
    %165 = arith.mulf %164, %163 : vector<32x32xf32>
    %cst_69 = arith.constant 0.707106769 : f32
    %166 = vector.broadcast %cst_69 : f32 to vector<32x32xf32>
    %167 = arith.mulf %163, %166 : vector<32x32xf32>
    %cst_70 = arith.constant 0.000000e+00 : f32
    %168 = vector.broadcast %cst_70 : f32 to vector<32x32xf32>
    %169 = arith.cmpf olt, %167, %168 : vector<32x32xf32>
    %cst_71 = arith.constant -1.000000e+00 : f32
    %cst_72 = arith.constant 1.000000e+00 : f32
    %170 = vector.broadcast %cst_71 : f32 to vector<32x32xf32>
    %171 = vector.broadcast %cst_72 : f32 to vector<32x32xf32>
    %172 = arith.select %169, %170, %171 : vector<32x32xi1>, vector<32x32xf32>
    %173 = math.absf %167 : vector<32x32xf32>
    %cst_73 = arith.constant 0.327591091 : f32
    %174 = vector.broadcast %cst_73 : f32 to vector<32x32xf32>
    %175 = arith.mulf %174, %173 : vector<32x32xf32>
    %cst_74 = arith.constant 1.000000e+00 : f32
    %176 = vector.broadcast %cst_74 : f32 to vector<32x32xf32>
    %177 = arith.addf %176, %175 : vector<32x32xf32>
    %178 = tpu.reciprocal %177 : vector<32x32xf32> -> vector<32x32xf32>
    %cst_75 = arith.constant 1.06140542 : f32
    %179 = vector.broadcast %cst_75 : f32 to vector<32x32xf32>
    %180 = arith.mulf %179, %178 : vector<32x32xf32>
    %cst_76 = arith.constant -1.45315206 : f32
    %181 = vector.broadcast %cst_76 : f32 to vector<32x32xf32>
    %182 = arith.addf %180, %181 : vector<32x32xf32>
    %183 = arith.mulf %182, %178 : vector<32x32xf32>
    %cst_77 = arith.constant 1.42141378 : f32
    %184 = vector.broadcast %cst_77 : f32 to vector<32x32xf32>
    %185 = arith.addf %183, %184 : vector<32x32xf32>
    %186 = arith.mulf %185, %178 : vector<32x32xf32>
    %cst_78 = arith.constant -0.284496725 : f32
    %187 = vector.broadcast %cst_78 : f32 to vector<32x32xf32>
    %188 = arith.addf %186, %187 : vector<32x32xf32>
    %189 = arith.mulf %188, %178 : vector<32x32xf32>
    %cst_79 = arith.constant 0.254829586 : f32
    %190 = vector.broadcast %cst_79 : f32 to vector<32x32xf32>
    %191 = arith.addf %189, %190 : vector<32x32xf32>
    %192 = arith.mulf %191, %178 : vector<32x32xf32>
    %cst_80 = arith.constant 0.000000e+00 : f32
    %193 = vector.broadcast %cst_80 : f32 to vector<32x32xf32>
    %194 = arith.subf %193, %173 : vector<32x32xf32>
    %195 = arith.mulf %194, %173 : vector<32x32xf32>
    %196 = math.exp %195 : vector<32x32xf32>
    %197 = arith.mulf %192, %196 : vector<32x32xf32>
    %cst_81 = arith.constant 1.000000e+00 : f32
    %198 = vector.broadcast %cst_81 : f32 to vector<32x32xf32>
    %199 = arith.subf %198, %197 : vector<32x32xf32>
    %200 = arith.mulf %172, %199 : vector<32x32xf32>
    %cst_82 = arith.constant 1.000000e+00 : f32
    %201 = vector.broadcast %cst_82 : f32 to vector<32x32xf32>
    %202 = arith.addf %201, %200 : vector<32x32xf32>
    %203 = arith.mulf %165, %202 : vector<32x32xf32>
    %cst_83 = arith.constant dense<0.000000e+00> : vector<1x32xf32>
    %204 = tpu.matmul %102, %203, %cst_83 {dimension_numbers = #tpu.dot_dimension_numbers<[1], [0], [0], [1], [0, 0, 1, 1], [], []>} : vector<1x32xf32>, vector<32x32xf32>, vector<1x32xf32> -> vector<1x32xf32>
    %205 = tpu.concatenate %153, %204 in 0 : vector<1x32xf32>, vector<1x32xf32> -> vector<2x32xf32>
    %cst_84 = arith.constant 0.000000e+00 : f32
    %206 = vector.broadcast %cst_84 : f32 to vector<2x32xf32>
    %207 = arith.cmpf ogt, %1, %206 : vector<2x32xf32>
    %208 = arith.addf %205, %2 : vector<2x32xf32>
    %cst_85 = arith.constant 0.000000e+00 : f32
    %209 = vector.broadcast %cst_85 : f32 to vector<2x32xf32>
    %210 = arith.cmpf oge, %208, %209 : vector<2x32xf32>
    %cst_86 = arith.constant 1.000000e+00 : f32
    %cst_87 = arith.constant 0.000000e+00 : f32
    %211 = vector.broadcast %cst_86 : f32 to vector<2x32xf32>
    %212 = vector.broadcast %cst_87 : f32 to vector<2x32xf32>
    %213 = arith.select %210, %211, %212 : vector<2x32xi1>, vector<2x32xf32>
    %cst_88 = arith.constant -1.000000e+00 : f32
    %214 = vector.broadcast %cst_88 : f32 to vector<2x32xf32>
    %215 = arith.select %207, %213, %214 : vector<2x32xi1>, vector<2x32xf32>
    %c320 = arith.constant 320 : index
    %c0_89 = arith.constant 0 : index
    %216 = vector.load %arg2[%c320, %c0_89] : memref<904x128xf32, #tpu.memory_space<vmem>>, vector<32x32xf32>
    %cst_90 = arith.constant dense<0.000000e+00> : vector<2x32xf32>
    %217 = tpu.matmul %215, %216, %cst_90 {dimension_numbers = #tpu.dot_dimension_numbers<[1], [0], [0], [1], [0, 0, 1, 1], [], []>} : vector<2x32xf32>, vector<32x32xf32>, vector<2x32xf32> -> vector<2x32xf32>
    %c352 = arith.constant 352 : index
    %c0_91 = arith.constant 0 : index
    %218 = vector.load %arg2[%c352, %c0_91] : memref<904x128xf32, #tpu.memory_space<vmem>>, vector<1x32xf32>
    %219 = vector.broadcast %218 : vector<1x32xf32> to vector<2x32xf32>
    %220 = arith.addf %217, %219 : vector<2x32xf32>
    %cst_92 = arith.constant 5.000000e-01 : f32
    %221 = vector.broadcast %cst_92 : f32 to vector<2x32xf32>
    %222 = arith.mulf %221, %220 : vector<2x32xf32>
    %cst_93 = arith.constant 0.707106769 : f32
    %223 = vector.broadcast %cst_93 : f32 to vector<2x32xf32>
    %224 = arith.mulf %220, %223 : vector<2x32xf32>
    %cst_94 = arith.constant 0.000000e+00 : f32
    %225 = vector.broadcast %cst_94 : f32 to vector<2x32xf32>
    %226 = arith.cmpf olt, %224, %225 : vector<2x32xf32>
    %cst_95 = arith.constant -1.000000e+00 : f32
    %cst_96 = arith.constant 1.000000e+00 : f32
    %227 = vector.broadcast %cst_95 : f32 to vector<2x32xf32>
    %228 = vector.broadcast %cst_96 : f32 to vector<2x32xf32>
    %229 = arith.select %226, %227, %228 : vector<2x32xi1>, vector<2x32xf32>
    %230 = math.absf %224 : vector<2x32xf32>
    %cst_97 = arith.constant 0.327591091 : f32
    %231 = vector.broadcast %cst_97 : f32 to vector<2x32xf32>
    %232 = arith.mulf %231, %230 : vector<2x32xf32>
    %cst_98 = arith.constant 1.000000e+00 : f32
    %233 = vector.broadcast %cst_98 : f32 to vector<2x32xf32>
    %234 = arith.addf %233, %232 : vector<2x32xf32>
    %235 = tpu.reciprocal %234 : vector<2x32xf32> -> vector<2x32xf32>
    %cst_99 = arith.constant 1.06140542 : f32
    %236 = vector.broadcast %cst_99 : f32 to vector<2x32xf32>
    %237 = arith.mulf %236, %235 : vector<2x32xf32>
    %cst_100 = arith.constant -1.45315206 : f32
    %238 = vector.broadcast %cst_100 : f32 to vector<2x32xf32>
    %239 = arith.addf %237, %238 : vector<2x32xf32>
    %240 = arith.mulf %239, %235 : vector<2x32xf32>
    %cst_101 = arith.constant 1.42141378 : f32
    %241 = vector.broadcast %cst_101 : f32 to vector<2x32xf32>
    %242 = arith.addf %240, %241 : vector<2x32xf32>
    %243 = arith.mulf %242, %235 : vector<2x32xf32>
    %cst_102 = arith.constant -0.284496725 : f32
    %244 = vector.broadcast %cst_102 : f32 to vector<2x32xf32>
    %245 = arith.addf %243, %244 : vector<2x32xf32>
    %246 = arith.mulf %245, %235 : vector<2x32xf32>
    %cst_103 = arith.constant 0.254829586 : f32
    %247 = vector.broadcast %cst_103 : f32 to vector<2x32xf32>
    %248 = arith.addf %246, %247 : vector<2x32xf32>
    %249 = arith.mulf %248, %235 : vector<2x32xf32>
    %cst_104 = arith.constant 0.000000e+00 : f32
    %250 = vector.broadcast %cst_104 : f32 to vector<2x32xf32>
    %251 = arith.subf %250, %230 : vector<2x32xf32>
    %252 = arith.mulf %251, %230 : vector<2x32xf32>
    %253 = math.exp %252 : vector<2x32xf32>
    %254 = arith.mulf %249, %253 : vector<2x32xf32>
    %cst_105 = arith.constant 1.000000e+00 : f32
    %255 = vector.broadcast %cst_105 : f32 to vector<2x32xf32>
    %256 = arith.subf %255, %254 : vector<2x32xf32>
    %257 = arith.mulf %229, %256 : vector<2x32xf32>
    %cst_106 = arith.constant 1.000000e+00 : f32
    %258 = vector.broadcast %cst_106 : f32 to vector<2x32xf32>
    %259 = arith.addf %258, %257 : vector<2x32xf32>
    %260 = arith.mulf %222, %259 : vector<2x32xf32>
    %c360 = arith.constant 360 : index
    %c0_107 = arith.constant 0 : index
    %261 = vector.load %arg2[%c360, %c0_107] : memref<904x128xf32, #tpu.memory_space<vmem>>, vector<32x32xf32>
    %cst_108 = arith.constant dense<0.000000e+00> : vector<2x32xf32>
    %262 = tpu.matmul %260, %261, %cst_108 {dimension_numbers = #tpu.dot_dimension_numbers<[1], [0], [0], [1], [0, 0, 1, 1], [], []>} : vector<2x32xf32>, vector<32x32xf32>, vector<2x32xf32> -> vector<2x32xf32>
    %c392 = arith.constant 392 : index
    %c0_109 = arith.constant 0 : index
    %263 = vector.load %arg2[%c392, %c0_109] : memref<904x128xf32, #tpu.memory_space<vmem>>, vector<1x32xf32>
    %264 = vector.broadcast %263 : vector<1x32xf32> to vector<2x32xf32>
    %265 = arith.addf %262, %264 : vector<2x32xf32>
    %c400 = arith.constant 400 : index
    %c0_110 = arith.constant 0 : index
    %266 = vector.load %arg2[%c400, %c0_110] : memref<904x128xf32, #tpu.memory_space<vmem>>, vector<16x2xf32>
    %cst_111 = arith.constant dense<0.000000e+00> : vector<16x32xf32>
    %267 = tpu.matmul %266, %265, %cst_111 {dimension_numbers = #tpu.dot_dimension_numbers<[1], [0], [0], [1], [0, 0, 1, 1], [], []>} : vector<16x2xf32>, vector<2x32xf32>, vector<16x32xf32> -> vector<16x32xf32>
    %c416 = arith.constant 416 : index
    %c0_112 = arith.constant 0 : index
    %268 = vector.load %arg2[%c416, %c0_112] : memref<904x128xf32, #tpu.memory_space<vmem>>, vector<16x32xf32>
    %269 = arith.addf %267, %268 : vector<16x32xf32>
    %c432 = arith.constant 432 : index
    %c0_113 = arith.constant 0 : index
    %270 = vector.load %arg2[%c432, %c0_113] : memref<904x128xf32, #tpu.memory_space<vmem>>, vector<16x16xf32>
    %c448 = arith.constant 448 : index
    %c0_114 = arith.constant 0 : index
    %271 = vector.load %arg2[%c448, %c0_114] : memref<904x128xf32, #tpu.memory_space<vmem>>, vector<32x96xf32>
    %c480 = arith.constant 480 : index
    %c0_115 = arith.constant 0 : index
    %272 = vector.load %arg2[%c480, %c0_115] : memref<904x128xf32, #tpu.memory_space<vmem>>, vector<1x96xf32>
    %c488 = arith.constant 488 : index
    %c0_116 = arith.constant 0 : index
    %273 = vector.load %arg2[%c488, %c0_116] : memref<904x128xf32, #tpu.memory_space<vmem>>, vector<32x32xf32>
    %c520 = arith.constant 520 : index
    %c0_117 = arith.constant 0 : index
    %274 = vector.load %arg2[%c520, %c0_117] : memref<904x128xf32, #tpu.memory_space<vmem>>, vector<1x32xf32>
    %c528 = arith.constant 528 : index
    %c0_118 = arith.constant 0 : index
    %275 = vector.load %arg2[%c528, %c0_118] : memref<904x128xf32, #tpu.memory_space<vmem>>, vector<32x64xf32>
    %c560 = arith.constant 560 : index
    %c0_119 = arith.constant 0 : index
    %276 = vector.load %arg2[%c560, %c0_119] : memref<904x128xf32, #tpu.memory_space<vmem>>, vector<1x64xf32>
    %c568 = arith.constant 568 : index
    %c0_120 = arith.constant 0 : index
    %277 = vector.load %arg2[%c568, %c0_120] : memref<904x128xf32, #tpu.memory_space<vmem>>, vector<64x32xf32>
    %c632 = arith.constant 632 : index
    %c0_121 = arith.constant 0 : index
    %278 = vector.load %arg2[%c632, %c0_121] : memref<904x128xf32, #tpu.memory_space<vmem>>, vector<1x32xf32>
    %c640 = arith.constant 640 : index
    %c0_122 = arith.constant 0 : index
    %279 = vector.load %arg2[%c640, %c0_122] : memref<904x128xf32, #tpu.memory_space<vmem>>, vector<4x32xf32>
    %280 = vector.extract_strided_slice %279 {offsets = [0, 0], sizes = [1, 32], strides = [1, 1]} : vector<4x32xf32> to vector<1x32xf32>
    %281 = vector.extract_strided_slice %279 {offsets = [1, 0], sizes = [1, 32], strides = [1, 1]} : vector<4x32xf32> to vector<1x32xf32>
    %282 = vector.extract_strided_slice %279 {offsets = [2, 0], sizes = [1, 32], strides = [1, 1]} : vector<4x32xf32> to vector<1x32xf32>
    %283 = vector.extract_strided_slice %279 {offsets = [3, 0], sizes = [1, 32], strides = [1, 1]} : vector<4x32xf32> to vector<1x32xf32>
    %cst_123 = arith.constant dense<0.000000e+00> : vector<16x96xf32>
    %284 = tpu.matmul %269, %271, %cst_123 {dimension_numbers = #tpu.dot_dimension_numbers<[1], [0], [0], [1], [0, 0, 1, 1], [], []>} : vector<16x32xf32>, vector<32x96xf32>, vector<16x96xf32> -> vector<16x96xf32>
    %285 = vector.broadcast %272 : vector<1x96xf32> to vector<16x96xf32>
    %286 = arith.addf %284, %285 : vector<16x96xf32>
    %287 = vector.extract_strided_slice %286 {offsets = [0, 0], sizes = [16, 16], strides = [1, 1]} : vector<16x96xf32> to vector<16x16xf32>
    %288 = vector.extract_strided_slice %286 {offsets = [0, 32], sizes = [16, 16], strides = [1, 1]} : vector<16x96xf32> to vector<16x16xf32>
    %289 = vector.extract_strided_slice %286 {offsets = [0, 64], sizes = [16, 16], strides = [1, 1]} : vector<16x96xf32> to vector<16x16xf32>
    %cst_124 = arith.constant dense<0.000000e+00> : vector<16x16xf32>
    %290 = tpu.matmul %287, %288, %cst_124 {dimension_numbers = #tpu.dot_dimension_numbers<[1], [1], [0], [0], [0, 0, 1, 0], [], []>} : vector<16x16xf32>, vector<16x16xf32>, vector<16x16xf32> -> vector<16x16xf32>
    %cst_125 = arith.constant 2.500000e-01 : f32
    %291 = vector.broadcast %cst_125 : f32 to vector<16x16xf32>
    %292 = arith.mulf %290, %291 : vector<16x16xf32>
    %293 = arith.addf %292, %270 : vector<16x16xf32>
    %cst_126 = arith.constant dense<0xFF800000> : vector<16xf32>
    %294 = vector.multi_reduction <maximumf>, %293, %cst_126 [1] : vector<16x16xf32> to vector<16xf32>
    %295 = vector.shape_cast %294 : vector<16xf32> to vector<16x1xf32>
    %296 = vector.broadcast %295 : vector<16x1xf32> to vector<16x16xf32>
    %297 = arith.subf %293, %296 : vector<16x16xf32>
    %298 = math.exp %297 : vector<16x16xf32>
    %cst_127 = arith.constant dense<0.000000e+00> : vector<16xf32>
    %299 = vector.multi_reduction <add>, %298, %cst_127 [1] : vector<16x16xf32> to vector<16xf32>
    %300 = vector.shape_cast %299 : vector<16xf32> to vector<16x1xf32>
    %301 = tpu.reciprocal %300 {approx = true} : vector<16x1xf32> -> vector<16x1xf32>
    %302 = vector.broadcast %301 : vector<16x1xf32> to vector<16x16xf32>
    %303 = arith.mulf %298, %302 : vector<16x16xf32>
    %cst_128 = arith.constant dense<0.000000e+00> : vector<16x16xf32>
    %304 = tpu.matmul %303, %289, %cst_128 {dimension_numbers = #tpu.dot_dimension_numbers<[1], [0], [0], [1], [0, 0, 1, 1], [], []>} : vector<16x16xf32>, vector<16x16xf32>, vector<16x16xf32> -> vector<16x16xf32>
    %305 = vector.extract_strided_slice %273 {offsets = [0, 0], sizes = [16, 32], strides = [1, 1]} : vector<32x32xf32> to vector<16x32xf32>
    %cst_129 = arith.constant dense<0.000000e+00> : vector<16x32xf32>
    %306 = tpu.matmul %304, %305, %cst_129 {dimension_numbers = #tpu.dot_dimension_numbers<[1], [0], [0], [1], [0, 0, 1, 1], [], []>} : vector<16x16xf32>, vector<16x32xf32>, vector<16x32xf32> -> vector<16x32xf32>
    %307 = vector.extract_strided_slice %286 {offsets = [0, 16], sizes = [16, 16], strides = [1, 1]} : vector<16x96xf32> to vector<16x16xf32>
    %308 = vector.extract_strided_slice %286 {offsets = [0, 48], sizes = [16, 16], strides = [1, 1]} : vector<16x96xf32> to vector<16x16xf32>
    %309 = vector.extract_strided_slice %286 {offsets = [0, 80], sizes = [16, 16], strides = [1, 1]} : vector<16x96xf32> to vector<16x16xf32>
    %cst_130 = arith.constant dense<0.000000e+00> : vector<16x16xf32>
    %310 = tpu.matmul %307, %308, %cst_130 {dimension_numbers = #tpu.dot_dimension_numbers<[1], [1], [0], [0], [0, 0, 1, 0], [], []>} : vector<16x16xf32>, vector<16x16xf32>, vector<16x16xf32> -> vector<16x16xf32>
    %cst_131 = arith.constant 2.500000e-01 : f32
    %311 = vector.broadcast %cst_131 : f32 to vector<16x16xf32>
    %312 = arith.mulf %310, %311 : vector<16x16xf32>
    %313 = arith.addf %312, %270 : vector<16x16xf32>
    %cst_132 = arith.constant dense<0xFF800000> : vector<16xf32>
    %314 = vector.multi_reduction <maximumf>, %313, %cst_132 [1] : vector<16x16xf32> to vector<16xf32>
    %315 = vector.shape_cast %314 : vector<16xf32> to vector<16x1xf32>
    %316 = vector.broadcast %315 : vector<16x1xf32> to vector<16x16xf32>
    %317 = arith.subf %313, %316 : vector<16x16xf32>
    %318 = math.exp %317 : vector<16x16xf32>
    %cst_133 = arith.constant dense<0.000000e+00> : vector<16xf32>
    %319 = vector.multi_reduction <add>, %318, %cst_133 [1] : vector<16x16xf32> to vector<16xf32>
    %320 = vector.shape_cast %319 : vector<16xf32> to vector<16x1xf32>
    %321 = tpu.reciprocal %320 {approx = true} : vector<16x1xf32> -> vector<16x1xf32>
    %322 = vector.broadcast %321 : vector<16x1xf32> to vector<16x16xf32>
    %323 = arith.mulf %318, %322 : vector<16x16xf32>
    %cst_134 = arith.constant dense<0.000000e+00> : vector<16x16xf32>
    %324 = tpu.matmul %323, %309, %cst_134 {dimension_numbers = #tpu.dot_dimension_numbers<[1], [0], [0], [1], [0, 0, 1, 1], [], []>} : vector<16x16xf32>, vector<16x16xf32>, vector<16x16xf32> -> vector<16x16xf32>
    %325 = vector.extract_strided_slice %273 {offsets = [16, 0], sizes = [16, 32], strides = [1, 1]} : vector<32x32xf32> to vector<16x32xf32>
    %cst_135 = arith.constant dense<0.000000e+00> : vector<16x32xf32>
    %326 = tpu.matmul %324, %325, %cst_135 {dimension_numbers = #tpu.dot_dimension_numbers<[1], [0], [0], [1], [0, 0, 1, 1], [], []>} : vector<16x16xf32>, vector<16x32xf32>, vector<16x32xf32> -> vector<16x32xf32>
    %327 = arith.addf %306, %326 : vector<16x32xf32>
    %328 = vector.broadcast %274 : vector<1x32xf32> to vector<16x32xf32>
    %329 = arith.addf %327, %328 : vector<16x32xf32>
    %330 = arith.addf %269, %329 : vector<16x32xf32>
    %cst_136 = arith.constant dense<0.000000e+00> : vector<16xf32>
    %331 = vector.multi_reduction <add>, %330, %cst_136 [1] : vector<16x32xf32> to vector<16xf32>
    %332 = vector.shape_cast %331 : vector<16xf32> to vector<16x1xf32>
    %cst_137 = arith.constant 3.200000e+01 : f32
    %333 = vector.broadcast %cst_137 : f32 to vector<16x1xf32>
    %334 = arith.divf %332, %333 : vector<16x1xf32>
    %335 = vector.broadcast %334 : vector<16x1xf32> to vector<16x32xf32>
    %336 = arith.subf %330, %335 : vector<16x32xf32>
    %337 = arith.mulf %336, %336 : vector<16x32xf32>
    %cst_138 = arith.constant dense<0.000000e+00> : vector<16xf32>
    %338 = vector.multi_reduction <add>, %337, %cst_138 [1] : vector<16x32xf32> to vector<16xf32>
    %339 = vector.shape_cast %338 : vector<16xf32> to vector<16x1xf32>
    %cst_139 = arith.constant 3.200000e+01 : f32
    %340 = vector.broadcast %cst_139 : f32 to vector<16x1xf32>
    %341 = arith.divf %339, %340 : vector<16x1xf32>
    %cst_140 = arith.constant 9.99999974E-6 : f32
    %342 = vector.broadcast %cst_140 : f32 to vector<16x1xf32>
    %343 = arith.addf %341, %342 : vector<16x1xf32>
    %344 = math.rsqrt %343 : vector<16x1xf32>
    %345 = vector.broadcast %344 : vector<16x1xf32> to vector<16x32xf32>
    %346 = arith.mulf %336, %345 : vector<16x32xf32>
    %347 = vector.broadcast %280 : vector<1x32xf32> to vector<16x32xf32>
    %348 = arith.mulf %346, %347 : vector<16x32xf32>
    %349 = vector.broadcast %281 : vector<1x32xf32> to vector<16x32xf32>
    %350 = arith.addf %348, %349 : vector<16x32xf32>
    %cst_141 = arith.constant dense<0.000000e+00> : vector<16x64xf32>
    %351 = tpu.matmul %350, %275, %cst_141 {dimension_numbers = #tpu.dot_dimension_numbers<[1], [0], [0], [1], [0, 0, 1, 1], [], []>} : vector<16x32xf32>, vector<32x64xf32>, vector<16x64xf32> -> vector<16x64xf32>
    %352 = vector.broadcast %276 : vector<1x64xf32> to vector<16x64xf32>
    %353 = arith.addf %351, %352 : vector<16x64xf32>
    %cst_142 = arith.constant 5.000000e-01 : f32
    %354 = vector.broadcast %cst_142 : f32 to vector<16x64xf32>
    %355 = arith.mulf %354, %353 : vector<16x64xf32>
    %cst_143 = arith.constant 0.707106769 : f32
    %356 = vector.broadcast %cst_143 : f32 to vector<16x64xf32>
    %357 = arith.mulf %353, %356 : vector<16x64xf32>
    %cst_144 = arith.constant 0.000000e+00 : f32
    %358 = vector.broadcast %cst_144 : f32 to vector<16x64xf32>
    %359 = arith.cmpf olt, %357, %358 : vector<16x64xf32>
    %cst_145 = arith.constant -1.000000e+00 : f32
    %cst_146 = arith.constant 1.000000e+00 : f32
    %360 = vector.broadcast %cst_145 : f32 to vector<16x64xf32>
    %361 = vector.broadcast %cst_146 : f32 to vector<16x64xf32>
    %362 = arith.select %359, %360, %361 : vector<16x64xi1>, vector<16x64xf32>
    %363 = math.absf %357 : vector<16x64xf32>
    %cst_147 = arith.constant 0.327591091 : f32
    %364 = vector.broadcast %cst_147 : f32 to vector<16x64xf32>
    %365 = arith.mulf %364, %363 : vector<16x64xf32>
    %cst_148 = arith.constant 1.000000e+00 : f32
    %366 = vector.broadcast %cst_148 : f32 to vector<16x64xf32>
    %367 = arith.addf %366, %365 : vector<16x64xf32>
    %368 = tpu.reciprocal %367 : vector<16x64xf32> -> vector<16x64xf32>
    %cst_149 = arith.constant 1.06140542 : f32
    %369 = vector.broadcast %cst_149 : f32 to vector<16x64xf32>
    %370 = arith.mulf %369, %368 : vector<16x64xf32>
    %cst_150 = arith.constant -1.45315206 : f32
    %371 = vector.broadcast %cst_150 : f32 to vector<16x64xf32>
    %372 = arith.addf %370, %371 : vector<16x64xf32>
    %373 = arith.mulf %372, %368 : vector<16x64xf32>
    %cst_151 = arith.constant 1.42141378 : f32
    %374 = vector.broadcast %cst_151 : f32 to vector<16x64xf32>
    %375 = arith.addf %373, %374 : vector<16x64xf32>
    %376 = arith.mulf %375, %368 : vector<16x64xf32>
    %cst_152 = arith.constant -0.284496725 : f32
    %377 = vector.broadcast %cst_152 : f32 to vector<16x64xf32>
    %378 = arith.addf %376, %377 : vector<16x64xf32>
    %379 = arith.mulf %378, %368 : vector<16x64xf32>
    %cst_153 = arith.constant 0.254829586 : f32
    %380 = vector.broadcast %cst_153 : f32 to vector<16x64xf32>
    %381 = arith.addf %379, %380 : vector<16x64xf32>
    %382 = arith.mulf %381, %368 : vector<16x64xf32>
    %cst_154 = arith.constant 0.000000e+00 : f32
    %383 = vector.broadcast %cst_154 : f32 to vector<16x64xf32>
    %384 = arith.subf %383, %363 : vector<16x64xf32>
    %385 = arith.mulf %384, %363 : vector<16x64xf32>
    %386 = math.exp %385 : vector<16x64xf32>
    %387 = arith.mulf %382, %386 : vector<16x64xf32>
    %cst_155 = arith.constant 1.000000e+00 : f32
    %388 = vector.broadcast %cst_155 : f32 to vector<16x64xf32>
    %389 = arith.subf %388, %387 : vector<16x64xf32>
    %390 = arith.mulf %362, %389 : vector<16x64xf32>
    %cst_156 = arith.constant 1.000000e+00 : f32
    %391 = vector.broadcast %cst_156 : f32 to vector<16x64xf32>
    %392 = arith.addf %391, %390 : vector<16x64xf32>
    %393 = arith.mulf %355, %392 : vector<16x64xf32>
    %cst_157 = arith.constant dense<0.000000e+00> : vector<16x32xf32>
    %394 = tpu.matmul %393, %277, %cst_157 {dimension_numbers = #tpu.dot_dimension_numbers<[1], [0], [0], [1], [0, 0, 1, 1], [], []>} : vector<16x64xf32>, vector<64x32xf32>, vector<16x32xf32> -> vector<16x32xf32>
    %395 = vector.broadcast %278 : vector<1x32xf32> to vector<16x32xf32>
    %396 = arith.addf %394, %395 : vector<16x32xf32>
    %397 = arith.addf %350, %396 : vector<16x32xf32>
    %cst_158 = arith.constant dense<0.000000e+00> : vector<16xf32>
    %398 = vector.multi_reduction <add>, %397, %cst_158 [1] : vector<16x32xf32> to vector<16xf32>
    %399 = vector.shape_cast %398 : vector<16xf32> to vector<16x1xf32>
    %cst_159 = arith.constant 3.200000e+01 : f32
    %400 = vector.broadcast %cst_159 : f32 to vector<16x1xf32>
    %401 = arith.divf %399, %400 : vector<16x1xf32>
    %402 = vector.broadcast %401 : vector<16x1xf32> to vector<16x32xf32>
    %403 = arith.subf %397, %402 : vector<16x32xf32>
    %404 = arith.mulf %403, %403 : vector<16x32xf32>
    %cst_160 = arith.constant dense<0.000000e+00> : vector<16xf32>
    %405 = vector.multi_reduction <add>, %404, %cst_160 [1] : vector<16x32xf32> to vector<16xf32>
    %406 = vector.shape_cast %405 : vector<16xf32> to vector<16x1xf32>
    %cst_161 = arith.constant 3.200000e+01 : f32
    %407 = vector.broadcast %cst_161 : f32 to vector<16x1xf32>
    %408 = arith.divf %406, %407 : vector<16x1xf32>
    %cst_162 = arith.constant 9.99999974E-6 : f32
    %409 = vector.broadcast %cst_162 : f32 to vector<16x1xf32>
    %410 = arith.addf %408, %409 : vector<16x1xf32>
    %411 = math.rsqrt %410 : vector<16x1xf32>
    %412 = vector.broadcast %411 : vector<16x1xf32> to vector<16x32xf32>
    %413 = arith.mulf %403, %412 : vector<16x32xf32>
    %414 = vector.broadcast %282 : vector<1x32xf32> to vector<16x32xf32>
    %415 = arith.mulf %413, %414 : vector<16x32xf32>
    %416 = vector.broadcast %283 : vector<1x32xf32> to vector<16x32xf32>
    %417 = arith.addf %415, %416 : vector<16x32xf32>
    %c648 = arith.constant 648 : index
    %c0_163 = arith.constant 0 : index
    %418 = vector.load %arg2[%c648, %c0_163] : memref<904x128xf32, #tpu.memory_space<vmem>>, vector<32x96xf32>
    %c680 = arith.constant 680 : index
    %c0_164 = arith.constant 0 : index
    %419 = vector.load %arg2[%c680, %c0_164] : memref<904x128xf32, #tpu.memory_space<vmem>>, vector<1x96xf32>
    %c688 = arith.constant 688 : index
    %c0_165 = arith.constant 0 : index
    %420 = vector.load %arg2[%c688, %c0_165] : memref<904x128xf32, #tpu.memory_space<vmem>>, vector<32x32xf32>
    %c720 = arith.constant 720 : index
    %c0_166 = arith.constant 0 : index
    %421 = vector.load %arg2[%c720, %c0_166] : memref<904x128xf32, #tpu.memory_space<vmem>>, vector<1x32xf32>
    %c728 = arith.constant 728 : index
    %c0_167 = arith.constant 0 : index
    %422 = vector.load %arg2[%c728, %c0_167] : memref<904x128xf32, #tpu.memory_space<vmem>>, vector<32x64xf32>
    %c760 = arith.constant 760 : index
    %c0_168 = arith.constant 0 : index
    %423 = vector.load %arg2[%c760, %c0_168] : memref<904x128xf32, #tpu.memory_space<vmem>>, vector<1x64xf32>
    %c768 = arith.constant 768 : index
    %c0_169 = arith.constant 0 : index
    %424 = vector.load %arg2[%c768, %c0_169] : memref<904x128xf32, #tpu.memory_space<vmem>>, vector<64x32xf32>
    %c832 = arith.constant 832 : index
    %c0_170 = arith.constant 0 : index
    %425 = vector.load %arg2[%c832, %c0_170] : memref<904x128xf32, #tpu.memory_space<vmem>>, vector<1x32xf32>
    %c840 = arith.constant 840 : index
    %c0_171 = arith.constant 0 : index
    %426 = vector.load %arg2[%c840, %c0_171] : memref<904x128xf32, #tpu.memory_space<vmem>>, vector<4x32xf32>
    %427 = vector.extract_strided_slice %426 {offsets = [0, 0], sizes = [1, 32], strides = [1, 1]} : vector<4x32xf32> to vector<1x32xf32>
    %428 = vector.extract_strided_slice %426 {offsets = [1, 0], sizes = [1, 32], strides = [1, 1]} : vector<4x32xf32> to vector<1x32xf32>
    %429 = vector.extract_strided_slice %426 {offsets = [2, 0], sizes = [1, 32], strides = [1, 1]} : vector<4x32xf32> to vector<1x32xf32>
    %430 = vector.extract_strided_slice %426 {offsets = [3, 0], sizes = [1, 32], strides = [1, 1]} : vector<4x32xf32> to vector<1x32xf32>
    %cst_172 = arith.constant dense<0.000000e+00> : vector<16x96xf32>
    %431 = tpu.matmul %417, %418, %cst_172 {dimension_numbers = #tpu.dot_dimension_numbers<[1], [0], [0], [1], [0, 0, 1, 1], [], []>} : vector<16x32xf32>, vector<32x96xf32>, vector<16x96xf32> -> vector<16x96xf32>
    %432 = vector.broadcast %419 : vector<1x96xf32> to vector<16x96xf32>
    %433 = arith.addf %431, %432 : vector<16x96xf32>
    %434 = vector.extract_strided_slice %433 {offsets = [0, 0], sizes = [16, 16], strides = [1, 1]} : vector<16x96xf32> to vector<16x16xf32>
    %435 = vector.extract_strided_slice %433 {offsets = [0, 32], sizes = [16, 16], strides = [1, 1]} : vector<16x96xf32> to vector<16x16xf32>
    %436 = vector.extract_strided_slice %433 {offsets = [0, 64], sizes = [16, 16], strides = [1, 1]} : vector<16x96xf32> to vector<16x16xf32>
    %cst_173 = arith.constant dense<0.000000e+00> : vector<16x16xf32>
    %437 = tpu.matmul %434, %435, %cst_173 {dimension_numbers = #tpu.dot_dimension_numbers<[1], [1], [0], [0], [0, 0, 1, 0], [], []>} : vector<16x16xf32>, vector<16x16xf32>, vector<16x16xf32> -> vector<16x16xf32>
    %cst_174 = arith.constant 2.500000e-01 : f32
    %438 = vector.broadcast %cst_174 : f32 to vector<16x16xf32>
    %439 = arith.mulf %437, %438 : vector<16x16xf32>
    %440 = arith.addf %439, %270 : vector<16x16xf32>
    %cst_175 = arith.constant dense<0xFF800000> : vector<16xf32>
    %441 = vector.multi_reduction <maximumf>, %440, %cst_175 [1] : vector<16x16xf32> to vector<16xf32>
    %442 = vector.shape_cast %441 : vector<16xf32> to vector<16x1xf32>
    %443 = vector.broadcast %442 : vector<16x1xf32> to vector<16x16xf32>
    %444 = arith.subf %440, %443 : vector<16x16xf32>
    %445 = math.exp %444 : vector<16x16xf32>
    %cst_176 = arith.constant dense<0.000000e+00> : vector<16xf32>
    %446 = vector.multi_reduction <add>, %445, %cst_176 [1] : vector<16x16xf32> to vector<16xf32>
    %447 = vector.shape_cast %446 : vector<16xf32> to vector<16x1xf32>
    %448 = tpu.reciprocal %447 {approx = true} : vector<16x1xf32> -> vector<16x1xf32>
    %449 = vector.broadcast %448 : vector<16x1xf32> to vector<16x16xf32>
    %450 = arith.mulf %445, %449 : vector<16x16xf32>
    %cst_177 = arith.constant dense<0.000000e+00> : vector<16x16xf32>
    %451 = tpu.matmul %450, %436, %cst_177 {dimension_numbers = #tpu.dot_dimension_numbers<[1], [0], [0], [1], [0, 0, 1, 1], [], []>} : vector<16x16xf32>, vector<16x16xf32>, vector<16x16xf32> -> vector<16x16xf32>
    %452 = vector.extract_strided_slice %420 {offsets = [0, 0], sizes = [16, 32], strides = [1, 1]} : vector<32x32xf32> to vector<16x32xf32>
    %cst_178 = arith.constant dense<0.000000e+00> : vector<16x32xf32>
    %453 = tpu.matmul %451, %452, %cst_178 {dimension_numbers = #tpu.dot_dimension_numbers<[1], [0], [0], [1], [0, 0, 1, 1], [], []>} : vector<16x16xf32>, vector<16x32xf32>, vector<16x32xf32> -> vector<16x32xf32>
    %454 = vector.extract_strided_slice %433 {offsets = [0, 16], sizes = [16, 16], strides = [1, 1]} : vector<16x96xf32> to vector<16x16xf32>
    %455 = vector.extract_strided_slice %433 {offsets = [0, 48], sizes = [16, 16], strides = [1, 1]} : vector<16x96xf32> to vector<16x16xf32>
    %456 = vector.extract_strided_slice %433 {offsets = [0, 80], sizes = [16, 16], strides = [1, 1]} : vector<16x96xf32> to vector<16x16xf32>
    %cst_179 = arith.constant dense<0.000000e+00> : vector<16x16xf32>
    %457 = tpu.matmul %454, %455, %cst_179 {dimension_numbers = #tpu.dot_dimension_numbers<[1], [1], [0], [0], [0, 0, 1, 0], [], []>} : vector<16x16xf32>, vector<16x16xf32>, vector<16x16xf32> -> vector<16x16xf32>
    %cst_180 = arith.constant 2.500000e-01 : f32
    %458 = vector.broadcast %cst_180 : f32 to vector<16x16xf32>
    %459 = arith.mulf %457, %458 : vector<16x16xf32>
    %460 = arith.addf %459, %270 : vector<16x16xf32>
    %cst_181 = arith.constant dense<0xFF800000> : vector<16xf32>
    %461 = vector.multi_reduction <maximumf>, %460, %cst_181 [1] : vector<16x16xf32> to vector<16xf32>
    %462 = vector.shape_cast %461 : vector<16xf32> to vector<16x1xf32>
    %463 = vector.broadcast %462 : vector<16x1xf32> to vector<16x16xf32>
    %464 = arith.subf %460, %463 : vector<16x16xf32>
    %465 = math.exp %464 : vector<16x16xf32>
    %cst_182 = arith.constant dense<0.000000e+00> : vector<16xf32>
    %466 = vector.multi_reduction <add>, %465, %cst_182 [1] : vector<16x16xf32> to vector<16xf32>
    %467 = vector.shape_cast %466 : vector<16xf32> to vector<16x1xf32>
    %468 = tpu.reciprocal %467 {approx = true} : vector<16x1xf32> -> vector<16x1xf32>
    %469 = vector.broadcast %468 : vector<16x1xf32> to vector<16x16xf32>
    %470 = arith.mulf %465, %469 : vector<16x16xf32>
    %cst_183 = arith.constant dense<0.000000e+00> : vector<16x16xf32>
    %471 = tpu.matmul %470, %456, %cst_183 {dimension_numbers = #tpu.dot_dimension_numbers<[1], [0], [0], [1], [0, 0, 1, 1], [], []>} : vector<16x16xf32>, vector<16x16xf32>, vector<16x16xf32> -> vector<16x16xf32>
    %472 = vector.extract_strided_slice %420 {offsets = [16, 0], sizes = [16, 32], strides = [1, 1]} : vector<32x32xf32> to vector<16x32xf32>
    %cst_184 = arith.constant dense<0.000000e+00> : vector<16x32xf32>
    %473 = tpu.matmul %471, %472, %cst_184 {dimension_numbers = #tpu.dot_dimension_numbers<[1], [0], [0], [1], [0, 0, 1, 1], [], []>} : vector<16x16xf32>, vector<16x32xf32>, vector<16x32xf32> -> vector<16x32xf32>
    %474 = arith.addf %453, %473 : vector<16x32xf32>
    %475 = vector.broadcast %421 : vector<1x32xf32> to vector<16x32xf32>
    %476 = arith.addf %474, %475 : vector<16x32xf32>
    %477 = arith.addf %417, %476 : vector<16x32xf32>
    %cst_185 = arith.constant dense<0.000000e+00> : vector<16xf32>
    %478 = vector.multi_reduction <add>, %477, %cst_185 [1] : vector<16x32xf32> to vector<16xf32>
    %479 = vector.shape_cast %478 : vector<16xf32> to vector<16x1xf32>
    %cst_186 = arith.constant 3.200000e+01 : f32
    %480 = vector.broadcast %cst_186 : f32 to vector<16x1xf32>
    %481 = arith.divf %479, %480 : vector<16x1xf32>
    %482 = vector.broadcast %481 : vector<16x1xf32> to vector<16x32xf32>
    %483 = arith.subf %477, %482 : vector<16x32xf32>
    %484 = arith.mulf %483, %483 : vector<16x32xf32>
    %cst_187 = arith.constant dense<0.000000e+00> : vector<16xf32>
    %485 = vector.multi_reduction <add>, %484, %cst_187 [1] : vector<16x32xf32> to vector<16xf32>
    %486 = vector.shape_cast %485 : vector<16xf32> to vector<16x1xf32>
    %cst_188 = arith.constant 3.200000e+01 : f32
    %487 = vector.broadcast %cst_188 : f32 to vector<16x1xf32>
    %488 = arith.divf %486, %487 : vector<16x1xf32>
    %cst_189 = arith.constant 9.99999974E-6 : f32
    %489 = vector.broadcast %cst_189 : f32 to vector<16x1xf32>
    %490 = arith.addf %488, %489 : vector<16x1xf32>
    %491 = math.rsqrt %490 : vector<16x1xf32>
    %492 = vector.broadcast %491 : vector<16x1xf32> to vector<16x32xf32>
    %493 = arith.mulf %483, %492 : vector<16x32xf32>
    %494 = vector.broadcast %427 : vector<1x32xf32> to vector<16x32xf32>
    %495 = arith.mulf %493, %494 : vector<16x32xf32>
    %496 = vector.broadcast %428 : vector<1x32xf32> to vector<16x32xf32>
    %497 = arith.addf %495, %496 : vector<16x32xf32>
    %cst_190 = arith.constant dense<0.000000e+00> : vector<16x64xf32>
    %498 = tpu.matmul %497, %422, %cst_190 {dimension_numbers = #tpu.dot_dimension_numbers<[1], [0], [0], [1], [0, 0, 1, 1], [], []>} : vector<16x32xf32>, vector<32x64xf32>, vector<16x64xf32> -> vector<16x64xf32>
    %499 = vector.broadcast %423 : vector<1x64xf32> to vector<16x64xf32>
    %500 = arith.addf %498, %499 : vector<16x64xf32>
    %cst_191 = arith.constant 5.000000e-01 : f32
    %501 = vector.broadcast %cst_191 : f32 to vector<16x64xf32>
    %502 = arith.mulf %501, %500 : vector<16x64xf32>
    %cst_192 = arith.constant 0.707106769 : f32
    %503 = vector.broadcast %cst_192 : f32 to vector<16x64xf32>
    %504 = arith.mulf %500, %503 : vector<16x64xf32>
    %cst_193 = arith.constant 0.000000e+00 : f32
    %505 = vector.broadcast %cst_193 : f32 to vector<16x64xf32>
    %506 = arith.cmpf olt, %504, %505 : vector<16x64xf32>
    %cst_194 = arith.constant -1.000000e+00 : f32
    %cst_195 = arith.constant 1.000000e+00 : f32
    %507 = vector.broadcast %cst_194 : f32 to vector<16x64xf32>
    %508 = vector.broadcast %cst_195 : f32 to vector<16x64xf32>
    %509 = arith.select %506, %507, %508 : vector<16x64xi1>, vector<16x64xf32>
    %510 = math.absf %504 : vector<16x64xf32>
    %cst_196 = arith.constant 0.327591091 : f32
    %511 = vector.broadcast %cst_196 : f32 to vector<16x64xf32>
    %512 = arith.mulf %511, %510 : vector<16x64xf32>
    %cst_197 = arith.constant 1.000000e+00 : f32
    %513 = vector.broadcast %cst_197 : f32 to vector<16x64xf32>
    %514 = arith.addf %513, %512 : vector<16x64xf32>
    %515 = tpu.reciprocal %514 : vector<16x64xf32> -> vector<16x64xf32>
    %cst_198 = arith.constant 1.06140542 : f32
    %516 = vector.broadcast %cst_198 : f32 to vector<16x64xf32>
    %517 = arith.mulf %516, %515 : vector<16x64xf32>
    %cst_199 = arith.constant -1.45315206 : f32
    %518 = vector.broadcast %cst_199 : f32 to vector<16x64xf32>
    %519 = arith.addf %517, %518 : vector<16x64xf32>
    %520 = arith.mulf %519, %515 : vector<16x64xf32>
    %cst_200 = arith.constant 1.42141378 : f32
    %521 = vector.broadcast %cst_200 : f32 to vector<16x64xf32>
    %522 = arith.addf %520, %521 : vector<16x64xf32>
    %523 = arith.mulf %522, %515 : vector<16x64xf32>
    %cst_201 = arith.constant -0.284496725 : f32
    %524 = vector.broadcast %cst_201 : f32 to vector<16x64xf32>
    %525 = arith.addf %523, %524 : vector<16x64xf32>
    %526 = arith.mulf %525, %515 : vector<16x64xf32>
    %cst_202 = arith.constant 0.254829586 : f32
    %527 = vector.broadcast %cst_202 : f32 to vector<16x64xf32>
    %528 = arith.addf %526, %527 : vector<16x64xf32>
    %529 = arith.mulf %528, %515 : vector<16x64xf32>
    %cst_203 = arith.constant 0.000000e+00 : f32
    %530 = vector.broadcast %cst_203 : f32 to vector<16x64xf32>
    %531 = arith.subf %530, %510 : vector<16x64xf32>
    %532 = arith.mulf %531, %510 : vector<16x64xf32>
    %533 = math.exp %532 : vector<16x64xf32>
    %534 = arith.mulf %529, %533 : vector<16x64xf32>
    %cst_204 = arith.constant 1.000000e+00 : f32
    %535 = vector.broadcast %cst_204 : f32 to vector<16x64xf32>
    %536 = arith.subf %535, %534 : vector<16x64xf32>
    %537 = arith.mulf %509, %536 : vector<16x64xf32>
    %cst_205 = arith.constant 1.000000e+00 : f32
    %538 = vector.broadcast %cst_205 : f32 to vector<16x64xf32>
    %539 = arith.addf %538, %537 : vector<16x64xf32>
    %540 = arith.mulf %502, %539 : vector<16x64xf32>
    %cst_206 = arith.constant dense<0.000000e+00> : vector<16x32xf32>
    %541 = tpu.matmul %540, %424, %cst_206 {dimension_numbers = #tpu.dot_dimension_numbers<[1], [0], [0], [1], [0, 0, 1, 1], [], []>} : vector<16x64xf32>, vector<64x32xf32>, vector<16x32xf32> -> vector<16x32xf32>
    %542 = vector.broadcast %425 : vector<1x32xf32> to vector<16x32xf32>
    %543 = arith.addf %541, %542 : vector<16x32xf32>
    %544 = arith.addf %497, %543 : vector<16x32xf32>
    %cst_207 = arith.constant dense<0.000000e+00> : vector<16xf32>
    %545 = vector.multi_reduction <add>, %544, %cst_207 [1] : vector<16x32xf32> to vector<16xf32>
    %546 = vector.shape_cast %545 : vector<16xf32> to vector<16x1xf32>
    %cst_208 = arith.constant 3.200000e+01 : f32
    %547 = vector.broadcast %cst_208 : f32 to vector<16x1xf32>
    %548 = arith.divf %546, %547 : vector<16x1xf32>
    %549 = vector.broadcast %548 : vector<16x1xf32> to vector<16x32xf32>
    %550 = arith.subf %544, %549 : vector<16x32xf32>
    %551 = arith.mulf %550, %550 : vector<16x32xf32>
    %cst_209 = arith.constant dense<0.000000e+00> : vector<16xf32>
    %552 = vector.multi_reduction <add>, %551, %cst_209 [1] : vector<16x32xf32> to vector<16xf32>
    %553 = vector.shape_cast %552 : vector<16xf32> to vector<16x1xf32>
    %cst_210 = arith.constant 3.200000e+01 : f32
    %554 = vector.broadcast %cst_210 : f32 to vector<16x1xf32>
    %555 = arith.divf %553, %554 : vector<16x1xf32>
    %cst_211 = arith.constant 9.99999974E-6 : f32
    %556 = vector.broadcast %cst_211 : f32 to vector<16x1xf32>
    %557 = arith.addf %555, %556 : vector<16x1xf32>
    %558 = math.rsqrt %557 : vector<16x1xf32>
    %559 = vector.broadcast %558 : vector<16x1xf32> to vector<16x32xf32>
    %560 = arith.mulf %550, %559 : vector<16x32xf32>
    %561 = vector.broadcast %429 : vector<1x32xf32> to vector<16x32xf32>
    %562 = arith.mulf %560, %561 : vector<16x32xf32>
    %563 = vector.broadcast %430 : vector<1x32xf32> to vector<16x32xf32>
    %564 = arith.addf %562, %563 : vector<16x32xf32>
    %c848 = arith.constant 848 : index
    %c0_212 = arith.constant 0 : index
    %565 = vector.load %arg2[%c848, %c0_212] : memref<904x128xf32, #tpu.memory_space<vmem>>, vector<32x128xf32>
    %cst_213 = arith.constant dense<0.000000e+00> : vector<16x128xf32>
    %566 = tpu.matmul %564, %565, %cst_213 {dimension_numbers = #tpu.dot_dimension_numbers<[1], [0], [0], [1], [0, 0, 1, 1], [], []>} : vector<16x32xf32>, vector<32x128xf32>, vector<16x128xf32> -> vector<16x128xf32>
    %c880 = arith.constant 880 : index
    %c0_214 = arith.constant 0 : index
    %567 = vector.load %arg2[%c880, %c0_214] : memref<904x128xf32, #tpu.memory_space<vmem>>, vector<16x128xf32>
    %568 = arith.mulf %566, %567 : vector<16x128xf32>
    %cst_215 = arith.constant dense<0.000000e+00> : vector<128xf32>
    %569 = vector.multi_reduction <add>, %568, %cst_215 [0] : vector<16x128xf32> to vector<128xf32>
    %570 = vector.shape_cast %569 : vector<128xf32> to vector<1x128xf32>
    %c896 = arith.constant 896 : index
    %c0_216 = arith.constant 0 : index
    %571 = vector.load %arg2[%c896, %c0_216] : memref<904x128xf32, #tpu.memory_space<vmem>>, vector<1x128xf32>
    %572 = arith.addf %570, %571 : vector<1x128xf32>
    %c0_217 = arith.constant 0 : index
    %c0_218 = arith.constant 0 : index
    %573 = vector.load %arg3[%c0_217, %c0_218] : memref<1x128xf32, #tpu.memory_space<vmem>>, vector<1x128xf32>
    tpu.vector_store %arg3[%c0_217, %c0_218], %572 {strides = array<i32>} : memref<1x128xf32, #tpu.memory_space<vmem>>, vector<1x128xf32>,
    return
  }
  func.func @transform_0(%arg0: i32) -> (i32, i32) {
    %c0_i32 = arith.constant 0 : i32
    %c0_i32_0 = arith.constant 0 : i32
    %c0_i32_1 = arith.constant 0 : i32
    return %c0_i32, %c0_i32_0 : i32, i32
  }
  func.func @transform_1(%arg0: i32) -> (i32, i32) {
    %c0_i32 = arith.constant 0 : i32
    %c0_i32_0 = arith.constant 0 : i32
    %c0_i32_1 = arith.constant 0 : i32
    return %c0_i32, %c0_i32_0 : i32, i32
  }
  func.func @transform_2(%arg0: i32) -> (i32, i32) {
    %c0_i32 = arith.constant 0 : i32
    %c0_i32_0 = arith.constant 0 : i32
    %c0_i32_1 = arith.constant 0 : i32
    return %c0_i32, %c0_i32_0 : i32, i32
  }
}

</mosaic_0001>

<bundles_post_ra>
// kernel: _forward.1
= control target key start
LH: loop header
LB: loop body
LE: loop exit
PB: predicated region body
PF: predicated region fallthrough
CT: control target
= control target key end

     0   :  { %7 = vsyncpa [#allocation3], 0  ;;  %s4630_s9 = smov [#allocation2]   ;;  %s5285_s0 = inlined_call_operand.vmem [shape: f32[32,128], index: 0, kind: input, shape index: {}]   ;;  %s5286_s1 = inlined_call_operand.hbm [shape: f32[904,128], index: 1, kind: input, shape index: {}]   ;;  %s5287_s2 = inlined_call_operand.vmem [shape: f32[1,128], index: 2, kind: output, shape index: {}]  }
   0x1   :  { %s15_s10 = sshll.u32 %s4630_s9, 4  ;;  %s16_s10 = int_to_ptr.vmem [resolvable:$true] %s15_s10 }
   0x2   :  { %s4616_s11 = scalar_lea.vmem %s16_s10, 14464  ;;  %p4621_p1 = scmp.lt.s32.totalorder %s16_s10, %s16_s10 }
   0x3   :  { %p4617_p0 = scmp.ne.s32.totalorder %s16_s10, %s4616_s11  ;;  %p4622_p2 = scmp.lt.s32.totalorder %s4616_s11, %s4616_s11 }
   0x5   :  { %p4623_p3 = por %p4622_p2, %p4621_p1 }
   0x7   :  { %p4624_p4 = pnand %p4623_p3, %p4617_p0 }
   0x9   :  { %4627 = shalt.err (!%p4624_p4)
}
   0xa   :  { %s4631_s12 = smov 128   ;;  %s4632_s13 = smov 8  }
   0xb   :  { %21 = dma.hbm_to_vmem [thread:$0]  %s5286_s1, 14464, %s16_s10, [#allocation3], %s4631_s12, %s4631_s12, %s4632_s13  }
   0xc   :  { %4628 = dma.done.wait [#allocation3], 14464  }
   0xd   :  { %4629 = vsyncadd [#allocation3], 4294952832  ;;  %v4633_v0 = vmov 0   ;;  %vm225_vm0 = vcmask 261120   ;;  %vm35_vm1 = vcmask 64512   ;;  %v29_v1 = vld [vmem:[#allocation2] sm:$0xff] }
   0xe   :  { %4462 = vset.pattern.permute.xlu0 %v4633_v0  ;;  %4463 = vset.pattern.permute.xlu1 %v4633_v0  ;;  %v27_v2 = vld [vmem:[%s5285_s0 + $0x10] sm:$0x3]  ;;  %v25_v3 = vld [vmem:[%s5285_s0] sm:$0xff]  ;;  %v26_v4 = vld [vmem:[%s5285_s0 + $0x8] sm:$0xff]  ;;  %vm594_vm2 = vcmask 523264   ;;  %vm4637_vm12 = vmmov 0  }
   0xf   :  { %4138 = vmatprep.subr.mxu0 %v29_v1  ;;  %4143 = vmatprep.subr.msk.mxu1 %vm225_vm0, %v27_v2  ;;  %v169_v5 = vld [vmem:[#allocation2 + $0x10] sm:$0xff]  ;;  %v170_v6 = vld [vmem:[#allocation2 + $0x18] sm:$0xff]  ;;  %v171_v7 = vld [vmem:[#allocation2 + $0x20] sm:$0xff]  ;;  %s4639_s25 = smov 80   ;;  %s4640_s26 = smov 112  }
  0x10   :  { %4139 = vmatpush3.msra.mxu0 %v29_v1  ;;  %4140 = vmatprep.mubr.msk.f32.mxu0 %vm35_vm1, %v25_v3  ;;  %v184_v8 = vld [vmem:[#allocation2 + $0x88] sm:$0xff]  ;;  %v182_v9 = vld [vmem:[#allocation2 + $0x78] sm:$0xff]  ;;  %v183_v10 = vld [vmem:[#allocation2 + $0x80] sm:$0xff]  ;;  %s4641_s27 = smov 64   ;;  %s4642_s28 = smov 48  }
  0x11   :  { %4144 = vmatpush3.xpose.msk.msra.mxu1 %vm225_vm0, %v27_v2  ;;  %4141 = vmatmul.mubr.msk.f32.vlgmr.msra.gmra.mxu0 %vm35_vm1, %v26_v4  ;;  %v181_v11 = vld [vmem:[#allocation2 + $0x70] sm:$0xff]  ;;  %v172_v12 = vld [vmem:[#allocation2 + $0x28] sm:$0xff]  ;;  %v179_v15 = vld [vmem:[#allocation2 + $0x60] sm:$0xff] }
  0x12   :  { %4145 = vmatprep.mubr.msk.f32.mxu1 %vm225_vm0, %v169_v5  ;;  %222 = vperm.xlu0 %4462, %v184_v8   ;;  %v173_v13 = vld [vmem:[#allocation2 + $0x30] sm:$0xff]  ;;  %v180_v14 = vld [vmem:[#allocation2 + $0x68] sm:$0xff]  ;;  %v174_v16 = vld [vmem:[#allocation2 + $0x38] sm:$0xff] }
  0x13   :  { %212 = vperm.xlu1 %4463, %v182_v9   ;;  %v175_v17 = vld [vmem:[#allocation2 + $0x40] sm:$0xff]  ;;  %v178_v18 = vld [vmem:[#allocation2 + $0x58] sm:$0xff]  ;;  %v177_v19 = vld [vmem:[#allocation2 + $0x50] sm:$0xff] }
  0x14   :  { %4146 = vmatmul.mubr.msk.f32.vlgmr.msra.gmra.mxu1 %vm225_vm0, %v170_v6  ;;  %v176_v20 = vld [vmem:[#allocation2 + $0x48] sm:$0xff]  ;;  %v570_v21 = vld [vmem:[#allocation2 + $0xb0] sm:$0xff]  ;;  %v571_v22 = vld [vmem:[#allocation2 + $0xb8] sm:$0xff] }
  0x15   :  { %4148 = vmatprep.mubr.msk.f32.mxu1 %vm225_vm0, %v171_v7  ;;  %v572_v23 = vld [vmem:[#allocation2 + $0xc0] sm:$0xff]  ;;  %v573_v24 = vld [vmem:[#allocation2 + $0xc8] sm:$0xff]  ;;  %v696_v25 = vld [vmem:[#allocation2 + $0xf0] sm:$0xff] }
  0x16   :  { %217 = vperm.xlu0 %4462, %v183_v10   ;;  %v697_v26 = vld [vmem:[#allocation2 + $0xf8] sm:$0xff]  ;;  %v698_v27 = vld [vmem:[#allocation2 + $0x100] sm:$0xff]  ;;  %v699_v28 = vld [vmem:[#allocation2 + $0x108] sm:$0xff] }
  0x17   :  { %207 = vperm.xlu1 %4463, %v181_v11   ;;  %v692_v29 = vld [vmem:[#allocation2 + $0xd0] sm:$0xff]  ;;  %v3871_v38 = vld [vmem:[#allocation2 + $0x8] ss:$0 sm:$0xff] }
  0x18   :  { %4149 = vmatmul.mubr.msk.f32.gmra.mxu1 %vm225_vm0, %v172_v12  ;;  %v566_v30 = vld [vmem:[#allocation2 + $0x90] sm:$0xff] }
  0x19   :  { %4151 = vmatprep.mubr.msk.f32.mxu1 %vm225_vm0, %v173_v13  ;;  %4173 = vmatprep.mubr.msk.f32.mxu0 %vm594_vm2, %v566_v30 }
  0x1a   :  { %202 = vperm.xlu0 %4462, %v180_v14  }
  0x1b   :  { %197 = vperm.xlu1 %4463, %v179_v15  }
  0x1c   :  { %4152 = vmatmul.mubr.msk.f32.gmra.mxu1 %vm225_vm0, %v174_v16 }
  0x1d   :  { %4154 = vmatprep.mubr.msk.f32.mxu1 %vm225_vm0, %v175_v17 }
  0x1e   :  { %192 = vperm.xlu0 %4462, %v178_v18  }
  0x1f   :  { %187 = vperm.xlu1 %4463, %v177_v19  }
  0x20   :  { %4155 = vmatmul.mubr.msk.f32.gmra.mxu1 %vm225_vm0, %v176_v20 }
  0x21   :  { %4181 = vmatprep.mubr.msk.f32.mxu1 %vm35_vm1, %v692_v29 }
  0x22   :  { %576 = vperm.xlu0 %4462, %v570_v21  }
  0x23   :  { %581 = vperm.xlu1 %4463, %v571_v22  }
  0x26   :  { %586 = vperm.xlu0 %4462, %v572_v23  }
  0x27   :  { %591 = vperm.xlu1 %4463, %v573_v24  }
  0x2a   :  { %708 = vperm.xlu0 %4462, %v696_v25  }
  0x2b   :  { %713 = vperm.xlu1 %4463, %v697_v26  }
  0x2e   :  { %718 = vperm.xlu0 %4462, %v698_v27  }
  0x2f   :  { %723 = vperm.xlu1 %4463, %v699_v28  }
  0x8d   :  { %v223_v31 = vpop.permute.xlu0 %222 }
  0x8e   :  { %v213_v32 = vpop.permute.xlu1 %212 }
  0x91   :  { %v4684_v33 = vpop.permute.xlu0 %217 }
  0x92   :  { %v208_v34 = vpop.permute.xlu1 %207 }
  0x95   :  { %v203_v35 = vpop.permute.xlu0 %202 }
  0x96   :  { %v198_v36 = vpop.permute.xlu1 %197 }
  0x99   :  { %v193_v41 = vpop.permute.xlu0 %192 }
  0x9a   :  { %v188_v45 = vpop.permute.xlu1 %187 }
  0xd1   :  { %v4142_v37 = vpop.f32.mrf.mxu0 }
  0xd2   :  { %v4686_v39 = vadd.f32 %v4142_v37, %v3871_v38 }
  0xd3   :  { %v108_v40 = vpop.f32.mrf.mxu0 }
  0xd4   :  { %v4688_v42 = vadd.f32 %v3871_v38, %v108_v40  ;;  %v4147_v43 = vpop.f32.mrf.mxu1 }
  0xd5   :  { %v4690_v44 = vadd.f32 %v4147_v43, %v193_v41 }
  0xd6   :  { %v4693_v46 = vmul.f32 0.70710677, %v4688_v42  ;;  %v319_v47 = vpop.f32.mrf.mxu1 }
  0xd7   :  { %v4696_v48 = vmul.f32 0.70710677, %v4690_v44  ;;  %v4698_v49 = vadd.f32 %v319_v47, %v188_v45  ;;  %v4767_v45 = vmul.f32 0.5, %v4688_v42 }
  0xd8   :  { %v125_v50 = vand.u32 2147483647, %v4693_v46  ;;  %v4150_v51 = vpop.f32.mrf.mxu1  ;;  %vm121_vm3 = vcmp.lt.f32.partialorder %v4693_v46, 0.0  ;;  %v4634_v46 = vmov 1.0  }
  0xd9   :  { %v4702_v52 = vand.u32 2147483647, %v4696_v48  ;;  %v4705_v55 = vmul.f32 0.70710677, %v4698_v49  ;;  %v4711_v59 = vadd.f32 %v4150_v51, %v203_v35  ;;  %vm375_vm10 = vcmp.lt.f32.partialorder %v4696_v48, 0.0 }
  0xda   :  { %v127_v53 = vmul.f32 0.3275911, %v125_v50  ;;  %v329_v54 = vpop.f32.mrf.mxu1  ;;  %v151_v8 = vsub.f32 0.0, %v125_v50 }
  0xdb   :  { %v399_v57 = vmul.f32 0.3275911, %v4702_v52  ;;  %v4709_v58 = vand.u32 2147483647, %v4705_v55  ;;  %v4715_v62 = vmul.f32 0.70710677, %v4711_v59  ;;  %v4717_v63 = vadd.f32 %v329_v54, %v198_v36 }
  0xdc   :  { %v129_v56 = vadd.f32 1.0, %v127_v53  ;;  %v4153_v60 = vpop.f32.mrf.mxu1  ;;  %v153_v16 = vmul.f32 %v151_v8, %v125_v50  ;;  %v4772_v53 = vsel %vm121_vm3, -1.0, %v4634_v46  ;;  %vm374_vm11 = vcmp.lt.f32.partialorder %v4705_v55, 0.0 }
  0xdd   :  { %v398_v61 = vmul.f32 0.3275911, %v4709_v58  ;;  %v407_v0 = vadd.f32 1.0, %v399_v57  ;;  %v4719_v1 = vadd.f32 %v4153_v60, %v213_v32  ;;  %v393_v2 = vand.u32 2147483647, %v4715_v62 }
  0xde   :  { %4466 = vrcp.f32 %v129_v56  ;;  %v339_v3 = vpop.f32.mrf.mxu1  ;;  %v4723_v5 = vmul.f32 0.70710677, %v4717_v63  ;;  %v155_v25 = vmul.f32 1.442695, %v153_v16  ;;  %v494_v38 = vsub.f32 0.0, %v4709_v58 }
  0xdf   :  { %v406_v4 = vadd.f32 1.0, %v398_v61  ;;  %v401_v6 = vmul.f32 0.3275911, %v393_v2  ;;  %v4726_v7 = vmul.f32 0.70710677, %v4719_v1  ;;  %4468 = vrcp.f32 %v407_v0 }
  0xe0   :  { %v392_v9 = vand.u32 2147483647, %v4723_v5  ;;  %v4729_v10 = vadd.f32 %v339_v3, %v208_v34  ;;  %v4156_v12 = vpop.f32.mrf.mxu1  ;;  %v497_v36 = vsub.f32 0.0, %v393_v2  ;;  %v502_v42 = vmul.f32 %v494_v38, %v4709_v58 }
  0xe1   :  { %v409_v11 = vadd.f32 1.0, %v401_v6  ;;  %4470 = vrcp.f32 %v406_v4  ;;  %v4732_v14 = vand.u32 2147483647, %v4726_v7  ;;  %v4741_v20 = vadd.f32 %v4156_v12, %v223_v31 }
  0xe2   :  { %v400_v13 = vmul.f32 0.3275911, %v392_v9  ;;  %v4735_v15 = vmul.f32 0.70710677, %v4729_v10  ;;  %v349_v21 = vpop.f32.mrf.mxu1  ;;  %v496_v47 = vsub.f32 0.0, %v392_v9  ;;  %v505_v60 = vmul.f32 %v497_v36, %v393_v2 }
  0xe3   :  { %4472 = vrcp.f32 %v409_v11  ;;  %v403_v18 = vmul.f32 0.3275911, %v4732_v14  ;;  %v4747_v26 = vmul.f32 0.70710677, %v4741_v20  ;;  %v4750_v27 = vadd.f32 %v349_v21, %v4684_v33 }
  0xe4   :  { %v408_v17 = vadd.f32 1.0, %v400_v13  ;;  %v4739_v19 = vand.u32 2147483647, %v4735_v15  ;;  %v495_v33 = vsub.f32 0.0, %v4702_v52  ;;  %v499_v3 = vsub.f32 0.0, %v4732_v14 }
  0xe5   :  { %v411_v22 = vadd.f32 1.0, %v403_v18  ;;  %v397_v30 = vand.u32 2147483647, %v4747_v26  ;;  %v4755_v31 = vmul.f32 0.70710677, %v4750_v27  ;;  %v504_v11 = vmul.f32 %v496_v47, %v392_v9 }
  0xe6   :  { %4474 = vrcp.f32 %v408_v17  ;;  %v402_v24 = vmul.f32 0.3275911, %v4739_v19  ;;  %v503_v57 = vmul.f32 %v495_v33, %v4702_v52  ;;  %v498_v12 = vsub.f32 0.0, %v4739_v19 }
  0xe7   :  { %4476 = vrcp.f32 %v411_v22  ;;  %v405_v32 = vmul.f32 0.3275911, %v397_v30  ;;  %v396_v37 = vand.u32 2147483647, %v4755_v31  ;;  %v516_v58 = vmul.f32 1.442695, %v505_v60 }
  0xe8   :  { %v410_v28 = vadd.f32 1.0, %v402_v24  ;;  %v4785_v17 = vmul.f32 1.442695, %v503_v57  ;;  %v501_v18 = vsub.f32 0.0, %v397_v30  ;;  %v507_v24 = vmul.f32 %v499_v3, %v4732_v14 }
  0xe9   :  { %v413_v40 = vadd.f32 1.0, %v405_v32  ;;  %v404_v50 = vmul.f32 0.3275911, %v396_v37  ;;  %v514_v32 = vmul.f32 1.442695, %v504_v11  ;;  %v500_v38 = vsub.f32 0.0, %v396_v37 }
  0xea   :  { %4478 = vrcp.f32 %v410_v28  ;;  %v520_v60 = vmul.f32 1.442695, %v507_v24  ;;  %vm381_vm4 = vcmp.lt.f32.partialorder %v4747_v26, 0.0  ;;  %vm379_vm5 = vcmp.lt.f32.partialorder %v4726_v7, 0.0 }
  0xeb   :  { %v4743_v23 = vpop.eup %4466  ;;  %4480 = vpow2.f32 %v155_v25  ;;  %v412_v61 = vadd.f32 1.0, %v404_v50  ;;  %v509_v50 = vmul.f32 %v501_v18, %v397_v30  ;;  %vm378_vm6 = vcmp.lt.f32.partialorder %v4735_v15, 0.0 }
  0xec   :  { %v133_v29 = vmul.f32 1.0614054, %v4743_v23  ;;  %v4757_v35 = vpop.eup %4468  ;;  %4482 = vrcp.f32 %v413_v40  ;;  %v389_v26 = vsel %vm381_vm4, -1.0, %v4634_v46  ;;  %vm380_vm7 = vcmp.lt.f32.partialorder %v4755_v31, 0.0 }
  0xed   :  { %v423_v56 = vmul.f32 1.0614054, %v4757_v35  ;;  %4484 = vrcp.f32 %v412_v61  ;;  %vm377_vm8 = vcmp.lt.f32.partialorder %v4715_v62, 0.0  ;;  %vm376_vm9 = vcmp.lt.f32.partialorder %v4723_v5, 0.0 }
  0xee   :  { %v135_v34 = vadd.f32 -1.4531521, %v133_v29  ;;  %v4764_v43 = vpop.eup %4470  ;;  %v4792_v29 = vmul.f32 1.442695, %v502_v42  ;;  %4486 = vpow2.f32 %v516_v58  ;;  %v364_v15 = vmul.f32 0.5, %v4750_v27 }
  0xef   :  { %v422_v6 = vmul.f32 1.0614054, %v4764_v43  ;;  %v431_v16 = vadd.f32 -1.4531521, %v423_v56  ;;  %4488 = vpow2.f32 %v514_v32  ;;  %v384_v31 = vsel %vm376_vm9, -1.0, %v4634_v46 }
  0xf0   :  { %v137_v41 = vmul.f32 %v4743_v23, %v135_v34  ;;  %v4769_v51 = vpop.eup %4472  ;;  %v506_v34 = vmul.f32 %v498_v12, %v4739_v19  ;;  %4490 = vpow2.f32 %v520_v60  ;;  %v383_v27 = vsel %vm375_vm10, -1.0, %v4634_v46 }
  0xf1   :  { %v425_v0 = vmul.f32 1.0614054, %v4769_v51  ;;  %v430_v28 = vadd.f32 -1.4531521, %v422_v6  ;;  %v439_v47 = vmul.f32 %v4757_v35, %v431_v16  ;;  %v508_v6 = vmul.f32 %v500_v38, %v396_v37 }
  0xf2   :  { %v139_v54 = vadd.f32 1.4214138, %v137_v41  ;;  %v382_v5 = vsel %vm374_vm11, -1.0, %v4634_v46 }
  0xf3   :  { %v4781_v8 = vpop.eup %4474  ;;  %v433_v13 = vadd.f32 -1.4531521, %v425_v0  ;;  %v438_v61 = vmul.f32 %v4764_v43, %v430_v28  ;;  %v518_v0 = vmul.f32 1.442695, %v506_v34  ;;  %v447_v12 = vadd.f32 1.4214138, %v439_v47 }
  0xf4   :  { %v141_v4 = vmul.f32 %v4743_v23, %v139_v54  ;;  %v424_v2 = vmul.f32 1.0614054, %v4781_v8  ;;  %v4788_v22 = vpop.eup %4476 }
  0xf5   :  { %v441_v21 = vmul.f32 %v4769_v51, %v433_v13  ;;  %v427_v33 = vmul.f32 1.0614054, %v4788_v22  ;;  %v524_v13 = vmul.f32 1.442695, %v509_v50  ;;  %v446_v18 = vadd.f32 1.4214138, %v438_v61 }
  0xf6   :  { %v143_v52 = vadd.f32 -0.28449672, %v141_v4  ;;  %v432_v25 = vadd.f32 -1.4531521, %v424_v2  ;;  %4492 = vpow2.f32 %v518_v0  ;;  %v455_v34 = vmul.f32 %v4757_v35, %v447_v12  ;;  %v4821_v0 = vld [vmem:[#allocation2 + $0xd8] sm:$0xff] }
  0xf7   :  { %v4796_v36 = vpop.eup %4478  ;;  %v435_v54 = vadd.f32 -1.4531521, %v427_v33  ;;  %v449_v57 = vadd.f32 1.4214138, %v441_v21  ;;  %4494 = vpow2.f32 %v524_v13  ;;  %v454_v50 = vmul.f32 %v4764_v43, %v446_v18 }
  0xf8   :  { %v145_v9 = vmul.f32 %v4743_v23, %v143_v52  ;;  %v440_v41 = vmul.f32 %v4781_v8, %v432_v25  ;;  %v4481_v14 = vpop.eup %4480  ;;  %v426_v56 = vmul.f32 1.0614054, %v4796_v36  ;;  %v522_v25 = vmul.f32 1.442695, %v508_v6 }
  0xf9   :  { %v443_v42 = vmul.f32 %v4788_v22, %v435_v54  ;;  %v4804_v30 = vpop.eup %4482  ;;  %v457_v16 = vmul.f32 %v4769_v51, %v449_v57  ;;  %v463_v61 = vadd.f32 -0.28449672, %v455_v34 }
  0xfa   :  { %v147_v40 = vadd.f32 0.2548296, %v145_v9  ;;  %v434_v3 = vadd.f32 -1.4531521, %v426_v56  ;;  %v448_v4 = vadd.f32 1.4214138, %v440_v41  ;;  %v4811_v9 = vpop.eup %4484  ;;  %4496 = vpow2.f32 %v522_v25 }
  0xfb   :  { %v451_v52 = vadd.f32 1.4214138, %v443_v42  ;;  %v429_v58 = vmul.f32 1.0614054, %v4804_v30  ;;  %v428_v33 = vmul.f32 1.0614054, %v4811_v9  ;;  %4498 = vpow2.f32 %v4785_v17  ;;  %v4487_v13 = vpop.eup %4486 }
  0xfc   :  { %v149_v19 = vmul.f32 %v4743_v23, %v147_v40  ;;  %v442_v2 = vmul.f32 %v4796_v36, %v434_v3  ;;  %v456_v37 = vmul.f32 %v4781_v8, %v448_v4  ;;  %v465_v41 = vadd.f32 -0.28449672, %v457_v16  ;;  %v4836_v17 = vld [vmem:[#allocation2 + $0xe8] sm:$0xff] }
  0xfd   :  { %v459_v21 = vmul.f32 %v4788_v22, %v451_v52  ;;  %v437_v32 = vadd.f32 -1.4531521, %v429_v58  ;;  %v436_v54 = vadd.f32 -1.4531521, %v428_v33  ;;  %v462_v16 = vadd.f32 -0.28449672, %v454_v50  ;;  %v4489_v58 = vpop.eup %4488 }
  0xfe   :  { %v159_v11 = vmul.f32 %v4481_v14, %v149_v19  ;;  %v450_v24 = vadd.f32 1.4214138, %v442_v2  ;;  %v473_v6 = vmul.f32 %v4769_v51, %v465_v41  ;;  %4500 = vpow2.f32 %v4792_v29  ;;  %v4491_v29 = vpop.eup %4490 }
  0xff   :  { %v467_v38 = vadd.f32 -0.28449672, %v459_v21  ;;  %v445_v14 = vmul.f32 %v4804_v30, %v437_v32  ;;  %v444_v42 = vmul.f32 %v4811_v9, %v436_v54  ;;  %v470_v33 = vmul.f32 %v4764_v43, %v462_v16 }
 0x100   :  { %v161_v23 = vsub.f32 1.0, %v159_v11  ;;  %v458_v40 = vmul.f32 %v4796_v36, %v450_v24  ;;  %v4827_v11 = vld [vmem:[#allocation2 + $0xe0] sm:$0xff]  ;;  %v481_v24 = vadd.f32 0.2548296, %v473_v6 }
 0x101   :  { %v475_v56 = vmul.f32 %v4788_v22, %v467_v38  ;;  %v453_v19 = vadd.f32 1.4214138, %v445_v14 }
 0x102   :  { %v163_v28 = vmul.f32 %v161_v23, %v4772_v53  ;;  %v466_v57 = vadd.f32 -0.28449672, %v458_v40  ;;  %v464_v53 = vadd.f32 -0.28449672, %v456_v37  ;;  %v471_v37 = vmul.f32 %v4757_v35, %v463_v61 }
 0x103   :  { %v483_v3 = vadd.f32 0.2548296, %v475_v56  ;;  %v461_v12 = vmul.f32 %v4804_v30, %v453_v19  ;;  %v4493_v38 = vpop.eup %4492 }
 0x104   :  { %v165_v47 = vadd.f32 1.0, %v163_v28  ;;  %v474_v4 = vmul.f32 %v4796_v36, %v466_v57  ;;  %v472_v2 = vmul.f32 %v4781_v8, %v464_v53  ;;  %v479_v14 = vadd.f32 0.2548296, %v471_v37  ;;  %v4495_v54 = vpop.eup %4494 }
 0x105   :  { %v469_v23 = vadd.f32 -0.28449672, %v461_v12  ;;  %v491_v21 = vmul.f32 %v4788_v22, %v483_v3  ;;  %v478_v53 = vadd.f32 0.2548296, %v470_v33 }
 0x106   :  { %v167_v60 = vmul.f32 %v165_v47, %v4767_v45  ;;  %v452_v45 = vadd.f32 1.4214138, %v444_v42  ;;  %v482_v52 = vadd.f32 0.2548296, %v474_v4  ;;  %v480_v34 = vadd.f32 0.2548296, %v472_v2 }
 0x107   :  { %v477_v25 = vmul.f32 %v4804_v30, %v469_v23  ;;  %v531_v22 = vmul.f32 %v4491_v29, %v491_v21  ;;  %v489_v47 = vmul.f32 %v4769_v51, %v481_v24  ;;  %v4497_v19 = vpop.eup %4496  ;;  %v487_v51 = vmul.f32 %v4757_v35, %v479_v14 }
 0x108   :  { %4179 = vmatprep.subr.mxu1 %v167_v60  ;;  %v460_v18 = vmul.f32 %v4811_v9, %v452_v45  ;;  %v490_v32 = vmul.f32 %v4796_v36, %v482_v52  ;;  %v488_v57 = vmul.f32 %v4781_v8, %v480_v34  ;;  %v4499_v4 = vpop.eup %4498  ;;  %v486_v45 = vmul.f32 %v4764_v43, %v478_v53 }
 0x109   :  { %4180 = vmatpush3.msra.mxu1 %v167_v60  ;;  %v485_v40 = vadd.f32 0.2548296, %v477_v25  ;;  %v539_v42 = vsub.f32 1.0, %v531_v22  ;;  %v529_v3 = vmul.f32 %v4487_v13, %v489_v47  ;;  %v387_v35 = vsel %vm379_vm5, -1.0, %v4634_v46 }
 0x10a   :  { %4182 = vmatmul.mubr.msk.f32.vlgmr.msra.gmra.mxu1 %vm35_vm1, %v4821_v0  ;;  %v468_v28 = vadd.f32 -0.28449672, %v460_v18  ;;  %v530_v56 = vmul.f32 %v4493_v38, %v490_v32  ;;  %v528_v12 = vmul.f32 %v4489_v58, %v488_v57  ;;  %v527_v23 = vmul.f32 %v4499_v4, %v487_v51  ;;  %v703_v51 = vld [vmem:[#allocation2 + $0x128] sm:$0xff]  ;;  %v577_v4 = vpop.permute.xlu0 %576 }
 0x10b   :  { %4184 = vmatprep.mubr.msk.f32.mxu1 %vm35_vm1, %v4827_v11  ;;  %v493_v50 = vmul.f32 %v4804_v30, %v485_v40  ;;  %v4501_v13 = vpop.eup %4500  ;;  %v547_v2 = vmul.f32 %v539_v42, %v387_v35  ;;  %v537_v16 = vsub.f32 1.0, %v529_v3  ;;  %v386_v58 = vsel %vm378_vm6, -1.0, %v4634_v46  ;;  %v567_v3 = vld [vmem:[#allocation2 + $0x98] sm:$0xff] }
 0x10c   :  { %v476_v41 = vmul.f32 %v4811_v9, %v468_v28  ;;  %v538_v6 = vsub.f32 1.0, %v530_v56  ;;  %v365_v43 = vmul.f32 0.5, %v4741_v20  ;;  %v388_v18 = vsel %vm380_vm7, -1.0, %v4634_v46 }
 0x10d   :  { %v533_v60 = vmul.f32 %v4495_v54, %v493_v50  ;;  %v536_v37 = vsub.f32 1.0, %v528_v12  ;;  %v526_v25 = vmul.f32 %v4501_v13, %v486_v45  ;;  %v385_v29 = vsel %vm377_vm8, -1.0, %v4634_v46  ;;  %v700_v12 = vld [vmem:[#allocation2 + $0x110] sm:$0xff] }
 0x10e   :  { %4185 = vmatmul.mubr.msk.f32.gmra.mxu1 %vm35_vm1, %v4836_v17  ;;  %v484_v36 = vadd.f32 0.2548296, %v476_v41  ;;  %v546_v7 = vmul.f32 %v538_v6, %v386_v58  ;;  %v555_v20 = vadd.f32 1.0, %v547_v2  ;;  %v545_v34 = vmul.f32 %v537_v16, %v385_v29  ;;  %v587_v2 = vpop.permute.xlu0 %586 }
 0x10f   :  { %v541_v30 = vsub.f32 1.0, %v533_v60  ;;  %v535_v33 = vsub.f32 1.0, %v527_v23  ;;  %v363_v38 = vmul.f32 0.5, %v4719_v1  ;;  %v544_v41 = vmul.f32 %v536_v37, %v384_v31 }
 0x110   :  { %v492_v61 = vmul.f32 %v4811_v9, %v484_v36  ;;  %v554_v62 = vadd.f32 1.0, %v546_v7  ;;  %v534_v22 = vsub.f32 1.0, %v526_v25  ;;  %v362_v47 = vmul.f32 0.5, %v4729_v10 }
 0x111   :  { %v549_v9 = vmul.f32 %v541_v30, %v389_v26  ;;  %v563_v55 = vmul.f32 %v555_v20, %v363_v38  ;;  %v553_v14 = vadd.f32 1.0, %v545_v34  ;;  %v543_v50 = vmul.f32 %v535_v33, %v383_v27  ;;  %v702_v26 = vld [vmem:[#allocation2 + $0x120] sm:$0xff]  ;;  %v701_v30 = vld [vmem:[#allocation2 + $0x118] sm:$0xff] }
 0x112   :  { %v532_v8 = vmul.f32 %v4497_v19, %v492_v61  ;;  %v361_v1 = vmul.f32 0.5, %v4711_v59  ;;  %v562_v54 = vmul.f32 %v554_v62, %v362_v47  ;;  %v552_v36 = vadd.f32 1.0, %v544_v41 }
 0x113   :  { %v557_v21 = vadd.f32 1.0, %v549_v9  ;;  %v542_v56 = vmul.f32 %v534_v22, %v382_v5  ;;  %v360_v57 = vmul.f32 0.5, %v4717_v63  ;;  %v551_v53 = vadd.f32 1.0, %v543_v50  ;;  %v568_v63 = vld [vmem:[#allocation2 + $0xa0] sm:$0xff]  ;;  %v4916_v5 = vld [vmem:[#allocation2 + $0x130] ss:$0 sm:$0xff] }
 0x114   :  { %v540_v52 = vsub.f32 1.0, %v532_v8  ;;  %v561_v48 = vmul.f32 %v553_v14, %v361_v1  ;;  %v359_v10 = vmul.f32 0.5, %v4690_v44  ;;  %v358_v61 = vmul.f32 0.5, %v4698_v49  ;;  %v569_v44 = vld [vmem:[#allocation2 + $0xa8] sm:$0xff]  ;;  %v582_v49 = vpop.permute.xlu1 %581 }
 0x115   :  { %v565_v28 = vmul.f32 %v557_v21, %v365_v43  ;;  %v560_v60 = vmul.f32 %v552_v36, %v360_v57  ;;  %v550_v19 = vadd.f32 1.0, %v542_v56  ;;  %v4635_v58 = vmov 1   ;;  %v4894_v21 = vpop.permute.xlu0 %708 }
 0x116   :  { %v548_v24 = vmul.f32 %v540_v52, %v388_v18  ;;  %v559_v59 = vmul.f32 %v551_v53, %v359_v10  ;;  %v4636_v27 = vmov 0.0   ;;  %v4913_v47 = vmul.f32 0.70710677, %v4686_v39 }
 0x117   :  { %4157 = vmatprep.subr.mxu0 %v565_v28  ;;  %v558_v42 = vmul.f32 %v550_v19, %v358_v61  ;;  %4201 = vmatprep.subr.mxu1 %v4636_v27  ;;  %vm1504_vm8 = vcmask 1040384  }
 0x118   :  { %v556_v32 = vadd.f32 1.0, %v548_v24  ;;  %4158 = vmatpush3.msra.mxu0 %v565_v28  ;;  %v592_v9 = vpop.permute.xlu1 %591  ;;  %4209 = vmatprep.mubr.msk.f32.mxu1 %vm4637_vm12, %v4636_v27  ;;  %vm122_vm15 = vcmp.lt.f32.partialorder %v4913_v47, 0.0 }
 0x119   :  { %v4898_v37 = vpop.permute.xlu0 %718 }
 0x11a   :  { %v564_v40 = vmul.f32 %v556_v32, %v364_v15 }
 0x11c   :  { %4159 = vmatprep.subr.mxu0 %v564_v40  ;;  %v4892_v43 = vpop.permute.xlu1 %713 }
 0x11d   :  { %4160 = vmatpush3.msra.mxu0 %v564_v40 }
 0x11e   :  { %4161 = vmatprep.subr.mxu0 %v563_v55 }
 0x11f   :  { %4162 = vmatpush3.msra.mxu0 %v563_v55  ;;  %v126_v55 = vand.u32 2147483647, %v4913_v47 }
 0x120   :  { %4163 = vmatprep.subr.mxu0 %v562_v54  ;;  %v4896_v7 = vpop.permute.xlu1 %723 }
 0x121   :  { %4164 = vmatpush3.msra.mxu0 %v562_v54  ;;  %v128_v14 = vmul.f32 0.3275911, %v126_v55 }
 0x122   :  { %4165 = vmatprep.subr.mxu0 %v561_v48 }
 0x123   :  { %4166 = vmatpush3.msra.mxu0 %v561_v48  ;;  %v130_v50 = vadd.f32 1.0, %v128_v14 }
 0x124   :  { %4167 = vmatprep.subr.mxu0 %v560_v60 }
 0x125   :  { %4168 = vmatpush3.msra.mxu0 %v560_v60  ;;  %4502 = vrcp.f32 %v130_v50 }
 0x126   :  { %4169 = vmatprep.subr.mxu0 %v559_v59 }
 0x127   :  { %4170 = vmatpush3.msra.mxu0 %v559_v59 }
 0x128   :  { %4171 = vmatprep.subr.mxu0 %v558_v42 }
 0x129   :  { %4172 = vmatpush3.msra.mxu0 %v558_v42 }
 0x12a   :  { %4174 = vmatmul.mubr.msk.f32.vlgmr.msra.gmra.mxu0 %vm594_vm2, %v567_v3  ;;  %4187 = vmatprep.subr.mxu0 %v703_v51 }
 0x12b   :  { %4176 = vmatprep.mubr.msk.f32.mxu0 %vm594_vm2, %v568_v63  ;;  %4188 = vmatpush3.msra.mxu0 %v703_v51 }
 0x12c   :  { %4189 = vmatprep.subr.mxu0 %v702_v26 }
 0x12d   :  { %4190 = vmatpush3.msra.mxu0 %v702_v26 }
 0x12e   :  { %4177 = vmatmul.mubr.msk.f32.gmra.mxu0 %vm594_vm2, %v569_v44  ;;  %4191 = vmatprep.subr.mxu0 %v701_v30 }
 0x12f   :  { %4192 = vmatpush3.msra.mxu0 %v701_v30 }
 0x130   :  { %4193 = vmatprep.subr.mxu0 %v700_v12 }
 0x131   :  { %4194 = vmatpush3.msra.mxu0 %v700_v12 }
 0x132   :  { %4220 = vmatprep.subr.mxu0 %v703_v51  ;;  %v4941_v63 = vpop.eup %4502 }
 0x1ca   :  { %v4183_v18 = vpop.f32.mrf.mxu1 }
 0x1cb   :  { %v810_v28 = vadd.f32 %v4183_v18, %v4892_v43 }
 0x1cc   :  { %v804_v24 = vpop.f32.mrf.mxu1 }
 0x1cd   :  { %v805_v15 = vadd.f32 %v804_v24, %v4894_v21 }
 0x1ce   :  { %v4186_v25 = vpop.f32.mrf.mxu1 }
 0x1cf   :  { %v820_v40 = vadd.f32 %v4186_v25, %v4896_v7 }
 0x1d0   :  { %v814_v32 = vpop.f32.mrf.mxu1 }
 0x1d1   :  { %v815_v31 = vadd.f32 %v814_v32, %v4898_v37 }
 0x1ea   :  { %v4175_v8 = vpop.f32.mrf.mxu0 }
 0x1eb   :  { %v679_v6 = vadd.f32 %v4175_v8, %v582_v49  ;;  %v134_v8 = vmul.f32 1.0614054, %v4941_v63 }
 0x1ec   :  { %v673_v45 = vpop.f32.mrf.mxu0 }
 0x1ed   :  { %v674_v35 = vadd.f32 %v673_v45, %v577_v4  ;;  %830 = vperm.xlu1 %4463, %v679_v6  }
 0x1ee   :  { %v4178_v13 = vpop.f32.mrf.mxu0 }
 0x1ef   :  { %v689_v52 = vadd.f32 %v4178_v13, %v592_v9  ;;  %825 = vperm.xlu0 %4462, %v674_v35  }
 0x1f0   :  { %v683_v16 = vpop.f32.mrf.mxu0 }
 0x1f1   :  { %v684_v23 = vadd.f32 %v683_v16, %v587_v2  ;;  %840 = vperm.xlu1 %4463, %v689_v52  }
 0x1f3   :  { %835 = vperm.xlu0 %4462, %v684_v23  }
 0x1f5   :  { %4465 = vset.pattern.permute.xlu1 %v4635_v58 }
 0x1f6   :  { %1215 = vperm.xlu1 %4465, %v679_v6  }
 0x1f7   :  { %4464 = vset.pattern.permute.xlu0 %v4635_v58 }
 0x1f8   :  { %1211 = vperm.xlu0 %4464, %v674_v35   ;;  %v136_v35 = vadd.f32 -1.4531521, %v134_v8 }
 0x1fa   :  { %1219 = vperm.xlu1 %4465, %v684_v23   ;;  %v138_v2 = vmul.f32 %v4941_v63, %v136_v35 }
 0x1fc   :  { %1223 = vperm.xlu0 %4464, %v689_v52   ;;  %v152_v52 = vsub.f32 0.0, %v126_v55  ;;  %v140_v25 = vadd.f32 1.4214138, %v138_v2 }
 0x1fe   :  { %v154_v24 = vmul.f32 %v152_v52, %v126_v55 }
 0x268   :  { %v831_v29 = vpop.permute.xlu1 %830 }
 0x269   :  { %v844_v33 = vadd.f32 %v831_v29, %v810_v28 }
 0x26a   :  { %v826_v20 = vpop.permute.xlu0 %825 }
 0x26b   :  { %v843_v34 = vadd.f32 %v826_v20, %v805_v15 }
 0x26c   :  { %v841_v38 = vpop.permute.xlu1 %840 }
 0x26d   :  { %4195 = vmatprep.mubr.msk.f32.mxu0 %vm225_vm0, %v843_v34  ;;  %v846_v22 = vadd.f32 %v841_v38, %v820_v40  ;;  %v142_v40 = vmul.f32 %v4941_v63, %v140_v25 }
 0x26e   :  { %v836_v62 = vpop.permute.xlu0 %835  ;;  %4196 = vmatmul.mubr.msk.f32.vlgmr.msra.gmra.mxu0 %vm225_vm0, %v844_v33 }
 0x26f   :  { %v845_v41 = vadd.f32 %v836_v62, %v815_v31  ;;  %4221 = vmatpush3.msra.mxu0 %v703_v51  ;;  %v157_v31 = vmul.f32 1.442695, %v154_v24 }
 0x270   :  { %4222 = vmatprep.subr.mxu0 %v702_v26 }
 0x271   :  { %4198 = vmatprep.mubr.msk.f32.mxu0 %vm225_vm0, %v845_v41  ;;  %4223 = vmatpush3.msra.mxu0 %v702_v26 }
 0x272   :  { %4199 = vmatmul.mubr.msk.f32.gmra.mxu0 %vm225_vm0, %v846_v22  ;;  %4224 = vmatprep.subr.mxu0 %v701_v30 }
 0x273   :  { %4225 = vmatpush3.msra.mxu0 %v701_v30 }
 0x274   :  { %4226 = vmatprep.subr.mxu0 %v700_v12 }
 0x275   :  { %4227 = vmatpush3.msra.mxu0 %v700_v12 }
 0x276   :  { %4245 = vmatprep.subr.mxu0 %v4636_v27 }
 0x32e   :  { %v4197_v1 = vpop.f32.mrf.mxu0 }
 0x32f   :  { %v4919_v54 = vadd.f32 %v4197_v1, %v4916_v5 }
 0x330   :  { %v929_v36 = vpop.f32.mrf.mxu0 }
 0x331   :  { %v4922_v56 = vmul.f32 0.70710677, %v4919_v54  ;;  %v4925_v57 = vadd.f32 %v4916_v5, %v929_v36 }
 0x332   :  { %v4200_v48 = vpop.f32.mrf.mxu0 }
 0x333   :  { %v965_v53 = vand.u32 2147483647, %v4922_v56  ;;  %v4929_v10 = vmul.f32 0.70710677, %v4925_v57  ;;  %v4932_v60 = vadd.f32 %v4200_v48, %v4916_v5  ;;  %vm957_vm14 = vcmp.lt.f32.partialorder %v4922_v56, 0.0 }
 0x334   :  { %v939_v19 = vpop.f32.mrf.mxu0  ;;  %v124_v56 = vsel %vm122_vm15, -1.0, %v4634_v46 }
 0x335   :  { %v969_v61 = vmul.f32 0.3275911, %v965_v53  ;;  %v964_v59 = vand.u32 2147483647, %v4929_v10  ;;  %v4936_v42 = vmul.f32 0.70710677, %v4932_v60  ;;  %v4939_v3 = vadd.f32 %v4916_v5, %v939_v19 }
 0x336   :  { %v1017_v13 = vsub.f32 0.0, %v965_v53  ;;  %vm956_vm3 = vcmp.lt.f32.partialorder %v4929_v10, 0.0  ;;  %v951_v47 = vmul.f32 0.5, %v4932_v60  ;;  %v118_v60 = vmul.f32 0.5, %v4686_v39  ;;  %v4606_v39 = vld [vmem:[#allocation2 + $0xd0] sm:$0xff] }
 0x337   :  { %v973_v44 = vadd.f32 1.0, %v969_v61  ;;  %v968_v51 = vmul.f32 0.3275911, %v964_v59  ;;  %v967_v26 = vand.u32 2147483647, %v4936_v42  ;;  %v1016_v16 = vsub.f32 0.0, %v964_v59 }
 0x338   :  { %v4945_v49 = vmul.f32 0.70710677, %v4939_v3  ;;  %v1021_v58 = vmul.f32 %v1017_v13, %v965_v53  ;;  %v144_v61 = vadd.f32 -0.28449672, %v142_v40  ;;  %vm959_vm13 = vcmp.lt.f32.partialorder %v4936_v42, 0.0 }
 0x339   :  { %4504 = vrcp.f32 %v973_v44  ;;  %v972_v30 = vadd.f32 1.0, %v968_v51  ;;  %v971_v4 = vmul.f32 0.3275911, %v967_v26  ;;  %v1019_v23 = vsub.f32 0.0, %v967_v26 }
 0x33a   :  { %v966_v6 = vand.u32 2147483647, %v4945_v49  ;;  %v1020_v15 = vmul.f32 %v1016_v16, %v964_v59  ;;  %v1026_v33 = vmul.f32 1.442695, %v1021_v58  ;;  %vm958_vm4 = vcmp.lt.f32.partialorder %v4945_v49, 0.0 }
 0x33b   :  { %4506 = vrcp.f32 %v972_v30  ;;  %v975_v12 = vadd.f32 1.0, %v971_v4  ;;  %v1023_v32 = vmul.f32 %v1019_v23, %v967_v26  ;;  %v961_v42 = vsel %vm957_vm14, -1.0, %v4634_v46 }
 0x33c   :  { %v970_v45 = vmul.f32 0.3275911, %v966_v6  ;;  %v1018_v28 = vsub.f32 0.0, %v966_v6  ;;  %v1024_v22 = vmul.f32 1.442695, %v1020_v15  ;;  %vm1909_vm14 = vcmask 130048  }
 0x33d   :  { %4508 = vrcp.f32 %v975_v12  ;;  %v1030_v36 = vmul.f32 1.442695, %v1023_v32 }
 0x33e   :  { %v974_v9 = vadd.f32 1.0, %v970_v45  ;;  %v1022_v14 = vmul.f32 %v1018_v28, %v966_v6  ;;  %v146_v45 = vmul.f32 %v4941_v63, %v144_v61 }
 0x340   :  { %4510 = vrcp.f32 %v974_v9  ;;  %v1028_v51 = vmul.f32 1.442695, %v1022_v14  ;;  %v148_v24 = vadd.f32 0.2548296, %v146_v45 }
 0x341   :  { %4512 = vpow2.f32 %v1026_v33 }
 0x342   :  { %4514 = vpow2.f32 %v157_v31 }
 0x343   :  { %4516 = vpow2.f32 %v1024_v22 }
 0x344   :  { %4518 = vpow2.f32 %v1030_v36 }
 0x345   :  { %4520 = vpow2.f32 %v1028_v51 }
 0x346   :  { %v4505_v18 = vpop.eup %4504 }
 0x347   :  { %v981_v29 = vmul.f32 1.0614054, %v4505_v18 }
 0x348   :  { %v4507_v20 = vpop.eup %4506 }
 0x349   :  { %v985_v34 = vadd.f32 -1.4531521, %v981_v29  ;;  %v980_v38 = vmul.f32 1.0614054, %v4507_v20 }
 0x34a   :  { %v4509_v62 = vpop.eup %4508 }
 0x34b   :  { %v989_v41 = vmul.f32 %v4505_v18, %v985_v34  ;;  %v984_v50 = vadd.f32 -1.4531521, %v980_v38  ;;  %v983_v1 = vmul.f32 1.0614054, %v4509_v62  ;;  %v150_v38 = vmul.f32 %v4941_v63, %v148_v24 }
 0x34c   :  { %v948_v24 = vmul.f32 0.5, %v4925_v57 }
 0x34d   :  { %v993_v55 = vadd.f32 1.4214138, %v989_v41  ;;  %v4511_v48 = vpop.eup %4510  ;;  %v988_v53 = vmul.f32 %v4507_v20, %v984_v50  ;;  %v987_v19 = vadd.f32 -1.4531521, %v983_v1 }
 0x34e   :  { %v982_v44 = vmul.f32 1.0614054, %v4511_v48  ;;  %v4513_v34 = vpop.eup %4512 }
 0x34f   :  { %v997_v59 = vmul.f32 %v4505_v18, %v993_v55  ;;  %v992_v26 = vadd.f32 1.4214138, %v988_v53  ;;  %v991_v30 = vmul.f32 %v4509_v62, %v987_v19  ;;  %v4515_v40 = vpop.eup %4514 }
 0x350   :  { %v986_v8 = vadd.f32 -1.4531521, %v982_v44  ;;  %v4517_v14 = vpop.eup %4516  ;;  %v160_v53 = vmul.f32 %v4515_v40, %v150_v38 }
 0x351   :  { %v1001_v4 = vadd.f32 -0.28449672, %v997_v59  ;;  %v996_v6 = vmul.f32 %v4507_v20, %v992_v26  ;;  %v995_v12 = vadd.f32 1.4214138, %v991_v30  ;;  %v4519_v1 = vpop.eup %4518 }
 0x352   :  { %v990_v9 = vmul.f32 %v4511_v48, %v986_v8  ;;  %v162_v26 = vsub.f32 1.0, %v160_v53  ;;  %v962_v8 = vsel %vm958_vm4, -1.0, %v4634_v46 }
 0x353   :  { %v1005_v35 = vmul.f32 %v4505_v18, %v1001_v4  ;;  %v1000_v13 = vadd.f32 -0.28449672, %v996_v6  ;;  %v999_v52 = vmul.f32 %v4509_v62, %v995_v12  ;;  %v960_v4 = vsel %vm956_vm3, -1.0, %v4634_v46 }
 0x354   :  { %v994_v16 = vadd.f32 1.4214138, %v990_v9  ;;  %v164_v49 = vmul.f32 %v162_v26, %v124_v56  ;;  %v950_v9 = vmul.f32 0.5, %v4939_v3  ;;  %v4970_v3 = vld [vmem:[#allocation2 + $0x138] sm:$0x1] }
 0x355   :  { %v1009_v2 = vadd.f32 0.2548296, %v1005_v35  ;;  %v1004_v23 = vmul.f32 %v4507_v20, %v1000_v13  ;;  %v1003_v58 = vadd.f32 -0.28449672, %v999_v52  ;;  %v949_v52 = vmul.f32 0.5, %v4919_v54 }
 0x356   :  { %v998_v29 = vmul.f32 %v4511_v48, %v994_v16 }
 0x357   :  { %v1013_v25 = vmul.f32 %v4505_v18, %v1009_v2  ;;  %v1008_v15 = vadd.f32 0.2548296, %v1004_v23  ;;  %v1007_v28 = vmul.f32 %v4509_v62, %v1003_v58  ;;  %v166_v23 = vadd.f32 1.0, %v164_v49 }
 0x358   :  { %v1002_v32 = vadd.f32 -0.28449672, %v998_v29 }
 0x359   :  { %v1012_v33 = vmul.f32 %v4507_v20, %v1008_v15  ;;  %v1011_v31 = vadd.f32 0.2548296, %v1007_v28  ;;  %v1033_v41 = vmul.f32 %v4513_v34, %v1013_v25  ;;  %v4521_v20 = vpop.eup %4520  ;;  %v168_v54 = vmul.f32 %v166_v23, %v118_v60  ;;  %v1216_v28 = vpop.permute.xlu1 %1215 }
 0x35a   :  { %v1006_v22 = vmul.f32 %v4511_v48, %v1002_v32 }
 0x35b   :  { %v1015_v50 = vmul.f32 %v4509_v62, %v1011_v31  ;;  %v1032_v36 = vmul.f32 %v4517_v14, %v1012_v33  ;;  %v1037_v19 = vsub.f32 1.0, %v1033_v41  ;;  %v963_v62 = vsel %vm959_vm13, -1.0, %v4634_v46  ;;  %v1212_v33 = vpop.permute.xlu0 %1211 }
 0x35c   :  { %v1010_v55 = vadd.f32 0.2548296, %v1006_v22  ;;  %vm1712_vm13 = vcmask 1041408  }
 0x35d   :  { %v1035_v18 = vmul.f32 %v4519_v1, %v1015_v50  ;;  %v1036_v59 = vsub.f32 1.0, %v1032_v36  ;;  %v1041_v30 = vmul.f32 %v1037_v19, %v961_v42  ;;  %v1220_v22 = vpop.permute.xlu1 %1219 }
 0x35e   :  { %v1014_v61 = vmul.f32 %v4511_v48, %v1010_v55 }
 0x35f   :  { %v1039_v63 = vsub.f32 1.0, %v1035_v18  ;;  %v1040_v6 = vmul.f32 %v1036_v59, %v960_v4  ;;  %v1045_v35 = vadd.f32 1.0, %v1041_v30  ;;  %v1224_v14 = vpop.permute.xlu0 %1223 }
 0x360   :  { %v1034_v44 = vmul.f32 %v4521_v20, %v1014_v61 }
 0x361   :  { %v1043_v51 = vmul.f32 %v1039_v63, %v963_v62  ;;  %v1044_v2 = vadd.f32 1.0, %v1040_v6  ;;  %v1049_v58 = vmul.f32 %v1045_v35, %v949_v52 }
 0x362   :  { %v1038_v48 = vsub.f32 1.0, %v1034_v44 }
 0x363   :  { %v1047_v10 = vadd.f32 1.0, %v1043_v51  ;;  %v1048_v25 = vmul.f32 %v1044_v2, %v948_v24 }
 0x364   :  { %v1042_v12 = vmul.f32 %v1038_v48, %v962_v8 }
 0x365   :  { %v1051_v45 = vmul.f32 %v1047_v10, %v951_v47 }
 0x366   :  { %v1046_v13 = vadd.f32 1.0, %v1042_v12 }
 0x367   :  { %4202 = vmatpush3.msra.mxu1 %v1051_v45 }
 0x368   :  { %v1050_v16 = vmul.f32 %v1046_v13, %v950_v9  ;;  %4203 = vmatprep.subr.mxu1 %v4636_v27 }
 0x36a   :  { %4204 = vmatpush3.msra.mxu1 %v1050_v16 }
 0x36b   :  { %4205 = vmatprep.subr.mxu1 %v4636_v27 }
 0x36c   :  { %4206 = vmatpush3.msra.mxu1 %v1049_v58 }
 0x36d   :  { %4207 = vmatprep.subr.mxu1 %v4636_v27 }
 0x36e   :  { %4208 = vmatpush3.msra.mxu1 %v1048_v25 }
 0x36f   :  { %4210 = vmatmul.mubr.msk.f32.vlgmr.msra.gmra.mxu1 %vm225_vm0, %v4970_v3  ;;  %4212 = vmatprep.subr.mxu1 %v168_v54 }
 0x370   :  { %4213 = vmatpush3.msra.mxu1 %v168_v54  ;;  %4214 = vmatprep.mubr.msk.f32.mxu1 %vm35_vm1, %v4606_v39 }
 0x371   :  { %4234 = vmatprep.subr.mxu1 %v4636_v27 }
 0x373   :  { %4215 = vmatmul.mubr.msk.f32.vlgmr.msra.gmra.mxu1 %vm35_vm1, %v4821_v0 }
 0x374   :  { %4217 = vmatprep.mubr.msk.f32.mxu1 %vm35_vm1, %v4827_v11 }
 0x377   :  { %4218 = vmatmul.mubr.msk.f32.gmra.mxu1 %vm35_vm1, %v4836_v17 }
 0x378   :  { %4242 = vmatprep.mubr.msk.f32.mxu1 %vm4637_vm12, %v4636_v27 }
 0x42f   :  { %v4985_v57 = vpop.f32.mrf.mxu1 }
 0x431   :  { %v4211_v29 = vpop.f32.mrf.mxu1 }
 0x433   :  { %v4216_v15 = vpop.f32.mrf.mxu1 }
 0x434   :  { %v1197_v32 = vadd.f32 %v4216_v15, %v4892_v43 }
 0x435   :  { %v1191_v34 = vpop.f32.mrf.mxu1 }
 0x436   :  { %v1192_v0 = vadd.f32 %v1191_v34, %v4894_v21  ;;  %v1227_v11 = vadd.f32 %v1216_v28, %v1197_v32 }
 0x437   :  { %v4219_v31 = vpop.f32.mrf.mxu1 }
 0x438   :  { %v1226_v38 = vadd.f32 %v1212_v33, %v1192_v0  ;;  %v1207_v40 = vadd.f32 %v4219_v31, %v4896_v7 }
 0x439   :  { %v1201_v17 = vpop.f32.mrf.mxu1 }
 0x43a   :  { %v1202_v41 = vadd.f32 %v1201_v17, %v4898_v37  ;;  %4228 = vmatprep.mubr.msk.f32.mxu0 %vm225_vm0, %v1226_v38  ;;  %v1229_v43 = vadd.f32 %v1224_v14, %v1207_v40 }
 0x43b   :  { %4229 = vmatmul.mubr.msk.f32.vlgmr.msra.gmra.mxu0 %vm225_vm0, %v1227_v11 }
 0x43c   :  { %v1228_v50 = vadd.f32 %v1220_v22, %v1202_v41 }
 0x43e   :  { %4231 = vmatprep.mubr.msk.f32.mxu0 %vm225_vm0, %v1228_v50 }
 0x43f   :  { %4232 = vmatmul.mubr.msk.f32.gmra.mxu0 %vm225_vm0, %v1229_v43 }
 0x440   :  { %4253 = vmatprep.mubr.msk.f32.mxu0 %vm4637_vm12, %v4636_v27 }
 0x4fb   :  { %v4230_v21 = vpop.f32.mrf.mxu0 }
 0x4fc   :  { %v4998_v7 = vadd.f32 %v4230_v21, %v4916_v5 }
 0x4fd   :  { %v1308_v37 = vpop.f32.mrf.mxu0 }
 0x4fe   :  { %v5001_v1 = vmul.f32 0.70710677, %v4998_v7  ;;  %v5004_v36 = vadd.f32 %v4916_v5, %v1308_v37 }
 0x4ff   :  { %v4233_v55 = vpop.f32.mrf.mxu0 }
 0x500   :  { %v1344_v18 = vand.u32 2147483647, %v5001_v1  ;;  %v5008_v53 = vmul.f32 0.70710677, %v5004_v36  ;;  %v5011_v19 = vadd.f32 %v4233_v55, %v4916_v5  ;;  %vm1336_vm5 = vcmp.lt.f32.partialorder %v5001_v1, 0.0 }
 0x501   :  { %v1318_v61 = vpop.f32.mrf.mxu0 }
 0x502   :  { %v1348_v20 = vmul.f32 0.3275911, %v1344_v18  ;;  %v1343_v63 = vand.u32 2147483647, %v5008_v53  ;;  %v5015_v59 = vmul.f32 0.70710677, %v5011_v19  ;;  %v5018_v62 = vadd.f32 %v4916_v5, %v1318_v61 }
 0x503   :  { %v1396_v8 = vsub.f32 0.0, %v1344_v18  ;;  %vm1335_vm6 = vcmp.lt.f32.partialorder %v5008_v53, 0.0  ;;  %v1330_v1 = vmul.f32 0.5, %v5011_v19  ;;  %v1327_v19 = vmul.f32 0.5, %v5004_v36  ;;  %v1513_v36 = vld [vmem:[#allocation2 + $0x150] sm:$0xff] }
 0x504   :  { %v1352_v44 = vadd.f32 1.0, %v1348_v20  ;;  %v1347_v42 = vmul.f32 0.3275911, %v1343_v63  ;;  %v1346_v51 = vand.u32 2147483647, %v5015_v59  ;;  %v1395_v5 = vsub.f32 0.0, %v1343_v63 }
 0x505   :  { %v5022_v26 = vmul.f32 0.70710677, %v5018_v62  ;;  %v1400_v12 = vmul.f32 %v1396_v8, %v1344_v18  ;;  %vm1338_vm1 = vcmp.lt.f32.partialorder %v5015_v59, 0.0 }
 0x506   :  { %4522 = vrcp.f32 %v1352_v44  ;;  %v1351_v56 = vadd.f32 1.0, %v1347_v42  ;;  %v1350_v30 = vmul.f32 0.3275911, %v1346_v51  ;;  %v1398_v6 = vsub.f32 0.0, %v1346_v51 }
 0x507   :  { %v1345_v48 = vand.u32 2147483647, %v5022_v26  ;;  %v1399_v35 = vmul.f32 %v1395_v5, %v1343_v63  ;;  %v1405_v16 = vmul.f32 1.442695, %v1400_v12  ;;  %vm1337_vm7 = vcmp.lt.f32.partialorder %v5022_v26, 0.0 }
 0x508   :  { %4524 = vrcp.f32 %v1351_v56  ;;  %v1354_v4 = vadd.f32 1.0, %v1350_v30  ;;  %v1402_v13 = vmul.f32 %v1398_v6, %v1346_v51 }
 0x509   :  { %v1349_v47 = vmul.f32 0.3275911, %v1345_v48  ;;  %v1397_v9 = vsub.f32 0.0, %v1345_v48  ;;  %v1403_v24 = vmul.f32 1.442695, %v1399_v35 }
 0x50a   :  { %4526 = vrcp.f32 %v1354_v4  ;;  %v1409_v29 = vmul.f32 1.442695, %v1402_v13 }
 0x50b   :  { %v1353_v10 = vadd.f32 1.0, %v1349_v47  ;;  %v1401_v25 = vmul.f32 %v1397_v9, %v1345_v48 }
 0x50d   :  { %4528 = vrcp.f32 %v1353_v10  ;;  %v1407_v31 = vmul.f32 1.442695, %v1401_v25 }
 0x50e   :  { %4530 = vpow2.f32 %v1405_v16 }
 0x50f   :  { %4532 = vpow2.f32 %v1403_v24  ;;  %v1339_v24 = vsel %vm1335_vm6, -1.0, %v4634_v46 }
 0x510   :  { %4534 = vpow2.f32 %v1409_v29 }
 0x511   :  { %4536 = vpow2.f32 %v1407_v31 }
 0x513   :  { %v4523_v45 = vpop.eup %4522 }
 0x514   :  { %v1360_v49 = vmul.f32 1.0614054, %v4523_v45 }
 0x515   :  { %v4525_v52 = vpop.eup %4524 }
 0x516   :  { %v1364_v2 = vadd.f32 -1.4531521, %v1360_v49  ;;  %v1359_v60 = vmul.f32 1.0614054, %v4525_v52 }
 0x517   :  { %v4527_v23 = vpop.eup %4526 }
 0x518   :  { %v1368_v58 = vmul.f32 %v4523_v45, %v1364_v2  ;;  %v1363_v54 = vadd.f32 -1.4531521, %v1359_v60  ;;  %v1362_v39 = vmul.f32 1.0614054, %v4527_v23  ;;  %v1342_v2 = vsel %vm1338_vm1, -1.0, %v4634_v46 }
 0x519   :  { %v1340_v60 = vsel %vm1336_vm5, -1.0, %v4634_v46 }
 0x51a   :  { %v1372_v15 = vadd.f32 1.4214138, %v1368_v58  ;;  %v4529_v28 = vpop.eup %4528  ;;  %v1367_v32 = vmul.f32 %v4525_v52, %v1363_v54  ;;  %v1366_v34 = vadd.f32 -1.4531521, %v1362_v39  ;;  %v1341_v54 = vsel %vm1337_vm7, -1.0, %v4634_v46 }
 0x51b   :  { %v1361_v0 = vmul.f32 1.0614054, %v4529_v28  ;;  %v4531_v56 = vpop.eup %4530 }
 0x51c   :  { %v1376_v33 = vmul.f32 %v4523_v45, %v1372_v15  ;;  %v1371_v38 = vadd.f32 1.4214138, %v1367_v32  ;;  %v1370_v11 = vmul.f32 %v4527_v23, %v1366_v34  ;;  %v4533_v10 = vpop.eup %4532  ;;  %v1328_v32 = vmul.f32 0.5, %v4998_v7  ;;  %v1514_v7 = vld [vmem:[#allocation2 + $0x158] sm:$0xff] }
 0x51d   :  { %v1365_v17 = vadd.f32 -1.4531521, %v1361_v0  ;;  %v4535_v5 = vpop.eup %4534  ;;  %4246 = vmatpush3.msra.mxu0 %v1514_v7 }
 0x51e   :  { %v1380_v40 = vadd.f32 -0.28449672, %v1376_v33  ;;  %v1375_v41 = vmul.f32 %v4525_v52, %v1371_v38  ;;  %v1374_v22 = vadd.f32 1.4214138, %v1370_v11  ;;  %v4537_v9 = vpop.eup %4536  ;;  %4247 = vmatprep.subr.mxu0 %v4636_v27  ;;  %v1511_v38 = vld [vmem:[#allocation2 + $0x140] sm:$0xff] }
 0x51f   :  { %v1369_v50 = vmul.f32 %v4529_v28, %v1365_v17  ;;  %4248 = vmatpush3.msra.mxu0 %v1513_v36  ;;  %v28_v11 = vld [vmem:[%s5285_s0 + $0x18] sm:$0x3] }
 0x520   :  { %v1384_v14 = vmul.f32 %v4523_v45, %v1380_v40  ;;  %v1379_v43 = vadd.f32 -0.28449672, %v1375_v41  ;;  %v1378_v21 = vmul.f32 %v4527_v23, %v1374_v22  ;;  %4249 = vmatprep.subr.mxu0 %v4636_v27 }
 0x521   :  { %v1373_v55 = vadd.f32 1.4214138, %v1369_v50 }
 0x522   :  { %v1388_v37 = vadd.f32 0.2548296, %v1384_v14  ;;  %v1383_v18 = vmul.f32 %v4525_v52, %v1379_v43  ;;  %v1382_v61 = vadd.f32 -0.28449672, %v1378_v21  ;;  %v4607_v14 = vld [vmem:[%s5285_s0 + $0x10] sm:$0x3] }
 0x523   :  { %v1377_v63 = vmul.f32 %v4529_v28, %v1373_v55  ;;  %vm1506_vm9 = vcmp.gt.f32.partialorder %v4607_v14, 0.0  ;;  %v1622_v21 = vld [vmem:[#allocation2 + $0x180] sm:$0xff]  ;;  %v1619_v55 = vld [vmem:[#allocation2 + $0x168] sm:$0xff]  ;;  %s4638_s0 = smov 96  }
 0x524   :  { %v1392_v20 = vmul.f32 %v4523_v45, %v1388_v37  ;;  %v1387_v44 = vadd.f32 0.2548296, %v1383_v18  ;;  %v1386_v42 = vmul.f32 %v4527_v23, %v1382_v61  ;;  %v1621_v37 = vld [vmem:[#allocation2 + $0x178] sm:$0xff]  ;;  %v3906_v18 = vld [vmem:[#allocation2 + $0x160] ss:$0 sm:$0xff] }
 0x525   :  { %v1381_v51 = vadd.f32 -0.28449672, %v1377_v63 }
 0x526   :  { %v1391_v30 = vmul.f32 %v4525_v52, %v1387_v44  ;;  %v1390_v48 = vadd.f32 0.2548296, %v1386_v42  ;;  %v1412_v4 = vmul.f32 %v4531_v56, %v1392_v20 }
 0x527   :  { %v1385_v47 = vmul.f32 %v4529_v28, %v1381_v51 }
 0x528   :  { %v1394_v8 = vmul.f32 %v4527_v23, %v1390_v48  ;;  %v1411_v6 = vmul.f32 %v4533_v10, %v1391_v30  ;;  %v1416_v45 = vsub.f32 1.0, %v1412_v4 }
 0x529   :  { %v1389_v12 = vadd.f32 0.2548296, %v1385_v47 }
 0x52a   :  { %v1414_v49 = vmul.f32 %v4535_v5, %v1394_v8  ;;  %v1415_v52 = vsub.f32 1.0, %v1411_v6  ;;  %v1420_v58 = vmul.f32 %v1416_v45, %v1340_v60 }
 0x52b   :  { %v1393_v35 = vmul.f32 %v4529_v28, %v1389_v12  ;;  %v1329_v28 = vmul.f32 0.5, %v5018_v62  ;;  %v1512_v62 = vld [vmem:[#allocation2 + $0x148] sm:$0xff] }
 0x52c   :  { %v1418_v13 = vsub.f32 1.0, %v1414_v49  ;;  %v1419_v53 = vmul.f32 %v1415_v52, %v1339_v24  ;;  %v1424_v15 = vadd.f32 1.0, %v1420_v58  ;;  %4250 = vmatpush3.msra.mxu0 %v1512_v62  ;;  %v3908_v24 = vld [vmem:[#allocation2 + $0x188] ss:$0 sm:$0xff] }
 0x52d   :  { %v1413_v16 = vmul.f32 %v4537_v9, %v1393_v35  ;;  %4251 = vmatprep.subr.mxu0 %v4636_v27 }
 0x52e   :  { %v1422_v23 = vmul.f32 %v1418_v13, %v1342_v2  ;;  %v1423_v34 = vadd.f32 1.0, %v1419_v53  ;;  %v1428_v0 = vmul.f32 %v1424_v15, %v1328_v32  ;;  %4252 = vmatpush3.msra.mxu0 %v1511_v38  ;;  %v1702_v53 = vld [vmem:[#allocation2 + $0x198] sm:$0xff]  ;;  %v1794_v15 = vld [vmem:[#allocation2 + $0x1c8] sm:$0xff]  ;;  %v1703_v32 = vld [vmem:[#allocation2 + $0x1a0] sm:$0xff] }
 0x52f   :  { %v1417_v59 = vsub.f32 1.0, %v1413_v16 }
 0x530   :  { %v1426_v25 = vadd.f32 1.0, %v1422_v23  ;;  %v1427_v31 = vmul.f32 %v1423_v34, %v1327_v19  ;;  %v1704_v34 = vld [vmem:[#allocation2 + $0x1a8] sm:$0xff] }
 0x531   :  { %v1421_v39 = vmul.f32 %v1417_v59, %v1341_v54  ;;  %v1701_v59 = vld [vmem:[#allocation2 + $0x190] sm:$0xff] }
 0x532   :  { %v1430_v29 = vmul.f32 %v1426_v25, %v1330_v1 }
 0x533   :  { %v1425_v26 = vadd.f32 1.0, %v1421_v39  ;;  %v1796_v39 = vld [vmem:[#allocation2 + $0x1d8] sm:$0xff] }
 0x534   :  { %4235 = vmatpush3.msra.mxu1 %v1430_v29  ;;  %v1795_v29 = vld [vmem:[#allocation2 + $0x1d0] sm:$0xff] }
 0x535   :  { %v1429_v33 = vmul.f32 %v1425_v26, %v1329_v28  ;;  %4236 = vmatprep.subr.mxu1 %v4636_v27  ;;  %v1793_v28 = vld [vmem:[#allocation2 + $0x1c0] sm:$0xff] }
 0x537   :  { %4237 = vmatpush3.msra.mxu1 %v1429_v33 }
 0x538   :  { %4238 = vmatprep.subr.mxu1 %v4636_v27 }
 0x539   :  { %4239 = vmatpush3.msra.mxu1 %v1428_v0 }
 0x53a   :  { %4240 = vmatprep.subr.mxu1 %v4636_v27 }
 0x53b   :  { %4241 = vmatpush3.msra.mxu1 %v1427_v31  ;;  %v3913_v31 = vld [vmem:[#allocation2 + $0x1e0] ss:$0 sm:$0xff] }
 0x53c   :  { %4243 = vmatmul.mubr.msk.f32.vlgmr.msra.gmra.mxu1 %vm225_vm0, %v4970_v3  ;;  %4256 = vmatprep.subr.mxu1 %v4636_v27 }
 0x53d   :  { %4264 = vmatprep.mubr.msk.f32.mxu1 %vm4637_vm12, %v4636_v27  ;;  %4257 = vmatpush3.msra.mxu1 %v1622_v21  ;;  %vm1705_vm12 = vcmask 15360  }
 0x53e   :  { %4258 = vmatprep.subr.mxu1 %v4636_v27 }
 0x53f   :  { %4259 = vmatpush3.msra.mxu1 %v1621_v37  ;;  %v5102_v37 = vld [vmem:[#allocation2 + $0x1b0] sm:$0xff] }
 0x540   :  { %4260 = vmatprep.subr.mxu1 %v4636_v27 }
 0x5fc   :  { %v1497_v3 = vpop.f32.mrf.mxu1 }
 0x5fd   :  { %v1502_v40 = vrot.slane %v1497_v3, 7 }
 0x5fe   :  { %v4244_v17 = vpop.f32.mrf.mxu1 }
 0x5ff   :  { %v1505_v41 = vsel %vm1504_vm8, %v4985_v57, %v1502_v40  ;;  %v1620_v57 = vld [vmem:[#allocation2 + $0x170] sm:$0xff] }
 0x600   :  { %v1507_v22 = vadd.f32 %v1505_v41, %v28_v11  ;;  %4261 = vmatpush3.msra.mxu1 %v1620_v57 }
 0x601   :  { %4262 = vmatprep.subr.mxu1 %v4636_v27 }
 0x602   :  { %vm1508_vm10 = vcmp.ge.f32.partialorder %v1507_v22, 0.0  ;;  %4263 = vmatpush3.msra.mxu1 %v1619_v55 }
 0x603   :  { %v1509_v50 = vsel %vm1508_vm10, 1.0, %v4636_v27 }
 0x604   :  { %v1510_v43 = vsel %vm1506_vm9, %v1509_v50, -1.0  ;;  %v5100_v50 = vld [vmem:[#allocation2 + $0x1b8] sm:$0xff] }
 0x605   :  { %4254 = vmatmul.mubr.msk.f32.vlgmr.msra.gmra.mxu0 %vm225_vm0, %v1510_v43 }
 0x606   :  { %4269 = vmatprep.mubr.msk.f32.mxu0 %vm1705_vm12, %v1701_v59 }
 0x6c5   :  { %v1589_v61 = vpop.f32.mrf.mxu0 }
 0x6c6   :  { %v1590_v20 = vadd.f32 %v3906_v18, %v1589_v61 }
 0x6c7   :  { %v4255_v63 = vpop.f32.mrf.mxu0 }
 0x6c8   :  { %v1594_v44 = vmul.f32 0.70710677, %v1590_v20  ;;  %v1593_v60 = vmul.f32 0.5, %v1590_v20 }
 0x6ca   :  { %v1597_v42 = vand.u32 2147483647, %v1594_v44  ;;  %vm1595_vm11 = vcmp.lt.f32.partialorder %v1594_v44, 0.0 }
 0x6cb   :  { %v1596_v2 = vsel %vm1595_vm11, -1.0, %v4634_v46 }
 0x6cc   :  { %v1598_v51 = vmul.f32 0.3275911, %v1597_v42  ;;  %v1610_v30 = vsub.f32 0.0, %v1597_v42 }
 0x6ce   :  { %v1599_v56 = vadd.f32 1.0, %v1598_v51  ;;  %v1611_v48 = vmul.f32 %v1610_v30, %v1597_v42 }
 0x6d0   :  { %4538 = vrcp.f32 %v1599_v56  ;;  %v1612_v10 = vmul.f32 1.442695, %v1611_v48 }
 0x6d2   :  { %4540 = vpow2.f32 %v1612_v10 }
 0x6dd   :  { %v4539_v4 = vpop.eup %4538 }
 0x6de   :  { %v1601_v47 = vmul.f32 1.0614054, %v4539_v4 }
 0x6df   :  { %v4541_v9 = vpop.eup %4540 }
 0x6e0   :  { %v1602_v8 = vadd.f32 -1.4531521, %v1601_v47 }
 0x6e2   :  { %v1603_v5 = vmul.f32 %v4539_v4, %v1602_v8 }
 0x6e4   :  { %v1604_v27 = vadd.f32 1.4214138, %v1603_v5 }
 0x6e6   :  { %v1605_v6 = vmul.f32 %v4539_v4, %v1604_v27 }
 0x6e8   :  { %v1606_v12 = vadd.f32 -0.28449672, %v1605_v6 }
 0x6ea   :  { %v1607_v49 = vmul.f32 %v4539_v4, %v1606_v12 }
 0x6ec   :  { %v1608_v45 = vadd.f32 0.2548296, %v1607_v49 }
 0x6ee   :  { %v1609_v35 = vmul.f32 %v4539_v4, %v1608_v45 }
 0x6f0   :  { %v1614_v13 = vmul.f32 %v4541_v9, %v1609_v35 }
 0x6f2   :  { %v1615_v52 = vsub.f32 1.0, %v1614_v13 }
 0x6f4   :  { %v1616_v16 = vmul.f32 %v1615_v52, %v1596_v2 }
 0x6f6   :  { %v1617_v23 = vadd.f32 1.0, %v1616_v16 }
 0x6f8   :  { %v1618_v58 = vmul.f32 %v1617_v23, %v1593_v60 }
 0x6fa   :  { %4265 = vmatmul.mubr.msk.f32.vlgmr.msra.gmra.mxu1 %vm225_vm0, %v1618_v58 }
 0x7ba   :  { %v1697_v1 = vpop.f32.mrf.mxu1 }
 0x7bb   :  { %v1698_v25 = vadd.f32 %v3908_v24, %v1697_v1 }
 0x7bc   :  { %v4266_v54 = vpop.f32.mrf.mxu1 }
 0x7bd   :  { %4267 = vmatprep.subr.msk.mxu0 %vm1712_vm13, %v1698_v25 }
 0x7be   :  { %4268 = vmatpush3.msk.msra.mxu0 %vm1712_vm13, %v1698_v25 }
 0x7bf   :  { %4270 = vmatmul.mubr.msk.f32.vlgmr.msra.gmra.mxu0 %vm1705_vm12, %v1702_v53  ;;  %4272 = vmatprep.subr.mxu0 %v1796_v39 }
 0x7c0   :  { %4273 = vmatpush3.msra.mxu0 %v1796_v39 }
 0x7c1   :  { %4274 = vmatprep.subr.mxu0 %v1795_v29 }
 0x7c2   :  { %4275 = vmatpush3.msra.mxu0 %v1795_v29 }
 0x7c3   :  { %4276 = vmatprep.subr.mxu0 %v1794_v15 }
 0x7c4   :  { %4277 = vmatpush3.msra.mxu0 %v1794_v15 }
 0x7c5   :  { %4278 = vmatprep.subr.mxu0 %v1793_v28 }
 0x7c6   :  { %4279 = vmatpush3.msra.mxu0 %v1793_v28 }
 0x87f   :  { %v4271_v26 = vpop.f32.mrf.mxu0 }
 0x880   :  { %v5064_v19 = vadd.f32 %v4271_v26, %v1704_v34 }
 0x881   :  { %v1782_v33 = vpop.f32.mrf.mxu0 }
 0x882   :  { %v5062_v0 = vadd.f32 %v1782_v33, %v1703_v32 }
 0x884   :  { %4280 = vmatprep.mubr.msk.f32.mxu0 %vm225_vm0, %v5062_v0 }
 0x885   :  { %4281 = vmatmul.mubr.msk.f32.vlgmr.msra.gmra.mxu0 %vm225_vm0, %v5064_v19 }
 0x945   :  { %v4282_v7 = vpop.f32.mrf.mxu0 }
 0x946   :  { %v5070_v36 = vadd.f32 %v4282_v7, %v3913_v31 }
 0x947   :  { %v1894_v62 = vpop.f32.mrf.mxu0 }
 0x948   :  { %v5072_v38 = vadd.f32 %v3913_v31, %v1894_v62  ;;  %1907 = vrot.lane.b32.xlu1 %v5070_v36, %s4638_s0 }
 0x94a   :  { %1905 = vrot.lane.b32.xlu0 %v5072_v38, %s4638_s0  ;;  %4287 = vmatprep.mubr.msk.f32.mxu1 %vm1909_vm14, %v5072_v38 }
 0x94c   :  { %2112 = vrot.lane.b32.xlu1 %v5070_v36, %s4639_s25 }
 0x94e   :  { %2110 = vrot.lane.b32.xlu0 %v5072_v38, %s4639_s25 }
 0x950   :  { %2106 = vrot.lane.b32.xlu1 %v5072_v38, %s4640_s26 }
 0x952   :  { %2108 = vrot.lane.b32.xlu0 %v5070_v36, %s4640_s26 }
 0x9ba   :  { %v1908_v3 = vpop.permute.xlu1 %1907 }
 0x9bb   :  { %4283 = vmatprep.subr.msk.mxu1 %vm1909_vm14, %v1908_v3 }
 0x9bc   :  { %4284 = vmatpush3.xpose.msk.msra.mxu1 %vm1909_vm14, %v1908_v3  ;;  %v1906_v11 = vpop.permute.xlu0 %1905  ;;  %v1798_v3 = vld [vmem:[#allocation2 + $0x1e8] sm:$0xff] }
 0x9bd   :  { %4285 = vmatprep.subr.msk.mxu1 %vm1909_vm14, %v1906_v11 }
 0x9be   :  { %v2113_v40 = vpop.permute.xlu1 %2112 }
 0x9c0   :  { %4286 = vmatpush3.xpose.msk.msra.mxu1 %vm1909_vm14, %v1906_v11  ;;  %v2111_v41 = vpop.permute.xlu0 %2110  ;;  %v1801_v11 = vld [vmem:[#allocation2 + $0x200] sm:$0xff] }
 0x9c1   :  { %4297 = vmatprep.subr.msk.mxu1 %vm1909_vm14, %v2113_v40 }
 0x9c2   :  { %v2107_v17 = vpop.permute.xlu1 %2106 }
 0x9c3   :  { %4288 = vmatmul.mubr.msk.f32.vlgmr.msra.gmra.mxu1 %vm1909_vm14, %v5070_v36 }
 0x9c4   :  { %4298 = vmatpush3.xpose.msk.msra.mxu1 %vm1909_vm14, %v2113_v40  ;;  %4301 = vmatprep.mubr.msk.f32.mxu1 %vm1909_vm14, %v2107_v17  ;;  %v2109_v22 = vpop.permute.xlu0 %2108  ;;  %v1800_v40 = vld [vmem:[#allocation2 + $0x1f8] sm:$0xff] }
 0x9c5   :  { %4299 = vmatprep.subr.msk.mxu1 %vm1909_vm14, %v2111_v41 }
 0x9c8   :  { %4300 = vmatpush3.xpose.msk.msra.mxu1 %vm1909_vm14, %v2111_v41 }
 0x9cb   :  { %4302 = vmatmul.mubr.msk.f32.vlgmr.msra.gmra.mxu1 %vm1909_vm14, %v2109_v22 }
 0xa83   :  { %v4289_v14 = vpop.f32.mrf.mxu1 }
 0xa84   :  { %v1994_v43 = vmul.f32 0.25, %v4289_v14 }
 0xa85   :  { %v1984_v21 = vpop.f32.mrf.mxu1 }
 0xa86   :  { %v1993_v57 = vmul.f32 0.25, %v1984_v21  ;;  %v1996_v55 = vadd.f32 %v1994_v43, %v5100_v50  ;;  %v3932_v21 = vld [vmem:[#allocation2 + $0x208] ss:$0 sm:$0xff] }
 0xa88   :  { %v2000_v18 = vsel %vm1909_vm14, %v1996_v55, -inf  ;;  %v1995_v61 = vadd.f32 %v1993_v57, %v5102_v37 }
 0xa89   :  { %2001 = vmax.xlane.f32.xlu0 %v2000_v18 }
 0xa8a   :  { %v1997_v20 = vsel %vm1909_vm14, %v1995_v61, -inf }
 0xa8b   :  { %v4303_v63 = vpop.f32.mrf.mxu1  ;;  %1998 = vmax.xlane.f32.xlu1 %v1997_v20 }
 0xa8c   :  { %v2198_v44 = vmul.f32 0.25, %v4303_v63 }
 0xa8d   :  { %v2188_v42 = vpop.f32.mrf.mxu1 }
 0xa8e   :  { %v2197_v51 = vmul.f32 0.25, %v2188_v42  ;;  %v2200_v56 = vadd.f32 %v2198_v44, %v5100_v50 }
 0xa90   :  { %v2204_v30 = vsel %vm1909_vm14, %v2200_v56, -inf  ;;  %v2199_v48 = vadd.f32 %v2197_v51, %v5102_v37 }
 0xa91   :  { %2205 = vmax.xlane.f32.xlu1 %v2204_v30 }
 0xa92   :  { %v2201_v4 = vsel %vm1909_vm14, %v2199_v48, -inf }
 0xa93   :  { %2202 = vmax.xlane.f32.xlu0 %v2201_v4 }
 0xaa2   :  { %2019 = vrot.lane.b32.xlu1 %v5072_v38, %s4641_s27 }
 0xaa9   :  { %2021 = vrot.lane.b32.xlu0 %v5070_v36, %s4641_s27 }
 0xb12   :  { %v2002_v47 = vpop.xlane.xlu0 %2001 }
 0xb13   :  { %v2004_v10 = vsub.f32 %v1996_v55, %v2002_v47 }
 0xb14   :  { %v1999_v8 = vpop.xlane.xlu1 %1998 }
 0xb15   :  { %v2007_v5 = vmul.f32 1.442695, %v2004_v10  ;;  %v2003_v27 = vsub.f32 %v1995_v61, %v1999_v8 }
 0xb17   :  { %4542 = vpow2.f32 %v2007_v5  ;;  %v2005_v6 = vmul.f32 1.442695, %v2003_v27 }
 0xb19   :  { %4544 = vpow2.f32 %v2005_v6 }
 0xb1a   :  { %v2206_v12 = vpop.xlane.xlu1 %2205 }
 0xb1b   :  { %v2208_v49 = vsub.f32 %v2200_v56, %v2206_v12 }
 0xb1c   :  { %v2203_v45 = vpop.xlane.xlu0 %2202 }
 0xb1d   :  { %v2211_v35 = vmul.f32 1.442695, %v2208_v49  ;;  %v2207_v9 = vsub.f32 %v2199_v48, %v2203_v45  ;;  %v1806_v49 = vld [vmem:[#allocation2 + $0x228] sm:$0xff]  ;;  %v1804_v45 = vld [vmem:[#allocation2 + $0x218] sm:$0xff] }
 0xb1e   :  { %v2020_v2 = vpop.permute.xlu1 %2019 }
 0xb1f   :  { %4546 = vpow2.f32 %v2211_v35  ;;  %v2209_v13 = vmul.f32 1.442695, %v2207_v9  ;;  %v1803_v35 = vld [vmem:[#allocation2 + $0x210] sm:$0xff] }
 0xb20   :  { %v2022_v52 = vpop.permute.xlu0 %2021 }
 0xb21   :  { %4548 = vpow2.f32 %v2209_v13  ;;  %4290 = vmatprep.subr.mxu0 %v2022_v52 }
 0xb22   :  { %4291 = vmatpush3.msra.mxu0 %v2022_v52 }
 0xb23   :  { %4292 = vmatprep.subr.mxu0 %v2020_v2 }
 0xb24   :  { %v4543_v16 = vpop.eup %4542  ;;  %4293 = vmatpush3.msra.mxu0 %v2020_v2 }
 0xb25   :  { %v2012_v60 = vsel %vm1909_vm14, %v4543_v16, 0.0 }
 0xb26   :  { %v4545_v23 = vpop.eup %4544  ;;  %2013 = vadd.xlane.f32.xlu1 %v2012_v60 }
 0xb27   :  { %v2009_v58 = vsel %vm1909_vm14, %v4545_v23, 0.0 }
 0xb28   :  { %2010 = vadd.xlane.f32.xlu0 %v2009_v58 }
 0xb2c   :  { %v4547_v59 = vpop.eup %4546 }
 0xb2d   :  { %v2216_v24 = vsel %vm1909_vm14, %v4547_v59, 0.0 }
 0xb2e   :  { %v4549_v1 = vpop.eup %4548  ;;  %2217 = vadd.xlane.f32.xlu1 %v2216_v24  ;;  %v5141_v24 = vld [vmem:[#allocation2 + $0x280] sm:$0xf] }
 0xb2f   :  { %v2213_v25 = vsel %vm1909_vm14, %v4549_v1, 0.0 }
 0xb30   :  { %2214 = vadd.xlane.f32.xlu0 %v2213_v25 }
 0xb3f   :  { %2225 = vrot.lane.b32.xlu1 %v5070_v36, %s4642_s28 }
 0xb46   :  { %2223 = vrot.lane.b32.xlu0 %v5072_v38, %s4642_s28  ;;  %v1799_v38 = vld [vmem:[#allocation2 + $0x1f0] sm:$0xff] }
 0xb47   :  { %4318 = vmatprep.subr.mxu1 %v1799_v38 }
 0xb48   :  { %4319 = vmatpush3.msra.mxu1 %v1799_v38  ;;  %v1810_v38 = vld [vmem:[#allocation2 + $0x248] sm:$0xff] }
 0xb49   :  { %4320 = vmatprep.subr.mxu1 %v1798_v3 }
 0xb4a   :  { %4321 = vmatpush3.msra.mxu1 %v1798_v3  ;;  %v1809_v3 = vld [vmem:[#allocation2 + $0x240] sm:$0xff] }
 0xbaf   :  { %v2014_v54 = vpop.xlane.xlu1 %2013 }
 0xbb0   :  { %4550 = vrcp.f32 %v2014_v54 }
 0xbb1   :  { %v2011_v53 = vpop.xlane.xlu0 %2010 }
 0xbb2   :  { %4552 = vrcp.f32 %v2011_v53 }
 0xbb7   :  { %v2218_v39 = vpop.xlane.xlu1 %2217 }
 0xbb8   :  { %4554 = vrcp.f32 %v2218_v39 }
 0xbb9   :  { %v2215_v29 = vpop.xlane.xlu0 %2214 }
 0xbba   :  { %4556 = vrcp.f32 %v2215_v29 }
 0xbbb   :  { %v2226_v15 = vpop.permute.xlu1 %2225 }
 0xbbc   :  { %4304 = vmatprep.subr.mxu0 %v2226_v15 }
 0xbbd   :  { %v4551_v28 = vpop.eup %4550  ;;  %v2224_v33 = vpop.permute.xlu0 %2223 }
 0xbbe   :  { %v2018_v34 = vmul.f32 %v4551_v28, %v4543_v16 }
 0xbbf   :  { %v4553_v26 = vpop.eup %4552 }
 0xbc0   :  { %v2017_v32 = vmul.f32 %v4553_v26, %v4545_v23  ;;  %v2507_v23 = vlaneseq }
 0xbc2   :  { %4294 = vmatprep.mubr.msk.f32.mxu0 %vm1909_vm14, %v2017_v32  ;;  %v5138_v58 = vshrl.u32 %v2507_v23, 7 }
 0xbc3   :  { %4295 = vmatmul.mubr.msk.f32.vlgmr.msra.gmra.mxu0 %vm1909_vm14, %v2018_v34 }
 0xbc4   :  { %4305 = vmatpush3.msra.mxu0 %v2226_v15  ;;  %v2515_v54 = vsub.s32 1, %v5138_v58 }
 0xbc5   :  { %4306 = vmatprep.subr.mxu0 %v2224_v33  ;;  %v4555_v31 = vpop.eup %4554 }
 0xbc6   :  { %4307 = vmatpush3.msra.mxu0 %v2224_v33  ;;  %v2222_v62 = vmul.f32 %v4555_v31, %v4547_v59  ;;  %v2509_v59 = vsub.s32 0, %v5138_v58  ;;  %v2516_v28 = vrot.slane %v5141_v24, %v2515_v54  ;;  %v1815_v33 = vld [vmem:[#allocation2 + $0x270] sm:$0xff]  ;;  %v1814_v31 = vld [vmem:[#allocation2 + $0x268] sm:$0xff] }
 0xbc7   :  { %v4557_v7 = vpop.eup %4556  ;;  %4311 = vmatprep.subr.mxu0 %v1801_v11  ;;  %4336 = vmatprep.subr.mxu1 %v1815_v33 }
 0xbc8   :  { %v2221_v36 = vmul.f32 %v4557_v7, %v4549_v1  ;;  %v2510_v25 = vrot.slane %v5141_v24, %v2509_v59  ;;  %v1813_v7 = vld [vmem:[#allocation2 + $0x260] sm:$0xff] }
 0xbca   :  { %4308 = vmatprep.mubr.msk.f32.mxu0 %vm1909_vm14, %v2221_v36  ;;  %v1812_v36 = vld [vmem:[#allocation2 + $0x258] sm:$0xff] }
 0xbcb   :  { %4309 = vmatmul.mubr.msk.f32.vlgmr.msra.gmra.mxu0 %vm1909_vm14, %v2222_v62  ;;  %v1811_v62 = vld [vmem:[#allocation2 + $0x250] sm:$0xff] }
 0xbcc   :  { %4312 = vmatpush3.msra.mxu0 %v1801_v11  ;;  %v1808_v11 = vld [vmem:[#allocation2 + $0x238] sm:$0xff] }
 0xbcd   :  { %4313 = vmatprep.subr.mxu0 %v1800_v40 }
 0xbce   :  { %4314 = vmatpush3.msra.mxu0 %v1800_v40  ;;  %v3933_v40 = vld [vmem:[#allocation2 + $0x230] ss:$0 sm:$0xff] }
 0xbcf   :  { %4325 = vmatprep.subr.mxu0 %v1806_v49 }
 0xc83   :  { %v4296_v17 = vpop.f32.mrf.mxu0 }
 0xc85   :  { %v2097_v41 = vpop.f32.mrf.mxu0 }
 0xc86   :  { %4322 = vmatprep.mubr.msk.f32.mxu1 %vm1909_vm14, %v2097_v41 }
 0xc87   :  { %4323 = vmatmul.mubr.msk.f32.vlgmr.msra.gmra.mxu1 %vm1909_vm14, %v4296_v17 }
 0xc88   :  { %4337 = vmatpush3.msra.mxu1 %v1815_v33 }
 0xc89   :  { %4338 = vmatprep.subr.mxu1 %v1814_v31 }
 0xc8a   :  { %4339 = vmatpush3.msra.mxu1 %v1814_v31 }
 0xc8b   :  { %v4310_v22 = vpop.f32.mrf.mxu0  ;;  %4340 = vmatprep.subr.mxu1 %v1813_v7 }
 0xc8c   :  { %4341 = vmatpush3.msra.mxu1 %v1813_v7 }
 0xc8d   :  { %v2301_v14 = vpop.f32.mrf.mxu0  ;;  %4342 = vmatprep.subr.mxu1 %v1812_v36 }
 0xc8e   :  { %4315 = vmatprep.mubr.msk.f32.mxu0 %vm1909_vm14, %v2301_v14  ;;  %4343 = vmatpush3.msra.mxu1 %v1812_v36 }
 0xc8f   :  { %4316 = vmatmul.mubr.msk.f32.vlgmr.msra.gmra.mxu0 %vm1909_vm14, %v4310_v22  ;;  %4344 = vmatprep.subr.mxu1 %v1811_v62 }
 0xc90   :  { %4326 = vmatpush3.msra.mxu0 %v1806_v49  ;;  %4345 = vmatpush3.msra.mxu1 %v1811_v62 }
 0xc91   :  { %4346 = vmatprep.subr.mxu1 %v1810_v38 }
 0xc92   :  { %4347 = vmatpush3.msra.mxu1 %v1810_v38 }
 0xc93   :  { %4348 = vmatprep.subr.mxu1 %v1809_v3 }
 0xc94   :  { %4349 = vmatpush3.msra.mxu1 %v1809_v3 }
 0xc95   :  { %4350 = vmatprep.subr.mxu1 %v1808_v11 }
 0xc96   :  { %4351 = vmatpush3.msra.mxu1 %v1808_v11 }
 0xd47   :  { %v4324_v43 = vpop.f32.mrf.mxu1 }
 0xd49   :  { %v2463_v18 = vpop.f32.mrf.mxu1 }
 0xd4f   :  { %v4317_v57 = vpop.f32.mrf.mxu0 }
 0xd50   :  { %v2469_v55 = vadd.f32 %v4324_v43, %v4317_v57 }
 0xd51   :  { %v2382_v61 = vpop.f32.mrf.mxu0 }
 0xd52   :  { %v2477_v20 = vadd.f32 %v3932_v21, %v2469_v55  ;;  %v2464_v63 = vadd.f32 %v2463_v18, %v2382_v61 }
 0xd54   :  { %v2476_v44 = vadd.f32 %v3932_v21, %v2464_v63  ;;  %v2479_v42 = vadd.f32 %v2477_v20, %v5064_v19 }
 0xd56   :  { %v2483_v51 = vsel %vm225_vm0, %v2479_v42, 0.0  ;;  %v2478_v56 = vadd.f32 %v2476_v44, %v5062_v0  ;;  %v1805_v0 = vld [vmem:[#allocation2 + $0x220] sm:$0xff] }
 0xd57   :  { %2484 = vadd.xlane.f32.xlu0 %v2483_v51  ;;  %4327 = vmatprep.subr.mxu0 %v1805_v0 }
 0xd58   :  { %v2480_v30 = vsel %vm225_vm0, %v2478_v56, 0.0  ;;  %4328 = vmatpush3.msra.mxu0 %v1805_v0 }
 0xd59   :  { %2481 = vadd.xlane.f32.xlu1 %v2480_v30  ;;  %4329 = vmatprep.subr.mxu0 %v1804_v45 }
 0xd5a   :  { %4330 = vmatpush3.msra.mxu0 %v1804_v45 }
 0xd5b   :  { %4331 = vmatprep.subr.mxu0 %v1803_v35 }
 0xd5c   :  { %4332 = vmatpush3.msra.mxu0 %v1803_v35 }
 0xde0   :  { %v2485_v48 = vpop.xlane.xlu0 %2484 }
 0xde1   :  { %v2488_v4 = vmul.f32 0.03125, %v2485_v48 }
 0xde2   :  { %v2482_v47 = vpop.xlane.xlu1 %2481 }
 0xde3   :  { %v2490_v10 = vsub.f32 %v2479_v42, %v2488_v4  ;;  %v2487_v8 = vmul.f32 0.03125, %v2482_v47 }
 0xde5   :  { %v2489_v5 = vsub.f32 %v2478_v56, %v2487_v8  ;;  %v2492_v27 = vmul.f32 %v2490_v10, %v2490_v10 }
 0xde7   :  { %v2496_v6 = vsel %vm225_vm0, %v2492_v27, 0.0  ;;  %v2491_v12 = vmul.f32 %v2489_v5, %v2489_v5 }
 0xde8   :  { %2497 = vadd.xlane.f32.xlu1 %v2496_v6 }
 0xde9   :  { %v2493_v19 = vsel %vm225_vm0, %v2491_v12, 0.0 }
 0xdea   :  { %2494 = vadd.xlane.f32.xlu0 %v2493_v19 }
 0xe71   :  { %v2498_v9 = vpop.xlane.xlu1 %2497 }
 0xe72   :  { %v2500_v13 = vmul.f32 0.03125, %v2498_v9 }
 0xe73   :  { %v2495_v52 = vpop.xlane.xlu0 %2494 }
 0xe74   :  { %v2502_v2 = vadd.f32 1e-05, %v2500_v13  ;;  %v2499_v16 = vmul.f32 0.03125, %v2495_v52 }
 0xe76   :  { %4558 = vrsqrt.f32 %v2502_v2  ;;  %v2501_v60 = vadd.f32 1e-05, %v2499_v16 }
 0xe78   :  { %4560 = vrsqrt.f32 %v2501_v60 }
 0xe83   :  { %v4559_v1 = vpop.eup %4558 }
 0xe84   :  { %v2506_v53 = vmul.f32 %v4559_v1, %v2490_v10 }
 0xe85   :  { %v4561_v39 = vpop.eup %4560 }
 0xe86   :  { %v2505_v29 = vmul.f32 %v4561_v39, %v2489_v5  ;;  %v2512_v15 = vmul.f32 %v2510_v25, %v2506_v53 }
 0xe88   :  { %v2511_v26 = vmul.f32 %v2510_v25, %v2505_v29  ;;  %v5152_v34 = vadd.f32 %v2516_v28, %v2512_v15 }
 0xe8a   :  { %v5150_v32 = vadd.f32 %v2516_v28, %v2511_v26 }
 0xe8c   :  { %4333 = vmatprep.mubr.msk.f32.mxu0 %vm225_vm0, %v5150_v32 }
 0xe8d   :  { %4334 = vmatmul.mubr.msk.f32.vlgmr.msra.gmra.mxu0 %vm225_vm0, %v5152_v34 }
 0xf4d   :  { %v4335_v17 = vpop.f32.mrf.mxu0 }
 0xf4e   :  { %v2601_v41 = vadd.f32 %v4335_v17, %v3933_v40 }
 0xf4f   :  { %v2595_v22 = vpop.f32.mrf.mxu0 }
 0xf50   :  { %v2607_v14 = vmul.f32 0.70710677, %v2601_v41  ;;  %v2596_v43 = vadd.f32 %v3933_v40, %v2595_v22  ;;  %v2605_v38 = vmul.f32 0.5, %v2601_v41  ;;  %v3936_v40 = vld [vmem:[#allocation2 + $0x278] ss:$0 sm:$0xff] }
 0xf52   :  { %v2613_v21 = vand.u32 2147483647, %v2607_v14  ;;  %v2606_v57 = vmul.f32 0.70710677, %v2596_v43  ;;  %vm2609_vm15 = vcmp.lt.f32.partialorder %v2607_v14, 0.0  ;;  %v2604_v36 = vmul.f32 0.5, %v2596_v43 }
 0xf53   :  { %v2611_v29 = vsel %vm2609_vm15, -1.0, %v4634_v46 }
 0xf54   :  { %v2615_v55 = vmul.f32 0.3275911, %v2613_v21  ;;  %v2612_v18 = vand.u32 2147483647, %v2606_v57  ;;  %v2639_v44 = vsub.f32 0.0, %v2613_v21  ;;  %vm2608_vm3 = vcmp.lt.f32.partialorder %v2606_v57, 0.0 }
 0xf55   :  { %v2610_v33 = vsel %vm2608_vm3, -1.0, %v4634_v46 }
 0xf56   :  { %v2617_v61 = vadd.f32 1.0, %v2615_v55  ;;  %v2614_v20 = vmul.f32 0.3275911, %v2612_v18  ;;  %v2638_v42 = vsub.f32 0.0, %v2612_v18  ;;  %v2641_v51 = vmul.f32 %v2639_v44, %v2613_v21 }
 0xf58   :  { %4562 = vrcp.f32 %v2617_v61  ;;  %v2616_v63 = vadd.f32 1.0, %v2614_v20  ;;  %v2640_v30 = vmul.f32 %v2638_v42, %v2612_v18  ;;  %v2644_v4 = vmul.f32 1.442695, %v2641_v51 }
 0xf5a   :  { %4564 = vrcp.f32 %v2616_v63  ;;  %v2642_v5 = vmul.f32 1.442695, %v2640_v30 }
 0xf5b   :  { %4566 = vpow2.f32 %v2644_v4  ;;  %v2782_v4 = vld [vmem:[#allocation2 + $0x290] sm:$0xff] }
 0xf5c   :  { %4568 = vpow2.f32 %v2642_v5 }
 0xf65   :  { %v4563_v56 = vpop.eup %4562 }
 0xf66   :  { %v2621_v48 = vmul.f32 1.0614054, %v4563_v56 }
 0xf67   :  { %v4565_v47 = vpop.eup %4564 }
 0xf68   :  { %v2623_v10 = vadd.f32 -1.4531521, %v2621_v48  ;;  %v2620_v8 = vmul.f32 1.0614054, %v4565_v47  ;;  %v4567_v60 = vpop.eup %4566  ;;  %v2784_v48 = vld [vmem:[#allocation2 + $0x2a0] sm:$0xff] }
 0xf69   :  { %v4569_v53 = vpop.eup %4568  ;;  %4355 = vmatprep.subr.mxu0 %v2784_v48 }
 0xf6a   :  { %v2625_v27 = vmul.f32 %v4563_v56, %v2623_v10  ;;  %v2622_v6 = vadd.f32 -1.4531521, %v2620_v8  ;;  %4356 = vmatpush3.msra.mxu0 %v2784_v48 }
 0xf6c   :  { %v2627_v12 = vadd.f32 1.4214138, %v2625_v27  ;;  %v2624_v19 = vmul.f32 %v4565_v47, %v2622_v6 }
 0xf6e   :  { %v2629_v49 = vmul.f32 %v4563_v56, %v2627_v12  ;;  %v2626_v0 = vadd.f32 1.4214138, %v2624_v19  ;;  %v2771_v19 = vsub.s32 2, %v5138_v58 }
 0xf70   :  { %v2631_v45 = vadd.f32 -0.28449672, %v2629_v49  ;;  %v2628_v35 = vmul.f32 %v4565_v47, %v2626_v0  ;;  %v2772_v0 = vrot.slane %v5141_v24, %v2771_v19 }
 0xf72   :  { %v2633_v9 = vmul.f32 %v4563_v56, %v2631_v45  ;;  %v2630_v13 = vadd.f32 -0.28449672, %v2628_v35  ;;  %v2777_v45 = vsub.s32 3, %v5138_v58 }
 0xf74   :  { %v2635_v52 = vadd.f32 0.2548296, %v2633_v9  ;;  %v2632_v2 = vmul.f32 %v4565_v47, %v2630_v13 }
 0xf76   :  { %v2637_v16 = vmul.f32 %v4563_v56, %v2635_v52  ;;  %v2634_v23 = vadd.f32 0.2548296, %v2632_v2  ;;  %v2778_v2 = vrot.slane %v5141_v24, %v2777_v45 }
 0xf78   :  { %v2647_v1 = vmul.f32 %v4567_v60, %v2637_v16  ;;  %v2636_v25 = vmul.f32 %v4565_v47, %v2634_v23  ;;  %v2781_v47 = vld [vmem:[#allocation2 + $0x288] sm:$0xff] }
 0xf7a   :  { %v2649_v39 = vsub.f32 1.0, %v2647_v1  ;;  %v2646_v15 = vmul.f32 %v4569_v53, %v2636_v25  ;;  %v3939_v1 = vld [vmem:[#allocation2 + $0x2a8] ss:$0 sm:$0xff] }
 0xf7c   :  { %v2651_v28 = vmul.f32 %v2649_v39, %v2611_v29  ;;  %v2648_v26 = vsub.f32 1.0, %v2646_v15 }
 0xf7e   :  { %v2650_v31 = vmul.f32 %v2648_v26, %v2610_v33  ;;  %v2653_v7 = vadd.f32 1.0, %v2651_v28 }
 0xf80   :  { %v2652_v62 = vadd.f32 1.0, %v2650_v31  ;;  %v2655_v11 = vmul.f32 %v2653_v7, %v2605_v38 }
 0xf82   :  { %v2654_v3 = vmul.f32 %v2652_v62, %v2604_v36 }
 0xf84   :  { %4352 = vmatprep.mubr.msk.f32.mxu1 %vm594_vm2, %v2654_v3 }
 0xf85   :  { %4353 = vmatmul.mubr.msk.f32.vlgmr.msra.gmra.mxu1 %vm594_vm2, %v2655_v11 }
0x1045   :  { %v4354_v17 = vpop.f32.mrf.mxu1 }
0x1046   :  { %v2738_v22 = vadd.f32 %v4354_v17, %v3936_v40 }
0x1047   :  { %v2732_v14 = vpop.f32.mrf.mxu1 }
0x1048   :  { %v2733_v21 = vadd.f32 %v3936_v40, %v2732_v14  ;;  %v2742_v57 = vadd.f32 %v2738_v22, %v5152_v34 }
0x104a   :  { %v2746_v55 = vsel %vm225_vm0, %v2742_v57, 0.0  ;;  %v2741_v18 = vadd.f32 %v2733_v21, %v5150_v32  ;;  %v2783_v32 = vld [vmem:[#allocation2 + $0x298] sm:$0xff] }
0x104b   :  { %2747 = vadd.xlane.f32.xlu1 %v2746_v55  ;;  %4357 = vmatprep.subr.mxu0 %v2783_v32 }
0x104c   :  { %v2743_v41 = vsel %vm225_vm0, %v2741_v18, 0.0  ;;  %4358 = vmatpush3.msra.mxu0 %v2783_v32  ;;  %v2787_v32 = vld [vmem:[#allocation2 + $0x2b8] sm:$0xff] }
0x104d   :  { %2744 = vadd.xlane.f32.xlu0 %v2743_v41  ;;  %4359 = vmatprep.subr.mxu0 %v2782_v4 }
0x104e   :  { %4360 = vmatpush3.msra.mxu0 %v2782_v4  ;;  %v2786_v4 = vld [vmem:[#allocation2 + $0x2b0] sm:$0xff] }
0x104f   :  { %4361 = vmatprep.subr.mxu0 %v2781_v47 }
0x1050   :  { %4362 = vmatpush3.msra.mxu0 %v2781_v47 }
0x10d4   :  { %v2748_v43 = vpop.xlane.xlu1 %2747 }
0x10d5   :  { %v2750_v61 = vmul.f32 0.03125, %v2748_v43 }
0x10d6   :  { %v2745_v20 = vpop.xlane.xlu0 %2744 }
0x10d7   :  { %v2752_v63 = vsub.f32 %v2742_v57, %v2750_v61  ;;  %v2749_v44 = vmul.f32 0.03125, %v2745_v20 }
0x10d9   :  { %v2751_v42 = vsub.f32 %v2741_v18, %v2749_v44  ;;  %v2754_v51 = vmul.f32 %v2752_v63, %v2752_v63 }
0x10db   :  { %v2758_v56 = vsel %vm225_vm0, %v2754_v51, 0.0  ;;  %v2753_v30 = vmul.f32 %v2751_v42, %v2751_v42 }
0x10dc   :  { %2759 = vadd.xlane.f32.xlu1 %v2758_v56 }
0x10dd   :  { %v2755_v34 = vsel %vm225_vm0, %v2753_v30, 0.0 }
0x10de   :  { %2756 = vadd.xlane.f32.xlu0 %v2755_v34 }
0x1165   :  { %v2760_v10 = vpop.xlane.xlu1 %2759 }
0x1166   :  { %v2762_v8 = vmul.f32 0.03125, %v2760_v10 }
0x1167   :  { %v2757_v5 = vpop.xlane.xlu0 %2756 }
0x1168   :  { %v2764_v27 = vadd.f32 1e-05, %v2762_v8  ;;  %v2761_v6 = vmul.f32 0.03125, %v2757_v5 }
0x116a   :  { %4570 = vrsqrt.f32 %v2764_v27  ;;  %v2763_v12 = vadd.f32 1e-05, %v2761_v6 }
0x116c   :  { %4572 = vrsqrt.f32 %v2763_v12 }
0x1177   :  { %v4571_v49 = vpop.eup %4570 }
0x1178   :  { %v2768_v35 = vmul.f32 %v4571_v49, %v2752_v63 }
0x1179   :  { %v4573_v9 = vpop.eup %4572 }
0x117a   :  { %v2767_v13 = vmul.f32 %v4573_v9, %v2751_v42  ;;  %v2774_v52 = vmul.f32 %v2772_v0, %v2768_v35 }
0x117c   :  { %v2773_v16 = vmul.f32 %v2772_v0, %v2767_v13  ;;  %v5178_v23 = vadd.f32 %v2778_v2, %v2774_v52 }
0x117e   :  { %v5176_v60 = vadd.f32 %v2778_v2, %v2773_v16 }
0x1180   :  { %4363 = vmatprep.mubr.msk.f32.mxu0 %vm225_vm0, %v5176_v60 }
0x1181   :  { %4364 = vmatmul.mubr.msk.f32.vlgmr.msra.gmra.mxu0 %vm225_vm0, %v5178_v23 }
0x1241   :  { %v4365_v25 = vpop.f32.mrf.mxu0 }
0x1242   :  { %v5184_v53 = vadd.f32 %v4365_v25, %v3939_v1 }
0x1243   :  { %v2882_v39 = vpop.f32.mrf.mxu0 }
0x1244   :  { %v5186_v29 = vadd.f32 %v3939_v1, %v2882_v39  ;;  %2895 = vrot.lane.b32.xlu0 %v5184_v53, %s4638_s0 }
0x1246   :  { %2893 = vrot.lane.b32.xlu1 %v5186_v29, %s4638_s0  ;;  %4370 = vmatprep.mubr.msk.f32.mxu0 %vm1909_vm14, %v5186_v29 }
0x12b6   :  { %v2896_v24 = vpop.permute.xlu0 %2895 }
0x12b7   :  { %4366 = vmatprep.subr.msk.mxu0 %vm1909_vm14, %v2896_v24 }
0x12b8   :  { %4367 = vmatpush3.xpose.msk.msra.mxu0 %vm1909_vm14, %v2896_v24  ;;  %v2894_v15 = vpop.permute.xlu1 %2893 }
0x12b9   :  { %4368 = vmatprep.subr.msk.mxu0 %vm1909_vm14, %v2894_v15 }
0x12bc   :  { %4369 = vmatpush3.xpose.msk.msra.mxu0 %vm1909_vm14, %v2894_v15 }
0x12bf   :  { %4371 = vmatmul.mubr.msk.f32.vlgmr.msra.gmra.mxu0 %vm1909_vm14, %v5184_v53 }
0x137f   :  { %v4372_v28 = vpop.f32.mrf.mxu0 }
0x1380   :  { %v2981_v26 = vmul.f32 0.25, %v4372_v28 }
0x1381   :  { %v2971_v33 = vpop.f32.mrf.mxu0 }
0x1382   :  { %v2980_v31 = vmul.f32 0.25, %v2971_v33  ;;  %v2983_v7 = vadd.f32 %v2981_v26, %v5100_v50 }
0x1384   :  { %v2987_v36 = vsel %vm1909_vm14, %v2983_v7, -inf  ;;  %v2982_v62 = vadd.f32 %v2980_v31, %v5102_v37 }
0x1385   :  { %2988 = vmax.xlane.f32.xlu0 %v2987_v36 }
0x1386   :  { %v2984_v38 = vsel %vm1909_vm14, %v2982_v62, -inf }
0x1387   :  { %2985 = vmax.xlane.f32.xlu1 %v2984_v38 }
0x140e   :  { %v2989_v3 = vpop.xlane.xlu0 %2988 }
0x140f   :  { %v2991_v11 = vsub.f32 %v2983_v7, %v2989_v3 }
0x1410   :  { %v2986_v40 = vpop.xlane.xlu1 %2985 }
0x1411   :  { %v2994_v17 = vmul.f32 1.442695, %v2991_v11  ;;  %v2990_v22 = vsub.f32 %v2982_v62, %v2986_v40  ;;  %v3958_v11 = vld [vmem:[#allocation2 + $0x2d0] ss:$0 sm:$0xff] }
0x1413   :  { %4574 = vpow2.f32 %v2994_v17  ;;  %v2992_v14 = vmul.f32 1.442695, %v2990_v22 }
0x1415   :  { %4576 = vpow2.f32 %v2992_v14 }
0x1420   :  { %v4575_v21 = vpop.eup %4574 }
0x1421   :  { %v2999_v57 = vsel %vm1909_vm14, %v4575_v21, 0.0 }
0x1422   :  { %v4577_v55 = vpop.eup %4576  ;;  %3000 = vadd.xlane.f32.xlu1 %v2999_v57 }
0x1423   :  { %v2996_v18 = vsel %vm1909_vm14, %v4577_v55, 0.0 }
0x1424   :  { %2997 = vadd.xlane.f32.xlu0 %v2996_v18 }
0x1433   :  { %3006 = vrot.lane.b32.xlu1 %v5186_v29, %s4641_s27 }
0x1437   :  { %3099 = vrot.lane.b32.xlu1 %v5184_v53, %s4639_s25 }
0x143a   :  { %3008 = vrot.lane.b32.xlu0 %v5184_v53, %s4641_s27 }
0x143b   :  { %3093 = vrot.lane.b32.xlu1 %v5186_v29, %s4640_s26 }
0x143e   :  { %3097 = vrot.lane.b32.xlu0 %v5186_v29, %s4639_s25 }
0x1442   :  { %3095 = vrot.lane.b32.xlu0 %v5184_v53, %s4640_s26 }
0x14ab   :  { %v3001_v41 = vpop.xlane.xlu1 %3000 }
0x14ac   :  { %4578 = vrcp.f32 %v3001_v41 }
0x14ad   :  { %v2998_v43 = vpop.xlane.xlu0 %2997 }
0x14ae   :  { %4580 = vrcp.f32 %v2998_v43 }
0x14af   :  { %v3007_v61 = vpop.permute.xlu1 %3006 }
0x14b1   :  { %v3009_v20 = vpop.permute.xlu0 %3008 }
0x14b2   :  { %4373 = vmatprep.subr.mxu1 %v3009_v20 }
0x14b3   :  { %4374 = vmatpush3.msra.mxu1 %v3009_v20  ;;  %v3100_v63 = vpop.permute.xlu1 %3099 }
0x14b4   :  { %4375 = vmatprep.subr.mxu1 %v3007_v61 }
0x14b5   :  { %4376 = vmatpush3.msra.mxu1 %v3007_v61  ;;  %v3098_v34 = vpop.permute.xlu0 %3097 }
0x14b6   :  { %4380 = vmatprep.subr.msk.mxu1 %vm1909_vm14, %v3100_v63 }
0x14b7   :  { %v3094_v30 = vpop.permute.xlu1 %3093 }
0x14b9   :  { %v4579_v44 = vpop.eup %4578  ;;  %v3096_v48 = vpop.permute.xlu0 %3095 }
0x14ba   :  { %v3005_v56 = vmul.f32 %v4579_v44, %v4575_v21 }
0x14bb   :  { %v4581_v42 = vpop.eup %4580 }
0x14bc   :  { %v3004_v51 = vmul.f32 %v4581_v42, %v4577_v55 }
0x14be   :  { %4377 = vmatprep.mubr.msk.f32.mxu1 %vm1909_vm14, %v3004_v51 }
0x14bf   :  { %4378 = vmatmul.mubr.msk.f32.vlgmr.msra.gmra.mxu1 %vm1909_vm14, %v3005_v56 }
0x14c0   :  { %4381 = vmatpush3.xpose.msk.msra.mxu1 %vm1909_vm14, %v3100_v63  ;;  %4384 = vmatprep.mubr.msk.f32.mxu1 %vm1909_vm14, %v3094_v30 }
0x14c1   :  { %4382 = vmatprep.subr.msk.mxu1 %vm1909_vm14, %v3098_v34 }
0x14c4   :  { %4383 = vmatpush3.xpose.msk.msra.mxu1 %vm1909_vm14, %v3098_v34 }
0x14c5   :  { %4401 = vmatprep.subr.mxu1 %v2787_v32 }
0x14c7   :  { %4385 = vmatmul.mubr.msk.f32.vlgmr.msra.gmra.mxu1 %vm1909_vm14, %v3096_v48 }
0x14c8   :  { %4402 = vmatpush3.msra.mxu1 %v2787_v32  ;;  %v2794_v32 = vld [vmem:[#allocation2 + $0x2f0] sm:$0xff] }
0x14c9   :  { %4403 = vmatprep.subr.mxu1 %v2786_v4 }
0x14ca   :  { %4404 = vmatpush3.msra.mxu1 %v2786_v4  ;;  %v2792_v4 = vld [vmem:[#allocation2 + $0x2e0] sm:$0xff] }
0x157f   :  { %v4379_v47 = vpop.f32.mrf.mxu1 }
0x1581   :  { %v3084_v10 = vpop.f32.mrf.mxu1 }
0x1582   :  { %4405 = vmatprep.mubr.msk.f32.mxu1 %vm1909_vm14, %v3084_v10 }
0x1583   :  { %4406 = vmatmul.mubr.msk.f32.vlgmr.msra.gmra.mxu1 %vm1909_vm14, %v4379_v47  ;;  %v2791_v47 = vld [vmem:[#allocation2 + $0x2d8] sm:$0xff] }
0x1587   :  { %v4386_v8 = vpop.f32.mrf.mxu1 }
0x1588   :  { %v3185_v5 = vmul.f32 0.25, %v4386_v8 }
0x1589   :  { %v3175_v27 = vpop.f32.mrf.mxu1 }
0x158a   :  { %v3184_v6 = vmul.f32 0.25, %v3175_v27  ;;  %v3187_v12 = vadd.f32 %v3185_v5, %v5100_v50 }
0x158c   :  { %v3191_v49 = vsel %vm1909_vm14, %v3187_v12, -inf  ;;  %v3186_v0 = vadd.f32 %v3184_v6, %v5102_v37 }
0x158d   :  { %3192 = vmax.xlane.f32.xlu0 %v3191_v49  ;;  %v5248_v49 = vld [vmem:[#allocation2 + $0x348] sm:$0xf] }
0x158e   :  { %v3188_v35 = vsel %vm1909_vm14, %v3186_v0, -inf }
0x158f   :  { %3189 = vmax.xlane.f32.xlu1 %v3188_v35  ;;  %v3496_v35 = vrot.slane %v5248_v49, %v2509_v59  ;;  %v2803_v59 = vld [vmem:[#allocation2 + $0x338] sm:$0xff] }
0x1590   :  { %4419 = vmatprep.subr.mxu1 %v2803_v59 }
0x1591   :  { %4420 = vmatpush3.msra.mxu1 %v2803_v59 }
0x1616   :  { %v3193_v9 = vpop.xlane.xlu0 %3192 }
0x1617   :  { %v3195_v13 = vsub.f32 %v3187_v12, %v3193_v9 }
0x1618   :  { %v3190_v52 = vpop.xlane.xlu1 %3189 }
0x1619   :  { %v3198_v2 = vmul.f32 1.442695, %v3195_v13  ;;  %v3194_v16 = vsub.f32 %v3186_v0, %v3190_v52 }
0x161b   :  { %4582 = vpow2.f32 %v3198_v2  ;;  %v3196_v1 = vmul.f32 1.442695, %v3194_v16  ;;  %v3502_v16 = vrot.slane %v5248_v49, %v2515_v54  ;;  %v2800_v54 = vld [vmem:[#allocation2 + $0x320] sm:$0xff] }
0x161d   :  { %4584 = vpow2.f32 %v3196_v1 }
0x1628   :  { %v4583_v25 = vpop.eup %4582 }
0x1629   :  { %v3203_v39 = vsel %vm1909_vm14, %v4583_v25, 0.0 }
0x162a   :  { %v4585_v50 = vpop.eup %4584  ;;  %3204 = vadd.xlane.f32.xlu1 %v3203_v39 }
0x162b   :  { %v3200_v24 = vsel %vm1909_vm14, %v4585_v50, 0.0 }
0x162c   :  { %3201 = vadd.xlane.f32.xlu0 %v3200_v24  ;;  %v2801_v24 = vld [vmem:[#allocation2 + $0x328] sm:$0xff] }
0x163b   :  { %3210 = vrot.lane.b32.xlu1 %v5186_v29, %s4642_s28  ;;  %v2789_v29 = vld [vmem:[#allocation2 + $0x2c8] sm:$0xff] }
0x1642   :  { %3212 = vrot.lane.b32.xlu0 %v5184_v53, %s4642_s28  ;;  %v2788_v53 = vld [vmem:[#allocation2 + $0x2c0] sm:$0xff] }
0x1643   :  { %v4407_v3 = vpop.f32.mrf.mxu1 }
0x1645   :  { %v3450_v22 = vpop.f32.mrf.mxu1 }
0x16b3   :  { %v3205_v37 = vpop.xlane.xlu1 %3204 }
0x16b4   :  { %4586 = vrcp.f32 %v3205_v37  ;;  %v2799_v37 = vld [vmem:[#allocation2 + $0x318] sm:$0xff] }
0x16b5   :  { %v3202_v15 = vpop.xlane.xlu0 %3201 }
0x16b6   :  { %4588 = vrcp.f32 %v3202_v15  ;;  %v2798_v15 = vld [vmem:[#allocation2 + $0x310] sm:$0xff] }
0x16b7   :  { %v3211_v26 = vpop.permute.xlu1 %3210 }
0x16b9   :  { %v3213_v28 = vpop.permute.xlu0 %3212 }
0x16ba   :  { %4387 = vmatprep.subr.mxu0 %v3213_v28 }
0x16bb   :  { %4388 = vmatpush3.msra.mxu0 %v3213_v28  ;;  %v2797_v28 = vld [vmem:[#allocation2 + $0x308] sm:$0xff] }
0x16bc   :  { %4389 = vmatprep.subr.mxu0 %v3211_v26 }
0x16bd   :  { %4390 = vmatpush3.msra.mxu0 %v3211_v26  ;;  %v2796_v26 = vld [vmem:[#allocation2 + $0x300] sm:$0xff] }
0x16be   :  { %4394 = vmatprep.subr.mxu0 %v2789_v29 }
0x16c1   :  { %v4587_v33 = vpop.eup %4586 }
0x16c2   :  { %v3209_v36 = vmul.f32 %v4587_v33, %v4583_v25  ;;  %v3959_v33 = vld [vmem:[#allocation2 + $0x2f8] ss:$0 sm:$0xff] }
0x16c3   :  { %v4589_v31 = vpop.eup %4588 }
0x16c4   :  { %v3208_v7 = vmul.f32 %v4589_v31, %v4585_v50  ;;  %v2802_v50 = vld [vmem:[#allocation2 + $0x330] sm:$0xff] }
0x16c5   :  { %4421 = vmatprep.subr.mxu1 %v2802_v50 }
0x16c6   :  { %4391 = vmatprep.mubr.msk.f32.mxu0 %vm1909_vm14, %v3208_v7  ;;  %4422 = vmatpush3.msra.mxu1 %v2802_v50 }
0x16c7   :  { %4392 = vmatmul.mubr.msk.f32.vlgmr.msra.gmra.mxu0 %vm1909_vm14, %v3209_v36  ;;  %4423 = vmatprep.subr.mxu1 %v2801_v24 }
0x16c8   :  { %4395 = vmatpush3.msra.mxu0 %v2789_v29  ;;  %4424 = vmatpush3.msra.mxu1 %v2801_v24 }
0x16c9   :  { %4396 = vmatprep.subr.mxu0 %v2788_v53  ;;  %4425 = vmatprep.subr.mxu1 %v2800_v54 }
0x16ca   :  { %4397 = vmatpush3.msra.mxu0 %v2788_v53  ;;  %4426 = vmatpush3.msra.mxu1 %v2800_v54 }
0x16cb   :  { %4408 = vmatprep.subr.mxu0 %v2794_v32  ;;  %4427 = vmatprep.subr.mxu1 %v2799_v37 }
0x16cc   :  { %4428 = vmatpush3.msra.mxu1 %v2799_v37 }
0x16cd   :  { %4429 = vmatprep.subr.mxu1 %v2798_v15 }
0x16ce   :  { %4430 = vmatpush3.msra.mxu1 %v2798_v15 }
0x16cf   :  { %4431 = vmatprep.subr.mxu1 %v2797_v28 }
0x16d0   :  { %4432 = vmatpush3.msra.mxu1 %v2797_v28  ;;  %v3962_v28 = vld [vmem:[#allocation2 + $0x340] ss:$0 sm:$0xff] }
0x16d1   :  { %4433 = vmatprep.subr.mxu1 %v2796_v26 }
0x16d2   :  { %4434 = vmatpush3.msra.mxu1 %v2796_v26 }
0x1787   :  { %v4393_v62 = vpop.f32.mrf.mxu0 }
0x1789   :  { %v3288_v38 = vpop.f32.mrf.mxu0 }
0x178a   :  { %4398 = vmatprep.mubr.msk.f32.mxu0 %vm1909_vm14, %v3288_v38 }
0x178b   :  { %4399 = vmatmul.mubr.msk.f32.vlgmr.msra.gmra.mxu0 %vm1909_vm14, %v4393_v62 }
0x178c   :  { %4409 = vmatpush3.msra.mxu0 %v2794_v32 }
0x184b   :  { %v4400_v40 = vpop.f32.mrf.mxu0 }
0x184c   :  { %v3456_v17 = vadd.f32 %v4407_v3, %v4400_v40 }
0x184d   :  { %v3369_v14 = vpop.f32.mrf.mxu0 }
0x184e   :  { %v3464_v21 = vadd.f32 %v3958_v11, %v3456_v17  ;;  %v3451_v57 = vadd.f32 %v3450_v22, %v3369_v14 }
0x1850   :  { %v3463_v55 = vadd.f32 %v3958_v11, %v3451_v57  ;;  %v3466_v18 = vadd.f32 %v3464_v21, %v5178_v23 }
0x1852   :  { %v3470_v41 = vsel %vm225_vm0, %v3466_v18, 0.0  ;;  %v3465_v43 = vadd.f32 %v3463_v55, %v5176_v60  ;;  %v2793_v60 = vld [vmem:[#allocation2 + $0x2e8] sm:$0xff] }
0x1853   :  { %3471 = vadd.xlane.f32.xlu0 %v3470_v41  ;;  %4410 = vmatprep.subr.mxu0 %v2793_v60 }
0x1854   :  { %v3467_v61 = vsel %vm225_vm0, %v3465_v43, 0.0  ;;  %4411 = vmatpush3.msra.mxu0 %v2793_v60 }
0x1855   :  { %3468 = vadd.xlane.f32.xlu1 %v3467_v61  ;;  %4412 = vmatprep.subr.mxu0 %v2792_v4 }
0x1856   :  { %4413 = vmatpush3.msra.mxu0 %v2792_v4 }
0x1857   :  { %4414 = vmatprep.subr.mxu0 %v2791_v47 }
0x1858   :  { %4415 = vmatpush3.msra.mxu0 %v2791_v47 }
0x18dc   :  { %v3472_v20 = vpop.xlane.xlu0 %3471 }
0x18dd   :  { %v3474_v63 = vmul.f32 0.03125, %v3472_v20 }
0x18de   :  { %v3469_v44 = vpop.xlane.xlu1 %3468 }
0x18df   :  { %v3476_v42 = vsub.f32 %v3466_v18, %v3474_v63  ;;  %v3473_v51 = vmul.f32 0.03125, %v3469_v44 }
0x18e1   :  { %v3475_v56 = vsub.f32 %v3465_v43, %v3473_v51  ;;  %v3478_v30 = vmul.f32 %v3476_v42, %v3476_v42 }
0x18e3   :  { %v3482_v34 = vsel %vm225_vm0, %v3478_v30, 0.0  ;;  %v3477_v48 = vmul.f32 %v3475_v56, %v3475_v56 }
0x18e4   :  { %3483 = vadd.xlane.f32.xlu1 %v3482_v34 }
0x18e5   :  { %v3479_v23 = vsel %vm225_vm0, %v3477_v48, 0.0 }
0x18e6   :  { %3480 = vadd.xlane.f32.xlu0 %v3479_v23 }
0x196d   :  { %v3484_v10 = vpop.xlane.xlu1 %3483 }
0x196e   :  { %v3486_v8 = vmul.f32 0.03125, %v3484_v10 }
0x196f   :  { %v3481_v5 = vpop.xlane.xlu0 %3480 }
0x1970   :  { %v3488_v27 = vadd.f32 1e-05, %v3486_v8  ;;  %v3485_v6 = vmul.f32 0.03125, %v3481_v5 }
0x1972   :  { %4590 = vrsqrt.f32 %v3488_v27  ;;  %v3487_v12 = vadd.f32 1e-05, %v3485_v6 }
0x1974   :  { %4592 = vrsqrt.f32 %v3487_v12 }
0x197f   :  { %v4591_v0 = vpop.eup %4590 }
0x1980   :  { %v3492_v9 = vmul.f32 %v4591_v0, %v3476_v42 }
0x1981   :  { %v4593_v13 = vpop.eup %4592 }
0x1982   :  { %v3491_v52 = vmul.f32 %v4593_v13, %v3475_v56  ;;  %v3498_v2 = vmul.f32 %v3496_v35, %v3492_v9 }
0x1984   :  { %v3497_v1 = vmul.f32 %v3496_v35, %v3491_v52  ;;  %v5258_v39 = vadd.f32 %v3502_v16, %v3498_v2 }
0x1986   :  { %v5256_v25 = vadd.f32 %v3502_v16, %v3497_v1 }
0x1988   :  { %4416 = vmatprep.mubr.msk.f32.mxu0 %vm225_vm0, %v5256_v25 }
0x1989   :  { %4417 = vmatmul.mubr.msk.f32.vlgmr.msra.gmra.mxu0 %vm225_vm0, %v5258_v39 }
0x1a49   :  { %v4418_v31 = vpop.f32.mrf.mxu0 }
0x1a4a   :  { %v3587_v7 = vadd.f32 %v4418_v31, %v3959_v33 }
0x1a4b   :  { %v3581_v36 = vpop.f32.mrf.mxu0 }
0x1a4c   :  { %v3593_v29 = vmul.f32 0.70710677, %v3587_v7  ;;  %v3582_v53 = vadd.f32 %v3959_v33, %v3581_v36  ;;  %v3591_v54 = vmul.f32 0.5, %v3587_v7 }
0x1a4e   :  { %v3599_v62 = vand.u32 2147483647, %v3593_v29  ;;  %v3592_v38 = vmul.f32 0.70710677, %v3582_v53  ;;  %vm3595_vm4 = vcmp.lt.f32.partialorder %v3593_v29, 0.0  ;;  %v3590_v50 = vmul.f32 0.5, %v3582_v53 }
0x1a4f   :  { %v3597_v9 = vsel %vm3595_vm4, -1.0, %v4634_v46 }
0x1a50   :  { %v3601_v3 = vmul.f32 0.3275911, %v3599_v62  ;;  %v3598_v11 = vand.u32 2147483647, %v3592_v38  ;;  %v3625_v14 = vsub.f32 0.0, %v3599_v62  ;;  %vm3594_vm1 = vcmp.lt.f32.partialorder %v3592_v38, 0.0 }
0x1a51   :  { %v3596_v16 = vsel %vm3594_vm1, -1.0, %v4634_v46 }
0x1a52   :  { %v3603_v40 = vadd.f32 1.0, %v3601_v3  ;;  %v3600_v17 = vmul.f32 0.3275911, %v3598_v11  ;;  %v3624_v21 = vsub.f32 0.0, %v3598_v11  ;;  %v3627_v57 = vmul.f32 %v3625_v14, %v3599_v62 }
0x1a54   :  { %4594 = vrcp.f32 %v3603_v40  ;;  %v3602_v22 = vadd.f32 1.0, %v3600_v17  ;;  %v3626_v18 = vmul.f32 %v3624_v21, %v3598_v11  ;;  %v3630_v43 = vmul.f32 1.442695, %v3627_v57  ;;  %v3770_v57 = vld [vmem:[#allocation2 + $0x368] sm:$0xff] }
0x1a55   :  { %4438 = vmatprep.subr.mxu0 %v3770_v57 }
0x1a56   :  { %4596 = vrcp.f32 %v3602_v22  ;;  %v3628_v44 = vmul.f32 1.442695, %v3626_v18  ;;  %4439 = vmatpush3.msra.mxu0 %v3770_v57  ;;  %v3767_v18 = vld [vmem:[#allocation2 + $0x350] sm:$0xff] }
0x1a57   :  { %4598 = vpow2.f32 %v3630_v43 }
0x1a58   :  { %4600 = vpow2.f32 %v3628_v44 }
0x1a61   :  { %v4595_v55 = vpop.eup %4594 }
0x1a62   :  { %v3607_v41 = vmul.f32 1.0614054, %v4595_v55 }
0x1a63   :  { %v4597_v61 = vpop.eup %4596 }
0x1a64   :  { %v3609_v20 = vadd.f32 -1.4531521, %v3607_v41  ;;  %v3606_v63 = vmul.f32 1.0614054, %v4597_v61  ;;  %v4599_v5 = vpop.eup %4598 }
0x1a65   :  { %v4601_v0 = vpop.eup %4600 }
0x1a66   :  { %v3611_v42 = vmul.f32 %v4595_v55, %v3609_v20  ;;  %v3608_v51 = vadd.f32 -1.4531521, %v3606_v63 }
0x1a68   :  { %v3613_v56 = vadd.f32 1.4214138, %v3611_v42  ;;  %v3610_v30 = vmul.f32 %v4597_v61, %v3608_v51  ;;  %v3758_v51 = vrot.slane %v5248_v49, %v2771_v19 }
0x1a6a   :  { %v3615_v34 = vmul.f32 %v4595_v55, %v3613_v56  ;;  %v3612_v48 = vadd.f32 1.4214138, %v3610_v30 }
0x1a6c   :  { %v3617_v23 = vadd.f32 -0.28449672, %v3615_v34  ;;  %v3614_v32 = vmul.f32 %v4597_v61, %v3612_v48 }
0x1a6e   :  { %v3619_v60 = vmul.f32 %v4595_v55, %v3617_v23  ;;  %v3616_v4 = vadd.f32 -0.28449672, %v3614_v32  ;;  %v3764_v23 = vrot.slane %v5248_v49, %v2777_v45  ;;  %v3863_v45 = vld [vmem:[#allocation2 + $0x380] sm:$0x1] }
0x1a70   :  { %v3621_v47 = vadd.f32 0.2548296, %v3619_v60  ;;  %v3618_v10 = vmul.f32 %v4597_v61, %v3616_v4 }
0x1a72   :  { %v3623_v8 = vmul.f32 %v4595_v55, %v3621_v47  ;;  %v3620_v27 = vadd.f32 0.2548296, %v3618_v10  ;;  %v3768_v55 = vld [vmem:[#allocation2 + $0x358] sm:$0xff] }
0x1a73   :  { %v3853_v10 = vld [vmem:[#allocation2 + $0x378] sm:$0xff] }
0x1a74   :  { %v3633_v6 = vmul.f32 %v4599_v5, %v3623_v8  ;;  %v3622_v12 = vmul.f32 %v4597_v61, %v3620_v27  ;;  %v3852_v8 = vld [vmem:[#allocation2 + $0x370] sm:$0xff] }
0x1a76   :  { %v3635_v35 = vsub.f32 1.0, %v3633_v6  ;;  %v3632_v13 = vmul.f32 %v4601_v0, %v3622_v12 }
0x1a78   :  { %v3637_v52 = vmul.f32 %v3635_v35, %v3597_v9  ;;  %v3634_v2 = vsub.f32 1.0, %v3632_v13 }
0x1a7a   :  { %v3636_v1 = vmul.f32 %v3634_v2, %v3596_v16  ;;  %v3639_v59 = vadd.f32 1.0, %v3637_v52 }
0x1a7c   :  { %v3638_v24 = vadd.f32 1.0, %v3636_v1  ;;  %v3641_v15 = vmul.f32 %v3639_v59, %v3591_v54 }
0x1a7e   :  { %v3640_v37 = vmul.f32 %v3638_v24, %v3590_v50 }
0x1a80   :  { %4435 = vmatprep.mubr.msk.f32.mxu1 %vm594_vm2, %v3640_v37 }
0x1a81   :  { %4436 = vmatmul.mubr.msk.f32.vlgmr.msra.gmra.mxu1 %vm594_vm2, %v3641_v15 }
0x1b41   :  { %v4437_v26 = vpop.f32.mrf.mxu1 }
0x1b42   :  { %v3724_v33 = vadd.f32 %v4437_v26, %v3962_v28 }
0x1b43   :  { %v3718_v31 = vpop.f32.mrf.mxu1 }
0x1b44   :  { %v3719_v36 = vadd.f32 %v3962_v28, %v3718_v31  ;;  %v3728_v29 = vadd.f32 %v3724_v33, %v5258_v39 }
0x1b46   :  { %v3732_v46 = vsel %vm225_vm0, %v3728_v29, 0.0  ;;  %v3727_v62 = vadd.f32 %v3719_v36, %v5256_v25  ;;  %v3769_v25 = vld [vmem:[#allocation2 + $0x360] sm:$0xff] }
0x1b47   :  { %3733 = vadd.xlane.f32.xlu1 %v3732_v46  ;;  %4440 = vmatprep.subr.mxu0 %v3769_v25 }
0x1b48   :  { %v3729_v7 = vsel %vm225_vm0, %v3727_v62, 0.0  ;;  %4441 = vmatpush3.msra.mxu0 %v3769_v25 }
0x1b49   :  { %3730 = vadd.xlane.f32.xlu0 %v3729_v7  ;;  %4442 = vmatprep.subr.mxu0 %v3768_v55 }
0x1b4a   :  { %4443 = vmatpush3.msra.mxu0 %v3768_v55 }
0x1b4b   :  { %4444 = vmatprep.subr.mxu0 %v3767_v18 }
0x1b4c   :  { %4445 = vmatpush3.msra.mxu0 %v3767_v18 }
0x1bd0   :  { %v3734_v53 = vpop.xlane.xlu1 %3733 }
0x1bd1   :  { %v3736_v38 = vmul.f32 0.03125, %v3734_v53 }
0x1bd2   :  { %v3731_v3 = vpop.xlane.xlu0 %3730 }
0x1bd3   :  { %v3738_v11 = vsub.f32 %v3728_v29, %v3736_v38  ;;  %v3735_v40 = vmul.f32 0.03125, %v3731_v3 }
0x1bd5   :  { %v3737_v17 = vsub.f32 %v3727_v62, %v3735_v40  ;;  %v3740_v22 = vmul.f32 %v3738_v11, %v3738_v11 }
0x1bd7   :  { %v3744_v14 = vsel %vm225_vm0, %v3740_v22, 0.0  ;;  %v3739_v21 = vmul.f32 %v3737_v17, %v3737_v17 }
0x1bd8   :  { %3745 = vadd.xlane.f32.xlu1 %v3744_v14 }
0x1bd9   :  { %v3741_v39 = vsel %vm225_vm0, %v3739_v21, 0.0 }
0x1bda   :  { %3742 = vadd.xlane.f32.xlu0 %v3741_v39 }
0x1c61   :  { %v3746_v41 = vpop.xlane.xlu1 %3745 }
0x1c62   :  { %v3748_v43 = vmul.f32 0.03125, %v3746_v41 }
0x1c63   :  { %v3743_v61 = vpop.xlane.xlu0 %3742 }
0x1c64   :  { %v3750_v20 = vadd.f32 1e-05, %v3748_v43  ;;  %v3747_v63 = vmul.f32 0.03125, %v3743_v61 }
0x1c66   :  { %4602 = vrsqrt.f32 %v3750_v20  ;;  %v3749_v44 = vadd.f32 1e-05, %v3747_v63 }
0x1c68   :  { %4604 = vrsqrt.f32 %v3749_v44 }
0x1c73   :  { %v4603_v42 = vpop.eup %4602 }
0x1c74   :  { %v3754_v56 = vmul.f32 %v4603_v42, %v3738_v11 }
0x1c75   :  { %v4605_v30 = vpop.eup %4604 }
0x1c76   :  { %v3753_v34 = vmul.f32 %v4605_v30, %v3737_v17  ;;  %v3760_v48 = vmul.f32 %v3758_v51, %v3754_v56 }
0x1c78   :  { %v3759_v32 = vmul.f32 %v3758_v51, %v3753_v34  ;;  %v3766_v4 = vadd.f32 %v3764_v23, %v3760_v48 }
0x1c7a   :  { %v3765_v60 = vadd.f32 %v3764_v23, %v3759_v32 }
0x1c7c   :  { %4446 = vmatprep.mubr.msk.f32.mxu0 %vm225_vm0, %v3765_v60 }
0x1c7d   :  { %4447 = vmatmul.mubr.msk.f32.vlgmr.msra.gmra.mxu0 %vm225_vm0, %v3766_v4 }
0x1d3d   :  { %v4448_v47 = vpop.f32.mrf.mxu0 }
0x1d3e   :  { %v3855_v19 = vmul.f32 %v4448_v47, %v3853_v10 }
0x1d3f   :  { %v3843_v5 = vpop.f32.mrf.mxu0 }
0x1d40   :  { %v3854_v27 = vmul.f32 %v3852_v8, %v3843_v5 }
0x1d42   :  { %v3856_v6 = vadd.f32 %v3855_v19, %v3854_v27 }
0x1d44   :  { %v3857_v12 = vrot.slane %v3856_v6, 4 }
0x1d46   :  { %v3858_v0 = vadd.f32 %v3857_v12, %v3856_v6 }
0x1d48   :  { %v3859_v35 = vrot.slane %v3858_v0, 2 }
0x1d4a   :  { %v3860_v58 = vadd.f32 %v3859_v35, %v3858_v0 }
0x1d4c   :  { %v3861_v9 = vrot.slane %v3860_v58, 1 }
0x1d4e   :  { %v3862_v49 = vadd.f32 %v3861_v9, %v3860_v58 }
0x1d50   :  { %v3864_v13 = vadd.f32 %v3863_v45, %v3862_v49 }
0x1d52   :  { %3865 = vst [vmem:[%s5287_s2] sm:$0x1] %v3864_v13 }
0x1d53   :  { %3870 = vsyncpa [#allocation3], 1 }

</bundles_post_ra>
